<compile_context>
chip_gen: v7x
topology: tpu7x:2x2x1
jax: 0.10.0
libtpu: 0.0.40
codegen_flags: <defaults>
</compile_context>

<pallas_src>
import functools

import jax
import jax.numpy as jnp
from jax import lax
from jax.experimental import pallas as pl
from jax.experimental.pallas import tpu as pltpu


def _unet_block_kernel(x_ref, w1_ref, s1_ref, b1_ref, w2_ref, s2_ref, b2_ref,
                       mask_ref, o_ref, h_ref, *, Hp, Wp, Lp, ext, apply_act):
    # x_ref:    (1, Cin_p, Lext)     flattened, zero-padded, lane-extended input (bf16)
    # w1_ref:   (27, Cmid_p, Cin_p)  raw conv1 weights, tap-major (bf16, zero-padded)
    # s1_ref:   (Cmid_p, 1) f32      folded BN1 scale   b1_ref: (Cmid_p, 1) f32 bias
    # w2_ref:   (27, Cout_p, Cmid_p) raw conv2 weights (bf16, zero-padded)
    # s2_ref:   (Cout_p, 1) f32      folded BN2 scale   b2_ref: (Cout_p, 1) f32 bias
    # mask_ref: (1, Lp) f32          1.0 at interior voxels, 0.0 at halo-ring voxels
    # o_ref:    (1, Cout_p, Lp) f32  flattened padded output (interior sliced outside)
    # h_ref:    (Cmid_p, Lext) bf16  fused intermediate (VMEM scratch, never in HBM)
    cmid_p = h_ref.shape[0]
    lext = h_ref.shape[1]

    # Tap offsets of a 3x3x3 neighbourhood in the flattened padded volume.
    offs = [(kd - 1) * Hp * Wp + (kh - 1) * Wp + (kw - 1)
            for kd in range(3) for kh in range(3) for kw in range(3)]

    # ---- conv1: slab-free, 27 accumulated shifted-RHS MXU matmuls ----
    acc1 = None
    for k, off in enumerate(offs):
        rhs = x_ref[0, :, ext + off: ext + off + Lp]          # (Cin_p, Lp) bf16
        p = jnp.dot(w1_ref[k], rhs, preferred_element_type=jnp.float32)
        acc1 = p if acc1 is None else acc1 + p                # (Cmid_p, Lp) f32

    # BN (fp32 scale/bias on the fp32 accumulator) + ReLU6; zero the halo-ring
    # voxels so they act as conv2's zero padding.
    h = jnp.clip(acc1 * s1_ref[...] + b1_ref[...], 0.0, 6.0) * mask_ref[...]

    # Zero ONLY the lane-extension halo stripes (conv2 taps read into them);
    # the [ext, ext+Lp) interior is fully rewritten below, so no full clear.
    h_ref[:, :ext] = jnp.zeros((cmid_p, ext), h_ref.dtype)
    h_ref[:, ext + Lp:lext] = jnp.zeros((cmid_p, lext - (ext + Lp)), h_ref.dtype)
    h_ref[:, ext:ext + Lp] = h.astype(h_ref.dtype)

    # ---- conv2: slab-free, 27 accumulated shifted-RHS MXU matmuls ----
    acc2 = None
    for k, off in enumerate(offs):
        rhs = h_ref[:, ext + off: ext + off + Lp]             # (Cmid_p, Lp) bf16
        p = jnp.dot(w2_ref[k], rhs, preferred_element_type=jnp.float32)
        acc2 = p if acc2 is None else acc2 + p                # (Cout_p, Lp) f32

    y = acc2 * s2_ref[...] + b2_ref[...]
    if apply_act:
        y = jnp.clip(y, 0.0, 6.0)
    o_ref[0] = y.astype(o_ref.dtype)


def fold_bn(gamma, beta, mean, var, eps=1e-5):
    scale = gamma / jnp.sqrt(var + eps)
    bias = beta - mean * scale
    return scale, bias


def _prep_weight(w, m_pad, k_pad):
    # w: (Cout, Cin, 3, 3, 3) PyTorch layout -> (27, Cout_p, Cin_p) bf16,
    # tap index k = kd*9 + kh*3 + kw; zero-padded to the sublane pack.
    cout, cin = w.shape[0], w.shape[1]
    wt = jnp.transpose(w, (2, 3, 4, 0, 1)).reshape(27, cout, cin)
    wt = jnp.pad(wt, ((0, 0), (0, m_pad - cout), (0, k_pad - cin)))
    return wt.astype(jnp.bfloat16)


def _prep_sb(scale, bias, c_pad):
    c = scale.shape[0]
    s = jnp.pad(scale, (0, c_pad - c)).reshape(c_pad, 1).astype(jnp.float32)
    b = jnp.pad(bias, (0, c_pad - c)).reshape(c_pad, 1).astype(jnp.float32)
    return s, b


def unet_block_2x(x, params, last_act=True):
    """Forward pass of UNetBlock2x. x: (N, Cin, D, H, W) fp32 (NCDHW)."""
    w1, bn1, w2, bn2 = params
    N, Cin, D, H, W = x.shape
    Cmid, Cout = w1.shape[0], w2.shape[0]
    Dp, Hp, Wp = D + 2, H + 2, W + 2
    Lp = Dp * Hp * Wp
    max_off = Hp * Wp + Wp + 1              # largest |tap offset| in flat coords
    ext = pl.cdiv(max_off, 128) * 128       # 128-aligned lane extension
    assert ext >= max_off                   # conv2 taps must stay in bounds
    Lext = Lp + 2 * ext

    rup8 = lambda c: ((c + 7) // 8) * 8     # pad channels to the sublane pack
    Cin_p, Cmid_p, Cout_p = rup8(Cin), rup8(Cmid), rup8(Cout)

    s1, b1 = fold_bn(*bn1)
    s2, b2 = fold_bn(*bn2)
    w1r = _prep_weight(w1, Cmid_p, Cin_p)   # (27, Cmid_p, Cin_p) bf16 (raw)
    w2r = _prep_weight(w2, Cout_p, Cmid_p)  # (27, Cout_p, Cmid_p) bf16 (raw)
    s1p, b1p = _prep_sb(s1, b1, Cmid_p)     # fp32, applied to fp32 accumulator
    s2p, b2p = _prep_sb(s2, b2, Cout_p)

    # Cast to bf16 FIRST (halves wrapper-side pad traffic), then zero-pad the
    # channel dim to Cin_p, the spatial halo, and the lane extension.
    # TODO(synk): build the halo in-kernel (DMA the unpadded block into a
    # zero-initialised padded VMEM scratch) to remove this padded HBM copy.
    xb = x.astype(jnp.bfloat16)
    xp = jnp.pad(xb, ((0, 0), (0, Cin_p - Cin), (1, 1), (1, 1), (1, 1)))
    xe = jnp.pad(xp.reshape(N, Cin_p, Lp), ((0, 0), (0, 0), (ext, ext)))

    # Mask of "real" (interior) voxels in the flattened padded volume.
    # TODO(synk): generate in-kernel (iota + compares) and drop this input once
    # int div/mod lowering is verified on all target generations.
    dd = jnp.arange(Dp)[:, None, None]
    hh = jnp.arange(Hp)[None, :, None]
    ww = jnp.arange(Wp)[None, None, :]
    interior = ((dd >= 1) & (dd <= D) & (hh >= 1) & (hh <= H)
                & (ww >= 1) & (ww <= W))
    mask = interior.reshape(1, Lp).astype(jnp.float32)

    kernel = functools.partial(_unet_block_kernel, Hp=Hp, Wp=Wp, Lp=Lp,
                               ext=ext, apply_act=last_act)

    out_flat = pl.pallas_call(
        kernel,
        out_shape=jax.ShapeDtypeStruct((N, Cout_p, Lp), jnp.float32),
        grid_spec=pltpu.PrefetchScalarGridSpec(
            num_scalar_prefetch=0,
            # TODO(synk): for production volumes add a D-tile grid axis
            # (2-voxel halo re-read, pipeline_mode=pl.Buffered(2-3) on x) so
            # batch-1 inference still feeds both v7x TensorCores, and budget
            # the tile for v7x's 64 MiB VMEM (vmem_limit_bytes=...); likewise
            # switch to a W-on-lanes layout + bf16/interior-only output store
            # when W >= 128. At these test sizes one tile per sample is best.
            grid=(N,),
            in_specs=[
                pl.BlockSpec((1, Cin_p, Lext), lambda n: (n, 0, 0)),
                pl.BlockSpec((27, Cmid_p, Cin_p), lambda n: (0, 0, 0)),
                pl.BlockSpec((Cmid_p, 1), lambda n: (0, 0)),
                pl.BlockSpec((Cmid_p, 1), lambda n: (0, 0)),
                pl.BlockSpec((27, Cout_p, Cmid_p), lambda n: (0, 0, 0)),
                pl.BlockSpec((Cout_p, 1), lambda n: (0, 0)),
                pl.BlockSpec((Cout_p, 1), lambda n: (0, 0)),
                pl.BlockSpec((1, Lp), lambda n: (0, 0)),
            ],
            out_specs=pl.BlockSpec((1, Cout_p, Lp), lambda n: (n, 0, 0)),
            scratch_shapes=[
                pltpu.VMEM((Cmid_p, Lext), jnp.bfloat16),   # fused intermediate
            ],
        ),
        compiler_params=pltpu.CompilerParams(
            dimension_semantics=("parallel",)),
    )(xe, w1r, s1p, b1p, w2r, s2p, b2p, mask)

    # Drop channel padding + halo voxels: (N, Cout_p, Lp) -> (N, Cout, D, H, W)
    out = out_flat.reshape(N, Cout_p, Dp, Hp, Wp)[:, :Cout, 1:-1, 1:-1, 1:-1]
    return out


def make_params(key, cin, cout, cmid):
    if cmid == 0:
        c_mid = cin
    elif cmid == 1:
        c_mid = (cin + cout) // 2
    else:
        raise ValueError("cmid must be 0 or 1")

    ks = jax.random.split(key, 10)
    # Conv weights in PyTorch layout (Cout, Cin, kd, kh, kw).
    w1 = 0.1 * jax.random.normal(ks[0], (c_mid, cin, 3, 3, 3), jnp.float32)
    w2 = 0.1 * jax.random.normal(ks[1], (cout, c_mid, 3, 3, 3), jnp.float32)

    bn1 = (jax.random.uniform(ks[2], (c_mid,), jnp.float32, 0.5, 1.5),   # gamma
           0.1 * jax.random.normal(ks[3], (c_mid,), jnp.float32),        # beta
           0.1 * jax.random.normal(ks[4], (c_mid,), jnp.float32),        # mean
           jax.random.uniform(ks[5], (c_mid,), jnp.float32, 0.5, 1.5))   # var
    bn2 = (jax.random.uniform(ks[6], (cout,), jnp.float32, 0.5, 1.5),
           0.1 * jax.random.normal(ks[7], (cout,), jnp.float32),
           0.1 * jax.random.normal(ks[8], (cout,), jnp.float32),
           jax.random.uniform(ks[9], (cout,), jnp.float32, 0.5, 1.5))
    return (w1, bn1, w2, bn2)


def _reference(x, params, last_act=True):
    """Pure-JAX reference (NCDHW / OIDHW), matches the PyTorch module."""
    w1, bn1, w2, bn2 = params
    dn = ("NCDHW", "OIDHW", "NCDHW")

    def conv(x, w):
        return lax.conv_general_dilated(
            x, w, window_strides=(1, 1, 1), padding="SAME",
            dimension_numbers=dn)

    def bn_act(y, bn, act):
        s, b = fold_bn(*bn)
        y = y * s[None, :, None, None, None] + b[None, :, None, None, None]
        return jnp.clip(y, 0.0, 6.0) if act else y

    h = bn_act(conv(x, w1), bn1, True)
    return bn_act(conv(h, w2), bn2, last_act)


if __name__ == "__main__":
    key = jax.random.PRNGKey(0)
    kx, kp = jax.random.split(key)

    N, Cin, Cout = 2, 4, 8
    D = H = W = 8
    cmid_flag = 1  # c_mid = (cin + cout) // 2 = 6

    x = jax.random.normal(kx, (N, Cin, D, H, W), jnp.float32)
    params = make_params(kp, Cin, Cout, cmid_flag)

    out = unet_block_2x(x, params, last_act=True)
    out = jax.block_until_ready(out)

    ref = jax.block_until_ready(_reference(x, params, last_act=True))

    assert out.shape == (N, Cout, D, H, W)
    err = float(jnp.max(jnp.abs(out - ref)))
    # Tolerance sized for bf16 MXU inputs with fp32 accumulation across two
    # 3x3x3 convs; structural errors would be O(1).
    assert err < 0.15, f"mismatch vs reference: max abs err {err}"
    print("KERNEL_OK")
</pallas_src>

<mosaic_0001>
module attributes {stable_mosaic.version = 11 : i64} {
  func.func @_unet_block_kernel(%arg0: i32, %arg1: memref<1x8x1256xbf16, #tpu.memory_space<vmem>>, %arg2: memref<27x8x8xbf16, #tpu.memory_space<vmem>>, %arg3: memref<8x1xf32, #tpu.memory_space<vmem>>, %arg4: memref<8x1xf32, #tpu.memory_space<vmem>>, %arg5: memref<27x8x8xbf16, #tpu.memory_space<vmem>>, %arg6: memref<8x1xf32, #tpu.memory_space<vmem>>, %arg7: memref<8x1xf32, #tpu.memory_space<vmem>>, %arg8: memref<1x1000xf32, #tpu.memory_space<vmem>>, %arg9: memref<1x8x1000xf32, #tpu.memory_space<vmem>>, %arg10: memref<8x1256xbf16, #tpu.memory_space<vmem>>) attributes {dimension_semantics = [#tpu.dimension_semantics<parallel>], iteration_bounds = array<i64: 2>, scalar_prefetch = 0 : i64, scratch_operands = 1 : i64, tpu.core_type = #tpu.core_type<tc>, window_params = [{transform_indices = @transform_0, window_bounds = array<i64: 1, 8, 1256>}, {pipeline_mode = #tpu.pipeline_mode<synchronous>, transform_indices = @transform_1, window_bounds = array<i64: 27, 8, 8>}, {pipeline_mode = #tpu.pipeline_mode<synchronous>, transform_indices = @transform_2, window_bounds = array<i64: 8, 1>}, {pipeline_mode = #tpu.pipeline_mode<synchronous>, transform_indices = @transform_3, window_bounds = array<i64: 8, 1>}, {pipeline_mode = #tpu.pipeline_mode<synchronous>, transform_indices = @transform_4, window_bounds = array<i64: 27, 8, 8>}, {pipeline_mode = #tpu.pipeline_mode<synchronous>, transform_indices = @transform_5, window_bounds = array<i64: 8, 1>}, {pipeline_mode = #tpu.pipeline_mode<synchronous>, transform_indices = @transform_6, window_bounds = array<i64: 8, 1>}, {pipeline_mode = #tpu.pipeline_mode<synchronous>, transform_indices = @transform_7, window_bounds = array<i64: 1, 1000>}, {transform_indices = @transform_8, window_bounds = array<i64: 1, 8, 1000>}]} {
    %c0 = arith.constant 0 : index
    %c0_0 = arith.constant 0 : index
    %c17 = arith.constant 17 : index
    %0 = vector.load %arg1[%c0, %c0_0, %c17] : memref<1x8x1256xbf16, #tpu.memory_space<vmem>>, vector<1x8x1000xbf16>
    %1 = vector.shape_cast %0 : vector<1x8x1000xbf16> to vector<8x1000xbf16>
    %c0_1 = arith.constant 0 : index
    %c0_2 = arith.constant 0 : index
    %c0_3 = arith.constant 0 : index
    %2 = vector.load %arg2[%c0_1, %c0_2, %c0_3] : memref<27x8x8xbf16, #tpu.memory_space<vmem>>, vector<1x8x8xbf16>
    %3 = vector.shape_cast %2 : vector<1x8x8xbf16> to vector<8x8xbf16>
    %cst = arith.constant dense<0.000000e+00> : vector<8x1000xf32>
    %4 = tpu.matmul %3, %1, %cst {dimension_numbers = #tpu.dot_dimension_numbers<[1], [0], [0], [1], [0, 0, 1, 1], [], []>} : vector<8x8xbf16>, vector<8x1000xbf16>, vector<8x1000xf32> -> vector<8x1000xf32>
    %c0_4 = arith.constant 0 : index
    %c0_5 = arith.constant 0 : index
    %c18 = arith.constant 18 : index
    %5 = vector.load %arg1[%c0_4, %c0_5, %c18] : memref<1x8x1256xbf16, #tpu.memory_space<vmem>>, vector<1x8x1000xbf16>
    %6 = vector.shape_cast %5 : vector<1x8x1000xbf16> to vector<8x1000xbf16>
    %c1 = arith.constant 1 : index
    %c0_6 = arith.constant 0 : index
    %c0_7 = arith.constant 0 : index
    %7 = vector.load %arg2[%c1, %c0_6, %c0_7] : memref<27x8x8xbf16, #tpu.memory_space<vmem>>, vector<1x8x8xbf16>
    %8 = vector.shape_cast %7 : vector<1x8x8xbf16> to vector<8x8xbf16>
    %cst_8 = arith.constant dense<0.000000e+00> : vector<8x1000xf32>
    %9 = tpu.matmul %8, %6, %cst_8 {dimension_numbers = #tpu.dot_dimension_numbers<[1], [0], [0], [1], [0, 0, 1, 1], [], []>} : vector<8x8xbf16>, vector<8x1000xbf16>, vector<8x1000xf32> -> vector<8x1000xf32>
    %10 = arith.addf %4, %9 : vector<8x1000xf32>
    %c0_9 = arith.constant 0 : index
    %c0_10 = arith.constant 0 : index
    %c19 = arith.constant 19 : index
    %11 = vector.load %arg1[%c0_9, %c0_10, %c19] : memref<1x8x1256xbf16, #tpu.memory_space<vmem>>, vector<1x8x1000xbf16>
    %12 = vector.shape_cast %11 : vector<1x8x1000xbf16> to vector<8x1000xbf16>
    %c2 = arith.constant 2 : index
    %c0_11 = arith.constant 0 : index
    %c0_12 = arith.constant 0 : index
    %13 = vector.load %arg2[%c2, %c0_11, %c0_12] : memref<27x8x8xbf16, #tpu.memory_space<vmem>>, vector<1x8x8xbf16>
    %14 = vector.shape_cast %13 : vector<1x8x8xbf16> to vector<8x8xbf16>
    %cst_13 = arith.constant dense<0.000000e+00> : vector<8x1000xf32>
    %15 = tpu.matmul %14, %12, %cst_13 {dimension_numbers = #tpu.dot_dimension_numbers<[1], [0], [0], [1], [0, 0, 1, 1], [], []>} : vector<8x8xbf16>, vector<8x1000xbf16>, vector<8x1000xf32> -> vector<8x1000xf32>
    %16 = arith.addf %10, %15 : vector<8x1000xf32>
    %c0_14 = arith.constant 0 : index
    %c0_15 = arith.constant 0 : index
    %c27 = arith.constant 27 : index
    %17 = vector.load %arg1[%c0_14, %c0_15, %c27] : memref<1x8x1256xbf16, #tpu.memory_space<vmem>>, vector<1x8x1000xbf16>
    %18 = vector.shape_cast %17 : vector<1x8x1000xbf16> to vector<8x1000xbf16>
    %c3 = arith.constant 3 : index
    %c0_16 = arith.constant 0 : index
    %c0_17 = arith.constant 0 : index
    %19 = vector.load %arg2[%c3, %c0_16, %c0_17] : memref<27x8x8xbf16, #tpu.memory_space<vmem>>, vector<1x8x8xbf16>
    %20 = vector.shape_cast %19 : vector<1x8x8xbf16> to vector<8x8xbf16>
    %cst_18 = arith.constant dense<0.000000e+00> : vector<8x1000xf32>
    %21 = tpu.matmul %20, %18, %cst_18 {dimension_numbers = #tpu.dot_dimension_numbers<[1], [0], [0], [1], [0, 0, 1, 1], [], []>} : vector<8x8xbf16>, vector<8x1000xbf16>, vector<8x1000xf32> -> vector<8x1000xf32>
    %22 = arith.addf %16, %21 : vector<8x1000xf32>
    %c0_19 = arith.constant 0 : index
    %c0_20 = arith.constant 0 : index
    %c28 = arith.constant 28 : index
    %23 = vector.load %arg1[%c0_19, %c0_20, %c28] : memref<1x8x1256xbf16, #tpu.memory_space<vmem>>, vector<1x8x1000xbf16>
    %24 = vector.shape_cast %23 : vector<1x8x1000xbf16> to vector<8x1000xbf16>
    %c4 = arith.constant 4 : index
    %c0_21 = arith.constant 0 : index
    %c0_22 = arith.constant 0 : index
    %25 = vector.load %arg2[%c4, %c0_21, %c0_22] : memref<27x8x8xbf16, #tpu.memory_space<vmem>>, vector<1x8x8xbf16>
    %26 = vector.shape_cast %25 : vector<1x8x8xbf16> to vector<8x8xbf16>
    %cst_23 = arith.constant dense<0.000000e+00> : vector<8x1000xf32>
    %27 = tpu.matmul %26, %24, %cst_23 {dimension_numbers = #tpu.dot_dimension_numbers<[1], [0], [0], [1], [0, 0, 1, 1], [], []>} : vector<8x8xbf16>, vector<8x1000xbf16>, vector<8x1000xf32> -> vector<8x1000xf32>
    %28 = arith.addf %22, %27 : vector<8x1000xf32>
    %c0_24 = arith.constant 0 : index
    %c0_25 = arith.constant 0 : index
    %c29 = arith.constant 29 : index
    %29 = vector.load %arg1[%c0_24, %c0_25, %c29] : memref<1x8x1256xbf16, #tpu.memory_space<vmem>>, vector<1x8x1000xbf16>
    %30 = vector.shape_cast %29 : vector<1x8x1000xbf16> to vector<8x1000xbf16>
    %c5 = arith.constant 5 : index
    %c0_26 = arith.constant 0 : index
    %c0_27 = arith.constant 0 : index
    %31 = vector.load %arg2[%c5, %c0_26, %c0_27] : memref<27x8x8xbf16, #tpu.memory_space<vmem>>, vector<1x8x8xbf16>
    %32 = vector.shape_cast %31 : vector<1x8x8xbf16> to vector<8x8xbf16>
    %cst_28 = arith.constant dense<0.000000e+00> : vector<8x1000xf32>
    %33 = tpu.matmul %32, %30, %cst_28 {dimension_numbers = #tpu.dot_dimension_numbers<[1], [0], [0], [1], [0, 0, 1, 1], [], []>} : vector<8x8xbf16>, vector<8x1000xbf16>, vector<8x1000xf32> -> vector<8x1000xf32>
    %34 = arith.addf %28, %33 : vector<8x1000xf32>
    %c0_29 = arith.constant 0 : index
    %c0_30 = arith.constant 0 : index
    %c37 = arith.constant 37 : index
    %35 = vector.load %arg1[%c0_29, %c0_30, %c37] : memref<1x8x1256xbf16, #tpu.memory_space<vmem>>, vector<1x8x1000xbf16>
    %36 = vector.shape_cast %35 : vector<1x8x1000xbf16> to vector<8x1000xbf16>
    %c6 = arith.constant 6 : index
    %c0_31 = arith.constant 0 : index
    %c0_32 = arith.constant 0 : index
    %37 = vector.load %arg2[%c6, %c0_31, %c0_32] : memref<27x8x8xbf16, #tpu.memory_space<vmem>>, vector<1x8x8xbf16>
    %38 = vector.shape_cast %37 : vector<1x8x8xbf16> to vector<8x8xbf16>
    %cst_33 = arith.constant dense<0.000000e+00> : vector<8x1000xf32>
    %39 = tpu.matmul %38, %36, %cst_33 {dimension_numbers = #tpu.dot_dimension_numbers<[1], [0], [0], [1], [0, 0, 1, 1], [], []>} : vector<8x8xbf16>, vector<8x1000xbf16>, vector<8x1000xf32> -> vector<8x1000xf32>
    %40 = arith.addf %34, %39 : vector<8x1000xf32>
    %c0_34 = arith.constant 0 : index
    %c0_35 = arith.constant 0 : index
    %c38 = arith.constant 38 : index
    %41 = vector.load %arg1[%c0_34, %c0_35, %c38] : memref<1x8x1256xbf16, #tpu.memory_space<vmem>>, vector<1x8x1000xbf16>
    %42 = vector.shape_cast %41 : vector<1x8x1000xbf16> to vector<8x1000xbf16>
    %c7 = arith.constant 7 : index
    %c0_36 = arith.constant 0 : index
    %c0_37 = arith.constant 0 : index
    %43 = vector.load %arg2[%c7, %c0_36, %c0_37] : memref<27x8x8xbf16, #tpu.memory_space<vmem>>, vector<1x8x8xbf16>
    %44 = vector.shape_cast %43 : vector<1x8x8xbf16> to vector<8x8xbf16>
    %cst_38 = arith.constant dense<0.000000e+00> : vector<8x1000xf32>
    %45 = tpu.matmul %44, %42, %cst_38 {dimension_numbers = #tpu.dot_dimension_numbers<[1], [0], [0], [1], [0, 0, 1, 1], [], []>} : vector<8x8xbf16>, vector<8x1000xbf16>, vector<8x1000xf32> -> vector<8x1000xf32>
    %46 = arith.addf %40, %45 : vector<8x1000xf32>
    %c0_39 = arith.constant 0 : index
    %c0_40 = arith.constant 0 : index
    %c39 = arith.constant 39 : index
    %47 = vector.load %arg1[%c0_39, %c0_40, %c39] : memref<1x8x1256xbf16, #tpu.memory_space<vmem>>, vector<1x8x1000xbf16>
    %48 = vector.shape_cast %47 : vector<1x8x1000xbf16> to vector<8x1000xbf16>
    %c8 = arith.constant 8 : index
    %c0_41 = arith.constant 0 : index
    %c0_42 = arith.constant 0 : index
    %49 = vector.load %arg2[%c8, %c0_41, %c0_42] : memref<27x8x8xbf16, #tpu.memory_space<vmem>>, vector<1x8x8xbf16>
    %50 = vector.shape_cast %49 : vector<1x8x8xbf16> to vector<8x8xbf16>
    %cst_43 = arith.constant dense<0.000000e+00> : vector<8x1000xf32>
    %51 = tpu.matmul %50, %48, %cst_43 {dimension_numbers = #tpu.dot_dimension_numbers<[1], [0], [0], [1], [0, 0, 1, 1], [], []>} : vector<8x8xbf16>, vector<8x1000xbf16>, vector<8x1000xf32> -> vector<8x1000xf32>
    %52 = arith.addf %46, %51 : vector<8x1000xf32>
    %c0_44 = arith.constant 0 : index
    %c0_45 = arith.constant 0 : index
    %c117 = arith.constant 117 : index
    %53 = vector.load %arg1[%c0_44, %c0_45, %c117] : memref<1x8x1256xbf16, #tpu.memory_space<vmem>>, vector<1x8x1000xbf16>
    %54 = vector.shape_cast %53 : vector<1x8x1000xbf16> to vector<8x1000xbf16>
    %c9 = arith.constant 9 : index
    %c0_46 = arith.constant 0 : index
    %c0_47 = arith.constant 0 : index
    %55 = vector.load %arg2[%c9, %c0_46, %c0_47] : memref<27x8x8xbf16, #tpu.memory_space<vmem>>, vector<1x8x8xbf16>
    %56 = vector.shape_cast %55 : vector<1x8x8xbf16> to vector<8x8xbf16>
    %cst_48 = arith.constant dense<0.000000e+00> : vector<8x1000xf32>
    %57 = tpu.matmul %56, %54, %cst_48 {dimension_numbers = #tpu.dot_dimension_numbers<[1], [0], [0], [1], [0, 0, 1, 1], [], []>} : vector<8x8xbf16>, vector<8x1000xbf16>, vector<8x1000xf32> -> vector<8x1000xf32>
    %58 = arith.addf %52, %57 : vector<8x1000xf32>
    %c0_49 = arith.constant 0 : index
    %c0_50 = arith.constant 0 : index
    %c118 = arith.constant 118 : index
    %59 = vector.load %arg1[%c0_49, %c0_50, %c118] : memref<1x8x1256xbf16, #tpu.memory_space<vmem>>, vector<1x8x1000xbf16>
    %60 = vector.shape_cast %59 : vector<1x8x1000xbf16> to vector<8x1000xbf16>
    %c10 = arith.constant 10 : index
    %c0_51 = arith.constant 0 : index
    %c0_52 = arith.constant 0 : index
    %61 = vector.load %arg2[%c10, %c0_51, %c0_52] : memref<27x8x8xbf16, #tpu.memory_space<vmem>>, vector<1x8x8xbf16>
    %62 = vector.shape_cast %61 : vector<1x8x8xbf16> to vector<8x8xbf16>
    %cst_53 = arith.constant dense<0.000000e+00> : vector<8x1000xf32>
    %63 = tpu.matmul %62, %60, %cst_53 {dimension_numbers = #tpu.dot_dimension_numbers<[1], [0], [0], [1], [0, 0, 1, 1], [], []>} : vector<8x8xbf16>, vector<8x1000xbf16>, vector<8x1000xf32> -> vector<8x1000xf32>
    %64 = arith.addf %58, %63 : vector<8x1000xf32>
    %c0_54 = arith.constant 0 : index
    %c0_55 = arith.constant 0 : index
    %c119 = arith.constant 119 : index
    %65 = vector.load %arg1[%c0_54, %c0_55, %c119] : memref<1x8x1256xbf16, #tpu.memory_space<vmem>>, vector<1x8x1000xbf16>
    %66 = vector.shape_cast %65 : vector<1x8x1000xbf16> to vector<8x1000xbf16>
    %c11 = arith.constant 11 : index
    %c0_56 = arith.constant 0 : index
    %c0_57 = arith.constant 0 : index
    %67 = vector.load %arg2[%c11, %c0_56, %c0_57] : memref<27x8x8xbf16, #tpu.memory_space<vmem>>, vector<1x8x8xbf16>
    %68 = vector.shape_cast %67 : vector<1x8x8xbf16> to vector<8x8xbf16>
    %cst_58 = arith.constant dense<0.000000e+00> : vector<8x1000xf32>
    %69 = tpu.matmul %68, %66, %cst_58 {dimension_numbers = #tpu.dot_dimension_numbers<[1], [0], [0], [1], [0, 0, 1, 1], [], []>} : vector<8x8xbf16>, vector<8x1000xbf16>, vector<8x1000xf32> -> vector<8x1000xf32>
    %70 = arith.addf %64, %69 : vector<8x1000xf32>
    %c0_59 = arith.constant 0 : index
    %c0_60 = arith.constant 0 : index
    %c127 = arith.constant 127 : index
    %71 = vector.load %arg1[%c0_59, %c0_60, %c127] : memref<1x8x1256xbf16, #tpu.memory_space<vmem>>, vector<1x8x1000xbf16>
    %72 = vector.shape_cast %71 : vector<1x8x1000xbf16> to vector<8x1000xbf16>
    %c12 = arith.constant 12 : index
    %c0_61 = arith.constant 0 : index
    %c0_62 = arith.constant 0 : index
    %73 = vector.load %arg2[%c12, %c0_61, %c0_62] : memref<27x8x8xbf16, #tpu.memory_space<vmem>>, vector<1x8x8xbf16>
    %74 = vector.shape_cast %73 : vector<1x8x8xbf16> to vector<8x8xbf16>
    %cst_63 = arith.constant dense<0.000000e+00> : vector<8x1000xf32>
    %75 = tpu.matmul %74, %72, %cst_63 {dimension_numbers = #tpu.dot_dimension_numbers<[1], [0], [0], [1], [0, 0, 1, 1], [], []>} : vector<8x8xbf16>, vector<8x1000xbf16>, vector<8x1000xf32> -> vector<8x1000xf32>
    %76 = arith.addf %70, %75 : vector<8x1000xf32>
    %c0_64 = arith.constant 0 : index
    %c0_65 = arith.constant 0 : index
    %c128 = arith.constant 128 : index
    %77 = vector.load %arg1[%c0_64, %c0_65, %c128] : memref<1x8x1256xbf16, #tpu.memory_space<vmem>>, vector<1x8x1000xbf16>
    %78 = vector.shape_cast %77 : vector<1x8x1000xbf16> to vector<8x1000xbf16>
    %c13 = arith.constant 13 : index
    %c0_66 = arith.constant 0 : index
    %c0_67 = arith.constant 0 : index
    %79 = vector.load %arg2[%c13, %c0_66, %c0_67] : memref<27x8x8xbf16, #tpu.memory_space<vmem>>, vector<1x8x8xbf16>
    %80 = vector.shape_cast %79 : vector<1x8x8xbf16> to vector<8x8xbf16>
    %cst_68 = arith.constant dense<0.000000e+00> : vector<8x1000xf32>
    %81 = tpu.matmul %80, %78, %cst_68 {dimension_numbers = #tpu.dot_dimension_numbers<[1], [0], [0], [1], [0, 0, 1, 1], [], []>} : vector<8x8xbf16>, vector<8x1000xbf16>, vector<8x1000xf32> -> vector<8x1000xf32>
    %82 = arith.addf %76, %81 : vector<8x1000xf32>
    %c0_69 = arith.constant 0 : index
    %c0_70 = arith.constant 0 : index
    %c129 = arith.constant 129 : index
    %83 = vector.load %arg1[%c0_69, %c0_70, %c129] : memref<1x8x1256xbf16, #tpu.memory_space<vmem>>, vector<1x8x1000xbf16>
    %84 = vector.shape_cast %83 : vector<1x8x1000xbf16> to vector<8x1000xbf16>
    %c14 = arith.constant 14 : index
    %c0_71 = arith.constant 0 : index
    %c0_72 = arith.constant 0 : index
    %85 = vector.load %arg2[%c14, %c0_71, %c0_72] : memref<27x8x8xbf16, #tpu.memory_space<vmem>>, vector<1x8x8xbf16>
    %86 = vector.shape_cast %85 : vector<1x8x8xbf16> to vector<8x8xbf16>
    %cst_73 = arith.constant dense<0.000000e+00> : vector<8x1000xf32>
    %87 = tpu.matmul %86, %84, %cst_73 {dimension_numbers = #tpu.dot_dimension_numbers<[1], [0], [0], [1], [0, 0, 1, 1], [], []>} : vector<8x8xbf16>, vector<8x1000xbf16>, vector<8x1000xf32> -> vector<8x1000xf32>
    %88 = arith.addf %82, %87 : vector<8x1000xf32>
    %c0_74 = arith.constant 0 : index
    %c0_75 = arith.constant 0 : index
    %c137 = arith.constant 137 : index
    %89 = vector.load %arg1[%c0_74, %c0_75, %c137] : memref<1x8x1256xbf16, #tpu.memory_space<vmem>>, vector<1x8x1000xbf16>
    %90 = vector.shape_cast %89 : vector<1x8x1000xbf16> to vector<8x1000xbf16>
    %c15 = arith.constant 15 : index
    %c0_76 = arith.constant 0 : index
    %c0_77 = arith.constant 0 : index
    %91 = vector.load %arg2[%c15, %c0_76, %c0_77] : memref<27x8x8xbf16, #tpu.memory_space<vmem>>, vector<1x8x8xbf16>
    %92 = vector.shape_cast %91 : vector<1x8x8xbf16> to vector<8x8xbf16>
    %cst_78 = arith.constant dense<0.000000e+00> : vector<8x1000xf32>
    %93 = tpu.matmul %92, %90, %cst_78 {dimension_numbers = #tpu.dot_dimension_numbers<[1], [0], [0], [1], [0, 0, 1, 1], [], []>} : vector<8x8xbf16>, vector<8x1000xbf16>, vector<8x1000xf32> -> vector<8x1000xf32>
    %94 = arith.addf %88, %93 : vector<8x1000xf32>
    %c0_79 = arith.constant 0 : index
    %c0_80 = arith.constant 0 : index
    %c138 = arith.constant 138 : index
    %95 = vector.load %arg1[%c0_79, %c0_80, %c138] : memref<1x8x1256xbf16, #tpu.memory_space<vmem>>, vector<1x8x1000xbf16>
    %96 = vector.shape_cast %95 : vector<1x8x1000xbf16> to vector<8x1000xbf16>
    %c16 = arith.constant 16 : index
    %c0_81 = arith.constant 0 : index
    %c0_82 = arith.constant 0 : index
    %97 = vector.load %arg2[%c16, %c0_81, %c0_82] : memref<27x8x8xbf16, #tpu.memory_space<vmem>>, vector<1x8x8xbf16>
    %98 = vector.shape_cast %97 : vector<1x8x8xbf16> to vector<8x8xbf16>
    %cst_83 = arith.constant dense<0.000000e+00> : vector<8x1000xf32>
    %99 = tpu.matmul %98, %96, %cst_83 {dimension_numbers = #tpu.dot_dimension_numbers<[1], [0], [0], [1], [0, 0, 1, 1], [], []>} : vector<8x8xbf16>, vector<8x1000xbf16>, vector<8x1000xf32> -> vector<8x1000xf32>
    %100 = arith.addf %94, %99 : vector<8x1000xf32>
    %c0_84 = arith.constant 0 : index
    %c0_85 = arith.constant 0 : index
    %c139 = arith.constant 139 : index
    %101 = vector.load %arg1[%c0_84, %c0_85, %c139] : memref<1x8x1256xbf16, #tpu.memory_space<vmem>>, vector<1x8x1000xbf16>
    %102 = vector.shape_cast %101 : vector<1x8x1000xbf16> to vector<8x1000xbf16>
    %c17_86 = arith.constant 17 : index
    %c0_87 = arith.constant 0 : index
    %c0_88 = arith.constant 0 : index
    %103 = vector.load %arg2[%c17_86, %c0_87, %c0_88] : memref<27x8x8xbf16, #tpu.memory_space<vmem>>, vector<1x8x8xbf16>
    %104 = vector.shape_cast %103 : vector<1x8x8xbf16> to vector<8x8xbf16>
    %cst_89 = arith.constant dense<0.000000e+00> : vector<8x1000xf32>
    %105 = tpu.matmul %104, %102, %cst_89 {dimension_numbers = #tpu.dot_dimension_numbers<[1], [0], [0], [1], [0, 0, 1, 1], [], []>} : vector<8x8xbf16>, vector<8x1000xbf16>, vector<8x1000xf32> -> vector<8x1000xf32>
    %106 = arith.addf %100, %105 : vector<8x1000xf32>
    %c0_90 = arith.constant 0 : index
    %c0_91 = arith.constant 0 : index
    %c217 = arith.constant 217 : index
    %107 = vector.load %arg1[%c0_90, %c0_91, %c217] : memref<1x8x1256xbf16, #tpu.memory_space<vmem>>, vector<1x8x1000xbf16>
    %108 = vector.shape_cast %107 : vector<1x8x1000xbf16> to vector<8x1000xbf16>
    %c18_92 = arith.constant 18 : index
    %c0_93 = arith.constant 0 : index
    %c0_94 = arith.constant 0 : index
    %109 = vector.load %arg2[%c18_92, %c0_93, %c0_94] : memref<27x8x8xbf16, #tpu.memory_space<vmem>>, vector<1x8x8xbf16>
    %110 = vector.shape_cast %109 : vector<1x8x8xbf16> to vector<8x8xbf16>
    %cst_95 = arith.constant dense<0.000000e+00> : vector<8x1000xf32>
    %111 = tpu.matmul %110, %108, %cst_95 {dimension_numbers = #tpu.dot_dimension_numbers<[1], [0], [0], [1], [0, 0, 1, 1], [], []>} : vector<8x8xbf16>, vector<8x1000xbf16>, vector<8x1000xf32> -> vector<8x1000xf32>
    %112 = arith.addf %106, %111 : vector<8x1000xf32>
    %c0_96 = arith.constant 0 : index
    %c0_97 = arith.constant 0 : index
    %c218 = arith.constant 218 : index
    %113 = vector.load %arg1[%c0_96, %c0_97, %c218] : memref<1x8x1256xbf16, #tpu.memory_space<vmem>>, vector<1x8x1000xbf16>
    %114 = vector.shape_cast %113 : vector<1x8x1000xbf16> to vector<8x1000xbf16>
    %c19_98 = arith.constant 19 : index
    %c0_99 = arith.constant 0 : index
    %c0_100 = arith.constant 0 : index
    %115 = vector.load %arg2[%c19_98, %c0_99, %c0_100] : memref<27x8x8xbf16, #tpu.memory_space<vmem>>, vector<1x8x8xbf16>
    %116 = vector.shape_cast %115 : vector<1x8x8xbf16> to vector<8x8xbf16>
    %cst_101 = arith.constant dense<0.000000e+00> : vector<8x1000xf32>
    %117 = tpu.matmul %116, %114, %cst_101 {dimension_numbers = #tpu.dot_dimension_numbers<[1], [0], [0], [1], [0, 0, 1, 1], [], []>} : vector<8x8xbf16>, vector<8x1000xbf16>, vector<8x1000xf32> -> vector<8x1000xf32>
    %118 = arith.addf %112, %117 : vector<8x1000xf32>
    %c0_102 = arith.constant 0 : index
    %c0_103 = arith.constant 0 : index
    %c219 = arith.constant 219 : index
    %119 = vector.load %arg1[%c0_102, %c0_103, %c219] : memref<1x8x1256xbf16, #tpu.memory_space<vmem>>, vector<1x8x1000xbf16>
    %120 = vector.shape_cast %119 : vector<1x8x1000xbf16> to vector<8x1000xbf16>
    %c20 = arith.constant 20 : index
    %c0_104 = arith.constant 0 : index
    %c0_105 = arith.constant 0 : index
    %121 = vector.load %arg2[%c20, %c0_104, %c0_105] : memref<27x8x8xbf16, #tpu.memory_space<vmem>>, vector<1x8x8xbf16>
    %122 = vector.shape_cast %121 : vector<1x8x8xbf16> to vector<8x8xbf16>
    %cst_106 = arith.constant dense<0.000000e+00> : vector<8x1000xf32>
    %123 = tpu.matmul %122, %120, %cst_106 {dimension_numbers = #tpu.dot_dimension_numbers<[1], [0], [0], [1], [0, 0, 1, 1], [], []>} : vector<8x8xbf16>, vector<8x1000xbf16>, vector<8x1000xf32> -> vector<8x1000xf32>
    %124 = arith.addf %118, %123 : vector<8x1000xf32>
    %c0_107 = arith.constant 0 : index
    %c0_108 = arith.constant 0 : index
    %c227 = arith.constant 227 : index
    %125 = vector.load %arg1[%c0_107, %c0_108, %c227] : memref<1x8x1256xbf16, #tpu.memory_space<vmem>>, vector<1x8x1000xbf16>
    %126 = vector.shape_cast %125 : vector<1x8x1000xbf16> to vector<8x1000xbf16>
    %c21 = arith.constant 21 : index
    %c0_109 = arith.constant 0 : index
    %c0_110 = arith.constant 0 : index
    %127 = vector.load %arg2[%c21, %c0_109, %c0_110] : memref<27x8x8xbf16, #tpu.memory_space<vmem>>, vector<1x8x8xbf16>
    %128 = vector.shape_cast %127 : vector<1x8x8xbf16> to vector<8x8xbf16>
    %cst_111 = arith.constant dense<0.000000e+00> : vector<8x1000xf32>
    %129 = tpu.matmul %128, %126, %cst_111 {dimension_numbers = #tpu.dot_dimension_numbers<[1], [0], [0], [1], [0, 0, 1, 1], [], []>} : vector<8x8xbf16>, vector<8x1000xbf16>, vector<8x1000xf32> -> vector<8x1000xf32>
    %130 = arith.addf %124, %129 : vector<8x1000xf32>
    %c0_112 = arith.constant 0 : index
    %c0_113 = arith.constant 0 : index
    %c228 = arith.constant 228 : index
    %131 = vector.load %arg1[%c0_112, %c0_113, %c228] : memref<1x8x1256xbf16, #tpu.memory_space<vmem>>, vector<1x8x1000xbf16>
    %132 = vector.shape_cast %131 : vector<1x8x1000xbf16> to vector<8x1000xbf16>
    %c22 = arith.constant 22 : index
    %c0_114 = arith.constant 0 : index
    %c0_115 = arith.constant 0 : index
    %133 = vector.load %arg2[%c22, %c0_114, %c0_115] : memref<27x8x8xbf16, #tpu.memory_space<vmem>>, vector<1x8x8xbf16>
    %134 = vector.shape_cast %133 : vector<1x8x8xbf16> to vector<8x8xbf16>
    %cst_116 = arith.constant dense<0.000000e+00> : vector<8x1000xf32>
    %135 = tpu.matmul %134, %132, %cst_116 {dimension_numbers = #tpu.dot_dimension_numbers<[1], [0], [0], [1], [0, 0, 1, 1], [], []>} : vector<8x8xbf16>, vector<8x1000xbf16>, vector<8x1000xf32> -> vector<8x1000xf32>
    %136 = arith.addf %130, %135 : vector<8x1000xf32>
    %c0_117 = arith.constant 0 : index
    %c0_118 = arith.constant 0 : index
    %c229 = arith.constant 229 : index
    %137 = vector.load %arg1[%c0_117, %c0_118, %c229] : memref<1x8x1256xbf16, #tpu.memory_space<vmem>>, vector<1x8x1000xbf16>
    %138 = vector.shape_cast %137 : vector<1x8x1000xbf16> to vector<8x1000xbf16>
    %c23 = arith.constant 23 : index
    %c0_119 = arith.constant 0 : index
    %c0_120 = arith.constant 0 : index
    %139 = vector.load %arg2[%c23, %c0_119, %c0_120] : memref<27x8x8xbf16, #tpu.memory_space<vmem>>, vector<1x8x8xbf16>
    %140 = vector.shape_cast %139 : vector<1x8x8xbf16> to vector<8x8xbf16>
    %cst_121 = arith.constant dense<0.000000e+00> : vector<8x1000xf32>
    %141 = tpu.matmul %140, %138, %cst_121 {dimension_numbers = #tpu.dot_dimension_numbers<[1], [0], [0], [1], [0, 0, 1, 1], [], []>} : vector<8x8xbf16>, vector<8x1000xbf16>, vector<8x1000xf32> -> vector<8x1000xf32>
    %142 = arith.addf %136, %141 : vector<8x1000xf32>
    %c0_122 = arith.constant 0 : index
    %c0_123 = arith.constant 0 : index
    %c237 = arith.constant 237 : index
    %143 = vector.load %arg1[%c0_122, %c0_123, %c237] : memref<1x8x1256xbf16, #tpu.memory_space<vmem>>, vector<1x8x1000xbf16>
    %144 = vector.shape_cast %143 : vector<1x8x1000xbf16> to vector<8x1000xbf16>
    %c24 = arith.constant 24 : index
    %c0_124 = arith.constant 0 : index
    %c0_125 = arith.constant 0 : index
    %145 = vector.load %arg2[%c24, %c0_124, %c0_125] : memref<27x8x8xbf16, #tpu.memory_space<vmem>>, vector<1x8x8xbf16>
    %146 = vector.shape_cast %145 : vector<1x8x8xbf16> to vector<8x8xbf16>
    %cst_126 = arith.constant dense<0.000000e+00> : vector<8x1000xf32>
    %147 = tpu.matmul %146, %144, %cst_126 {dimension_numbers = #tpu.dot_dimension_numbers<[1], [0], [0], [1], [0, 0, 1, 1], [], []>} : vector<8x8xbf16>, vector<8x1000xbf16>, vector<8x1000xf32> -> vector<8x1000xf32>
    %148 = arith.addf %142, %147 : vector<8x1000xf32>
    %c0_127 = arith.constant 0 : index
    %c0_128 = arith.constant 0 : index
    %c238 = arith.constant 238 : index
    %149 = vector.load %arg1[%c0_127, %c0_128, %c238] : memref<1x8x1256xbf16, #tpu.memory_space<vmem>>, vector<1x8x1000xbf16>
    %150 = vector.shape_cast %149 : vector<1x8x1000xbf16> to vector<8x1000xbf16>
    %c25 = arith.constant 25 : index
    %c0_129 = arith.constant 0 : index
    %c0_130 = arith.constant 0 : index
    %151 = vector.load %arg2[%c25, %c0_129, %c0_130] : memref<27x8x8xbf16, #tpu.memory_space<vmem>>, vector<1x8x8xbf16>
    %152 = vector.shape_cast %151 : vector<1x8x8xbf16> to vector<8x8xbf16>
    %cst_131 = arith.constant dense<0.000000e+00> : vector<8x1000xf32>
    %153 = tpu.matmul %152, %150, %cst_131 {dimension_numbers = #tpu.dot_dimension_numbers<[1], [0], [0], [1], [0, 0, 1, 1], [], []>} : vector<8x8xbf16>, vector<8x1000xbf16>, vector<8x1000xf32> -> vector<8x1000xf32>
    %154 = arith.addf %148, %153 : vector<8x1000xf32>
    %c0_132 = arith.constant 0 : index
    %c0_133 = arith.constant 0 : index
    %c239 = arith.constant 239 : index
    %155 = vector.load %arg1[%c0_132, %c0_133, %c239] : memref<1x8x1256xbf16, #tpu.memory_space<vmem>>, vector<1x8x1000xbf16>
    %156 = vector.shape_cast %155 : vector<1x8x1000xbf16> to vector<8x1000xbf16>
    %c26 = arith.constant 26 : index
    %c0_134 = arith.constant 0 : index
    %c0_135 = arith.constant 0 : index
    %157 = vector.load %arg2[%c26, %c0_134, %c0_135] : memref<27x8x8xbf16, #tpu.memory_space<vmem>>, vector<1x8x8xbf16>
    %158 = vector.shape_cast %157 : vector<1x8x8xbf16> to vector<8x8xbf16>
    %cst_136 = arith.constant dense<0.000000e+00> : vector<8x1000xf32>
    %159 = tpu.matmul %158, %156, %cst_136 {dimension_numbers = #tpu.dot_dimension_numbers<[1], [0], [0], [1], [0, 0, 1, 1], [], []>} : vector<8x8xbf16>, vector<8x1000xbf16>, vector<8x1000xf32> -> vector<8x1000xf32>
    %160 = arith.addf %154, %159 : vector<8x1000xf32>
    %c0_137 = arith.constant 0 : index
    %c0_138 = arith.constant 0 : index
    %161 = vector.load %arg3[%c0_137, %c0_138] : memref<8x1xf32, #tpu.memory_space<vmem>>, vector<8x1xf32>
    %162 = vector.broadcast %161 : vector<8x1xf32> to vector<8x1000xf32>
    %163 = arith.mulf %160, %162 : vector<8x1000xf32>
    %c0_139 = arith.constant 0 : index
    %c0_140 = arith.constant 0 : index
    %164 = vector.load %arg4[%c0_139, %c0_140] : memref<8x1xf32, #tpu.memory_space<vmem>>, vector<8x1xf32>
    %165 = vector.broadcast %164 : vector<8x1xf32> to vector<8x1000xf32>
    %166 = arith.addf %163, %165 : vector<8x1000xf32>
    %cst_141 = arith.constant 0.000000e+00 : f32
    %cst_142 = arith.constant 6.000000e+00 : f32
    %167 = vector.broadcast %cst_141 : f32 to vector<8x1000xf32>
    %168 = arith.maximumf %167, %166 : vector<8x1000xf32>
    %169 = vector.broadcast %cst_142 : f32 to vector<8x1000xf32>
    %170 = arith.minimumf %169, %168 : vector<8x1000xf32>
    %c0_143 = arith.constant 0 : index
    %c0_144 = arith.constant 0 : index
    %171 = vector.load %arg8[%c0_143, %c0_144] : memref<1x1000xf32, #tpu.memory_space<vmem>>, vector<1x1000xf32>
    %172 = vector.broadcast %171 : vector<1x1000xf32> to vector<8x1000xf32>
    %173 = arith.mulf %170, %172 : vector<8x1000xf32>
    %cst_145 = arith.constant 0.000000e+00 : bf16
    %174 = vector.broadcast %cst_145 : bf16 to vector<8x128xbf16>
    %c0_146 = arith.constant 0 : index
    %c0_147 = arith.constant 0 : index
    %175 = vector.load %arg10[%c0_146, %c0_147] : memref<8x1256xbf16, #tpu.memory_space<vmem>>, vector<8x128xbf16>
    tpu.vector_store %arg10[%c0_146, %c0_147], %174 {strides = array<i32>} : memref<8x1256xbf16, #tpu.memory_space<vmem>>, vector<8x128xbf16>,
    %cst_148 = arith.constant 0.000000e+00 : bf16
    %176 = vector.broadcast %cst_148 : bf16 to vector<8x128xbf16>
    %c0_149 = arith.constant 0 : index
    %c1128 = arith.constant 1128 : index
    %177 = vector.load %arg10[%c0_149, %c1128] : memref<8x1256xbf16, #tpu.memory_space<vmem>>, vector<8x128xbf16>
    tpu.vector_store %arg10[%c0_149, %c1128], %176 {strides = array<i32>} : memref<8x1256xbf16, #tpu.memory_space<vmem>>, vector<8x128xbf16>,
    %178 = arith.truncf %173 : vector<8x1000xf32> to vector<8x1000xbf16>
    %c0_150 = arith.constant 0 : index
    %c128_151 = arith.constant 128 : index
    %179 = vector.load %arg10[%c0_150, %c128_151] : memref<8x1256xbf16, #tpu.memory_space<vmem>>, vector<8x1000xbf16>
    tpu.vector_store %arg10[%c0_150, %c128_151], %178 {strides = array<i32>} : memref<8x1256xbf16, #tpu.memory_space<vmem>>, vector<8x1000xbf16>,
    %c0_152 = arith.constant 0 : index
    %c17_153 = arith.constant 17 : index
    %180 = vector.load %arg10[%c0_152, %c17_153] : memref<8x1256xbf16, #tpu.memory_space<vmem>>, vector<8x1000xbf16>
    %c0_154 = arith.constant 0 : index
    %c0_155 = arith.constant 0 : index
    %c0_156 = arith.constant 0 : index
    %181 = vector.load %arg5[%c0_154, %c0_155, %c0_156] : memref<27x8x8xbf16, #tpu.memory_space<vmem>>, vector<1x8x8xbf16>
    %182 = vector.shape_cast %181 : vector<1x8x8xbf16> to vector<8x8xbf16>
    %cst_157 = arith.constant dense<0.000000e+00> : vector<8x1000xf32>
    %183 = tpu.matmul %182, %180, %cst_157 {dimension_numbers = #tpu.dot_dimension_numbers<[1], [0], [0], [1], [0, 0, 1, 1], [], []>} : vector<8x8xbf16>, vector<8x1000xbf16>, vector<8x1000xf32> -> vector<8x1000xf32>
    %c0_158 = arith.constant 0 : index
    %c18_159 = arith.constant 18 : index
    %184 = vector.load %arg10[%c0_158, %c18_159] : memref<8x1256xbf16, #tpu.memory_space<vmem>>, vector<8x1000xbf16>
    %c1_160 = arith.constant 1 : index
    %c0_161 = arith.constant 0 : index
    %c0_162 = arith.constant 0 : index
    %185 = vector.load %arg5[%c1_160, %c0_161, %c0_162] : memref<27x8x8xbf16, #tpu.memory_space<vmem>>, vector<1x8x8xbf16>
    %186 = vector.shape_cast %185 : vector<1x8x8xbf16> to vector<8x8xbf16>
    %cst_163 = arith.constant dense<0.000000e+00> : vector<8x1000xf32>
    %187 = tpu.matmul %186, %184, %cst_163 {dimension_numbers = #tpu.dot_dimension_numbers<[1], [0], [0], [1], [0, 0, 1, 1], [], []>} : vector<8x8xbf16>, vector<8x1000xbf16>, vector<8x1000xf32> -> vector<8x1000xf32>
    %188 = arith.addf %183, %187 : vector<8x1000xf32>
    %c0_164 = arith.constant 0 : index
    %c19_165 = arith.constant 19 : index
    %189 = vector.load %arg10[%c0_164, %c19_165] : memref<8x1256xbf16, #tpu.memory_space<vmem>>, vector<8x1000xbf16>
    %c2_166 = arith.constant 2 : index
    %c0_167 = arith.constant 0 : index
    %c0_168 = arith.constant 0 : index
    %190 = vector.load %arg5[%c2_166, %c0_167, %c0_168] : memref<27x8x8xbf16, #tpu.memory_space<vmem>>, vector<1x8x8xbf16>
    %191 = vector.shape_cast %190 : vector<1x8x8xbf16> to vector<8x8xbf16>
    %cst_169 = arith.constant dense<0.000000e+00> : vector<8x1000xf32>
    %192 = tpu.matmul %191, %189, %cst_169 {dimension_numbers = #tpu.dot_dimension_numbers<[1], [0], [0], [1], [0, 0, 1, 1], [], []>} : vector<8x8xbf16>, vector<8x1000xbf16>, vector<8x1000xf32> -> vector<8x1000xf32>
    %193 = arith.addf %188, %192 : vector<8x1000xf32>
    %c0_170 = arith.constant 0 : index
    %c27_171 = arith.constant 27 : index
    %194 = vector.load %arg10[%c0_170, %c27_171] : memref<8x1256xbf16, #tpu.memory_space<vmem>>, vector<8x1000xbf16>
    %c3_172 = arith.constant 3 : index
    %c0_173 = arith.constant 0 : index
    %c0_174 = arith.constant 0 : index
    %195 = vector.load %arg5[%c3_172, %c0_173, %c0_174] : memref<27x8x8xbf16, #tpu.memory_space<vmem>>, vector<1x8x8xbf16>
    %196 = vector.shape_cast %195 : vector<1x8x8xbf16> to vector<8x8xbf16>
    %cst_175 = arith.constant dense<0.000000e+00> : vector<8x1000xf32>
    %197 = tpu.matmul %196, %194, %cst_175 {dimension_numbers = #tpu.dot_dimension_numbers<[1], [0], [0], [1], [0, 0, 1, 1], [], []>} : vector<8x8xbf16>, vector<8x1000xbf16>, vector<8x1000xf32> -> vector<8x1000xf32>
    %198 = arith.addf %193, %197 : vector<8x1000xf32>
    %c0_176 = arith.constant 0 : index
    %c28_177 = arith.constant 28 : index
    %199 = vector.load %arg10[%c0_176, %c28_177] : memref<8x1256xbf16, #tpu.memory_space<vmem>>, vector<8x1000xbf16>
    %c4_178 = arith.constant 4 : index
    %c0_179 = arith.constant 0 : index
    %c0_180 = arith.constant 0 : index
    %200 = vector.load %arg5[%c4_178, %c0_179, %c0_180] : memref<27x8x8xbf16, #tpu.memory_space<vmem>>, vector<1x8x8xbf16>
    %201 = vector.shape_cast %200 : vector<1x8x8xbf16> to vector<8x8xbf16>
    %cst_181 = arith.constant dense<0.000000e+00> : vector<8x1000xf32>
    %202 = tpu.matmul %201, %199, %cst_181 {dimension_numbers = #tpu.dot_dimension_numbers<[1], [0], [0], [1], [0, 0, 1, 1], [], []>} : vector<8x8xbf16>, vector<8x1000xbf16>, vector<8x1000xf32> -> vector<8x1000xf32>
    %203 = arith.addf %198, %202 : vector<8x1000xf32>
    %c0_182 = arith.constant 0 : index
    %c29_183 = arith.constant 29 : index
    %204 = vector.load %arg10[%c0_182, %c29_183] : memref<8x1256xbf16, #tpu.memory_space<vmem>>, vector<8x1000xbf16>
    %c5_184 = arith.constant 5 : index
    %c0_185 = arith.constant 0 : index
    %c0_186 = arith.constant 0 : index
    %205 = vector.load %arg5[%c5_184, %c0_185, %c0_186] : memref<27x8x8xbf16, #tpu.memory_space<vmem>>, vector<1x8x8xbf16>
    %206 = vector.shape_cast %205 : vector<1x8x8xbf16> to vector<8x8xbf16>
    %cst_187 = arith.constant dense<0.000000e+00> : vector<8x1000xf32>
    %207 = tpu.matmul %206, %204, %cst_187 {dimension_numbers = #tpu.dot_dimension_numbers<[1], [0], [0], [1], [0, 0, 1, 1], [], []>} : vector<8x8xbf16>, vector<8x1000xbf16>, vector<8x1000xf32> -> vector<8x1000xf32>
    %208 = arith.addf %203, %207 : vector<8x1000xf32>
    %c0_188 = arith.constant 0 : index
    %c37_189 = arith.constant 37 : index
    %209 = vector.load %arg10[%c0_188, %c37_189] : memref<8x1256xbf16, #tpu.memory_space<vmem>>, vector<8x1000xbf16>
    %c6_190 = arith.constant 6 : index
    %c0_191 = arith.constant 0 : index
    %c0_192 = arith.constant 0 : index
    %210 = vector.load %arg5[%c6_190, %c0_191, %c0_192] : memref<27x8x8xbf16, #tpu.memory_space<vmem>>, vector<1x8x8xbf16>
    %211 = vector.shape_cast %210 : vector<1x8x8xbf16> to vector<8x8xbf16>
    %cst_193 = arith.constant dense<0.000000e+00> : vector<8x1000xf32>
    %212 = tpu.matmul %211, %209, %cst_193 {dimension_numbers = #tpu.dot_dimension_numbers<[1], [0], [0], [1], [0, 0, 1, 1], [], []>} : vector<8x8xbf16>, vector<8x1000xbf16>, vector<8x1000xf32> -> vector<8x1000xf32>
    %213 = arith.addf %208, %212 : vector<8x1000xf32>
    %c0_194 = arith.constant 0 : index
    %c38_195 = arith.constant 38 : index
    %214 = vector.load %arg10[%c0_194, %c38_195] : memref<8x1256xbf16, #tpu.memory_space<vmem>>, vector<8x1000xbf16>
    %c7_196 = arith.constant 7 : index
    %c0_197 = arith.constant 0 : index
    %c0_198 = arith.constant 0 : index
    %215 = vector.load %arg5[%c7_196, %c0_197, %c0_198] : memref<27x8x8xbf16, #tpu.memory_space<vmem>>, vector<1x8x8xbf16>
    %216 = vector.shape_cast %215 : vector<1x8x8xbf16> to vector<8x8xbf16>
    %cst_199 = arith.constant dense<0.000000e+00> : vector<8x1000xf32>
    %217 = tpu.matmul %216, %214, %cst_199 {dimension_numbers = #tpu.dot_dimension_numbers<[1], [0], [0], [1], [0, 0, 1, 1], [], []>} : vector<8x8xbf16>, vector<8x1000xbf16>, vector<8x1000xf32> -> vector<8x1000xf32>
    %218 = arith.addf %213, %217 : vector<8x1000xf32>
    %c0_200 = arith.constant 0 : index
    %c39_201 = arith.constant 39 : index
    %219 = vector.load %arg10[%c0_200, %c39_201] : memref<8x1256xbf16, #tpu.memory_space<vmem>>, vector<8x1000xbf16>
    %c8_202 = arith.constant 8 : index
    %c0_203 = arith.constant 0 : index
    %c0_204 = arith.constant 0 : index
    %220 = vector.load %arg5[%c8_202, %c0_203, %c0_204] : memref<27x8x8xbf16, #tpu.memory_space<vmem>>, vector<1x8x8xbf16>
    %221 = vector.shape_cast %220 : vector<1x8x8xbf16> to vector<8x8xbf16>
    %cst_205 = arith.constant dense<0.000000e+00> : vector<8x1000xf32>
    %222 = tpu.matmul %221, %219, %cst_205 {dimension_numbers = #tpu.dot_dimension_numbers<[1], [0], [0], [1], [0, 0, 1, 1], [], []>} : vector<8x8xbf16>, vector<8x1000xbf16>, vector<8x1000xf32> -> vector<8x1000xf32>
    %223 = arith.addf %218, %222 : vector<8x1000xf32>
    %c0_206 = arith.constant 0 : index
    %c117_207 = arith.constant 117 : index
    %224 = vector.load %arg10[%c0_206, %c117_207] : memref<8x1256xbf16, #tpu.memory_space<vmem>>, vector<8x1000xbf16>
    %c9_208 = arith.constant 9 : index
    %c0_209 = arith.constant 0 : index
    %c0_210 = arith.constant 0 : index
    %225 = vector.load %arg5[%c9_208, %c0_209, %c0_210] : memref<27x8x8xbf16, #tpu.memory_space<vmem>>, vector<1x8x8xbf16>
    %226 = vector.shape_cast %225 : vector<1x8x8xbf16> to vector<8x8xbf16>
    %cst_211 = arith.constant dense<0.000000e+00> : vector<8x1000xf32>
    %227 = tpu.matmul %226, %224, %cst_211 {dimension_numbers = #tpu.dot_dimension_numbers<[1], [0], [0], [1], [0, 0, 1, 1], [], []>} : vector<8x8xbf16>, vector<8x1000xbf16>, vector<8x1000xf32> -> vector<8x1000xf32>
    %228 = arith.addf %223, %227 : vector<8x1000xf32>
    %c0_212 = arith.constant 0 : index
    %c118_213 = arith.constant 118 : index
    %229 = vector.load %arg10[%c0_212, %c118_213] : memref<8x1256xbf16, #tpu.memory_space<vmem>>, vector<8x1000xbf16>
    %c10_214 = arith.constant 10 : index
    %c0_215 = arith.constant 0 : index
    %c0_216 = arith.constant 0 : index
    %230 = vector.load %arg5[%c10_214, %c0_215, %c0_216] : memref<27x8x8xbf16, #tpu.memory_space<vmem>>, vector<1x8x8xbf16>
    %231 = vector.shape_cast %230 : vector<1x8x8xbf16> to vector<8x8xbf16>
    %cst_217 = arith.constant dense<0.000000e+00> : vector<8x1000xf32>
    %232 = tpu.matmul %231, %229, %cst_217 {dimension_numbers = #tpu.dot_dimension_numbers<[1], [0], [0], [1], [0, 0, 1, 1], [], []>} : vector<8x8xbf16>, vector<8x1000xbf16>, vector<8x1000xf32> -> vector<8x1000xf32>
    %233 = arith.addf %228, %232 : vector<8x1000xf32>
    %c0_218 = arith.constant 0 : index
    %c119_219 = arith.constant 119 : index
    %234 = vector.load %arg10[%c0_218, %c119_219] : memref<8x1256xbf16, #tpu.memory_space<vmem>>, vector<8x1000xbf16>
    %c11_220 = arith.constant 11 : index
    %c0_221 = arith.constant 0 : index
    %c0_222 = arith.constant 0 : index
    %235 = vector.load %arg5[%c11_220, %c0_221, %c0_222] : memref<27x8x8xbf16, #tpu.memory_space<vmem>>, vector<1x8x8xbf16>
    %236 = vector.shape_cast %235 : vector<1x8x8xbf16> to vector<8x8xbf16>
    %cst_223 = arith.constant dense<0.000000e+00> : vector<8x1000xf32>
    %237 = tpu.matmul %236, %234, %cst_223 {dimension_numbers = #tpu.dot_dimension_numbers<[1], [0], [0], [1], [0, 0, 1, 1], [], []>} : vector<8x8xbf16>, vector<8x1000xbf16>, vector<8x1000xf32> -> vector<8x1000xf32>
    %238 = arith.addf %233, %237 : vector<8x1000xf32>
    %c0_224 = arith.constant 0 : index
    %c127_225 = arith.constant 127 : index
    %239 = vector.load %arg10[%c0_224, %c127_225] : memref<8x1256xbf16, #tpu.memory_space<vmem>>, vector<8x1000xbf16>
    %c12_226 = arith.constant 12 : index
    %c0_227 = arith.constant 0 : index
    %c0_228 = arith.constant 0 : index
    %240 = vector.load %arg5[%c12_226, %c0_227, %c0_228] : memref<27x8x8xbf16, #tpu.memory_space<vmem>>, vector<1x8x8xbf16>
    %241 = vector.shape_cast %240 : vector<1x8x8xbf16> to vector<8x8xbf16>
    %cst_229 = arith.constant dense<0.000000e+00> : vector<8x1000xf32>
    %242 = tpu.matmul %241, %239, %cst_229 {dimension_numbers = #tpu.dot_dimension_numbers<[1], [0], [0], [1], [0, 0, 1, 1], [], []>} : vector<8x8xbf16>, vector<8x1000xbf16>, vector<8x1000xf32> -> vector<8x1000xf32>
    %243 = arith.addf %238, %242 : vector<8x1000xf32>
    %c0_230 = arith.constant 0 : index
    %c128_231 = arith.constant 128 : index
    %244 = vector.load %arg10[%c0_230, %c128_231] : memref<8x1256xbf16, #tpu.memory_space<vmem>>, vector<8x1000xbf16>
    %c13_232 = arith.constant 13 : index
    %c0_233 = arith.constant 0 : index
    %c0_234 = arith.constant 0 : index
    %245 = vector.load %arg5[%c13_232, %c0_233, %c0_234] : memref<27x8x8xbf16, #tpu.memory_space<vmem>>, vector<1x8x8xbf16>
    %246 = vector.shape_cast %245 : vector<1x8x8xbf16> to vector<8x8xbf16>
    %cst_235 = arith.constant dense<0.000000e+00> : vector<8x1000xf32>
    %247 = tpu.matmul %246, %244, %cst_235 {dimension_numbers = #tpu.dot_dimension_numbers<[1], [0], [0], [1], [0, 0, 1, 1], [], []>} : vector<8x8xbf16>, vector<8x1000xbf16>, vector<8x1000xf32> -> vector<8x1000xf32>
    %248 = arith.addf %243, %247 : vector<8x1000xf32>
    %c0_236 = arith.constant 0 : index
    %c129_237 = arith.constant 129 : index
    %249 = vector.load %arg10[%c0_236, %c129_237] : memref<8x1256xbf16, #tpu.memory_space<vmem>>, vector<8x1000xbf16>
    %c14_238 = arith.constant 14 : index
    %c0_239 = arith.constant 0 : index
    %c0_240 = arith.constant 0 : index
    %250 = vector.load %arg5[%c14_238, %c0_239, %c0_240] : memref<27x8x8xbf16, #tpu.memory_space<vmem>>, vector<1x8x8xbf16>
    %251 = vector.shape_cast %250 : vector<1x8x8xbf16> to vector<8x8xbf16>
    %cst_241 = arith.constant dense<0.000000e+00> : vector<8x1000xf32>
    %252 = tpu.matmul %251, %249, %cst_241 {dimension_numbers = #tpu.dot_dimension_numbers<[1], [0], [0], [1], [0, 0, 1, 1], [], []>} : vector<8x8xbf16>, vector<8x1000xbf16>, vector<8x1000xf32> -> vector<8x1000xf32>
    %253 = arith.addf %248, %252 : vector<8x1000xf32>
    %c0_242 = arith.constant 0 : index
    %c137_243 = arith.constant 137 : index
    %254 = vector.load %arg10[%c0_242, %c137_243] : memref<8x1256xbf16, #tpu.memory_space<vmem>>, vector<8x1000xbf16>
    %c15_244 = arith.constant 15 : index
    %c0_245 = arith.constant 0 : index
    %c0_246 = arith.constant 0 : index
    %255 = vector.load %arg5[%c15_244, %c0_245, %c0_246] : memref<27x8x8xbf16, #tpu.memory_space<vmem>>, vector<1x8x8xbf16>
    %256 = vector.shape_cast %255 : vector<1x8x8xbf16> to vector<8x8xbf16>
    %cst_247 = arith.constant dense<0.000000e+00> : vector<8x1000xf32>
    %257 = tpu.matmul %256, %254, %cst_247 {dimension_numbers = #tpu.dot_dimension_numbers<[1], [0], [0], [1], [0, 0, 1, 1], [], []>} : vector<8x8xbf16>, vector<8x1000xbf16>, vector<8x1000xf32> -> vector<8x1000xf32>
    %258 = arith.addf %253, %257 : vector<8x1000xf32>
    %c0_248 = arith.constant 0 : index
    %c138_249 = arith.constant 138 : index
    %259 = vector.load %arg10[%c0_248, %c138_249] : memref<8x1256xbf16, #tpu.memory_space<vmem>>, vector<8x1000xbf16>
    %c16_250 = arith.constant 16 : index
    %c0_251 = arith.constant 0 : index
    %c0_252 = arith.constant 0 : index
    %260 = vector.load %arg5[%c16_250, %c0_251, %c0_252] : memref<27x8x8xbf16, #tpu.memory_space<vmem>>, vector<1x8x8xbf16>
    %261 = vector.shape_cast %260 : vector<1x8x8xbf16> to vector<8x8xbf16>
    %cst_253 = arith.constant dense<0.000000e+00> : vector<8x1000xf32>
    %262 = tpu.matmul %261, %259, %cst_253 {dimension_numbers = #tpu.dot_dimension_numbers<[1], [0], [0], [1], [0, 0, 1, 1], [], []>} : vector<8x8xbf16>, vector<8x1000xbf16>, vector<8x1000xf32> -> vector<8x1000xf32>
    %263 = arith.addf %258, %262 : vector<8x1000xf32>
    %c0_254 = arith.constant 0 : index
    %c139_255 = arith.constant 139 : index
    %264 = vector.load %arg10[%c0_254, %c139_255] : memref<8x1256xbf16, #tpu.memory_space<vmem>>, vector<8x1000xbf16>
    %c17_256 = arith.constant 17 : index
    %c0_257 = arith.constant 0 : index
    %c0_258 = arith.constant 0 : index
    %265 = vector.load %arg5[%c17_256, %c0_257, %c0_258] : memref<27x8x8xbf16, #tpu.memory_space<vmem>>, vector<1x8x8xbf16>
    %266 = vector.shape_cast %265 : vector<1x8x8xbf16> to vector<8x8xbf16>
    %cst_259 = arith.constant dense<0.000000e+00> : vector<8x1000xf32>
    %267 = tpu.matmul %266, %264, %cst_259 {dimension_numbers = #tpu.dot_dimension_numbers<[1], [0], [0], [1], [0, 0, 1, 1], [], []>} : vector<8x8xbf16>, vector<8x1000xbf16>, vector<8x1000xf32> -> vector<8x1000xf32>
    %268 = arith.addf %263, %267 : vector<8x1000xf32>
    %c0_260 = arith.constant 0 : index
    %c217_261 = arith.constant 217 : index
    %269 = vector.load %arg10[%c0_260, %c217_261] : memref<8x1256xbf16, #tpu.memory_space<vmem>>, vector<8x1000xbf16>
    %c18_262 = arith.constant 18 : index
    %c0_263 = arith.constant 0 : index
    %c0_264 = arith.constant 0 : index
    %270 = vector.load %arg5[%c18_262, %c0_263, %c0_264] : memref<27x8x8xbf16, #tpu.memory_space<vmem>>, vector<1x8x8xbf16>
    %271 = vector.shape_cast %270 : vector<1x8x8xbf16> to vector<8x8xbf16>
    %cst_265 = arith.constant dense<0.000000e+00> : vector<8x1000xf32>
    %272 = tpu.matmul %271, %269, %cst_265 {dimension_numbers = #tpu.dot_dimension_numbers<[1], [0], [0], [1], [0, 0, 1, 1], [], []>} : vector<8x8xbf16>, vector<8x1000xbf16>, vector<8x1000xf32> -> vector<8x1000xf32>
    %273 = arith.addf %268, %272 : vector<8x1000xf32>
    %c0_266 = arith.constant 0 : index
    %c218_267 = arith.constant 218 : index
    %274 = vector.load %arg10[%c0_266, %c218_267] : memref<8x1256xbf16, #tpu.memory_space<vmem>>, vector<8x1000xbf16>
    %c19_268 = arith.constant 19 : index
    %c0_269 = arith.constant 0 : index
    %c0_270 = arith.constant 0 : index
    %275 = vector.load %arg5[%c19_268, %c0_269, %c0_270] : memref<27x8x8xbf16, #tpu.memory_space<vmem>>, vector<1x8x8xbf16>
    %276 = vector.shape_cast %275 : vector<1x8x8xbf16> to vector<8x8xbf16>
    %cst_271 = arith.constant dense<0.000000e+00> : vector<8x1000xf32>
    %277 = tpu.matmul %276, %274, %cst_271 {dimension_numbers = #tpu.dot_dimension_numbers<[1], [0], [0], [1], [0, 0, 1, 1], [], []>} : vector<8x8xbf16>, vector<8x1000xbf16>, vector<8x1000xf32> -> vector<8x1000xf32>
    %278 = arith.addf %273, %277 : vector<8x1000xf32>
    %c0_272 = arith.constant 0 : index
    %c219_273 = arith.constant 219 : index
    %279 = vector.load %arg10[%c0_272, %c219_273] : memref<8x1256xbf16, #tpu.memory_space<vmem>>, vector<8x1000xbf16>
    %c20_274 = arith.constant 20 : index
    %c0_275 = arith.constant 0 : index
    %c0_276 = arith.constant 0 : index
    %280 = vector.load %arg5[%c20_274, %c0_275, %c0_276] : memref<27x8x8xbf16, #tpu.memory_space<vmem>>, vector<1x8x8xbf16>
    %281 = vector.shape_cast %280 : vector<1x8x8xbf16> to vector<8x8xbf16>
    %cst_277 = arith.constant dense<0.000000e+00> : vector<8x1000xf32>
    %282 = tpu.matmul %281, %279, %cst_277 {dimension_numbers = #tpu.dot_dimension_numbers<[1], [0], [0], [1], [0, 0, 1, 1], [], []>} : vector<8x8xbf16>, vector<8x1000xbf16>, vector<8x1000xf32> -> vector<8x1000xf32>
    %283 = arith.addf %278, %282 : vector<8x1000xf32>
    %c0_278 = arith.constant 0 : index
    %c227_279 = arith.constant 227 : index
    %284 = vector.load %arg10[%c0_278, %c227_279] : memref<8x1256xbf16, #tpu.memory_space<vmem>>, vector<8x1000xbf16>
    %c21_280 = arith.constant 21 : index
    %c0_281 = arith.constant 0 : index
    %c0_282 = arith.constant 0 : index
    %285 = vector.load %arg5[%c21_280, %c0_281, %c0_282] : memref<27x8x8xbf16, #tpu.memory_space<vmem>>, vector<1x8x8xbf16>
    %286 = vector.shape_cast %285 : vector<1x8x8xbf16> to vector<8x8xbf16>
    %cst_283 = arith.constant dense<0.000000e+00> : vector<8x1000xf32>
    %287 = tpu.matmul %286, %284, %cst_283 {dimension_numbers = #tpu.dot_dimension_numbers<[1], [0], [0], [1], [0, 0, 1, 1], [], []>} : vector<8x8xbf16>, vector<8x1000xbf16>, vector<8x1000xf32> -> vector<8x1000xf32>
    %288 = arith.addf %283, %287 : vector<8x1000xf32>
    %c0_284 = arith.constant 0 : index
    %c228_285 = arith.constant 228 : index
    %289 = vector.load %arg10[%c0_284, %c228_285] : memref<8x1256xbf16, #tpu.memory_space<vmem>>, vector<8x1000xbf16>
    %c22_286 = arith.constant 22 : index
    %c0_287 = arith.constant 0 : index
    %c0_288 = arith.constant 0 : index
    %290 = vector.load %arg5[%c22_286, %c0_287, %c0_288] : memref<27x8x8xbf16, #tpu.memory_space<vmem>>, vector<1x8x8xbf16>
    %291 = vector.shape_cast %290 : vector<1x8x8xbf16> to vector<8x8xbf16>
    %cst_289 = arith.constant dense<0.000000e+00> : vector<8x1000xf32>
    %292 = tpu.matmul %291, %289, %cst_289 {dimension_numbers = #tpu.dot_dimension_numbers<[1], [0], [0], [1], [0, 0, 1, 1], [], []>} : vector<8x8xbf16>, vector<8x1000xbf16>, vector<8x1000xf32> -> vector<8x1000xf32>
    %293 = arith.addf %288, %292 : vector<8x1000xf32>
    %c0_290 = arith.constant 0 : index
    %c229_291 = arith.constant 229 : index
    %294 = vector.load %arg10[%c0_290, %c229_291] : memref<8x1256xbf16, #tpu.memory_space<vmem>>, vector<8x1000xbf16>
    %c23_292 = arith.constant 23 : index
    %c0_293 = arith.constant 0 : index
    %c0_294 = arith.constant 0 : index
    %295 = vector.load %arg5[%c23_292, %c0_293, %c0_294] : memref<27x8x8xbf16, #tpu.memory_space<vmem>>, vector<1x8x8xbf16>
    %296 = vector.shape_cast %295 : vector<1x8x8xbf16> to vector<8x8xbf16>
    %cst_295 = arith.constant dense<0.000000e+00> : vector<8x1000xf32>
    %297 = tpu.matmul %296, %294, %cst_295 {dimension_numbers = #tpu.dot_dimension_numbers<[1], [0], [0], [1], [0, 0, 1, 1], [], []>} : vector<8x8xbf16>, vector<8x1000xbf16>, vector<8x1000xf32> -> vector<8x1000xf32>
    %298 = arith.addf %293, %297 : vector<8x1000xf32>
    %c0_296 = arith.constant 0 : index
    %c237_297 = arith.constant 237 : index
    %299 = vector.load %arg10[%c0_296, %c237_297] : memref<8x1256xbf16, #tpu.memory_space<vmem>>, vector<8x1000xbf16>
    %c24_298 = arith.constant 24 : index
    %c0_299 = arith.constant 0 : index
    %c0_300 = arith.constant 0 : index
    %300 = vector.load %arg5[%c24_298, %c0_299, %c0_300] : memref<27x8x8xbf16, #tpu.memory_space<vmem>>, vector<1x8x8xbf16>
    %301 = vector.shape_cast %300 : vector<1x8x8xbf16> to vector<8x8xbf16>
    %cst_301 = arith.constant dense<0.000000e+00> : vector<8x1000xf32>
    %302 = tpu.matmul %301, %299, %cst_301 {dimension_numbers = #tpu.dot_dimension_numbers<[1], [0], [0], [1], [0, 0, 1, 1], [], []>} : vector<8x8xbf16>, vector<8x1000xbf16>, vector<8x1000xf32> -> vector<8x1000xf32>
    %303 = arith.addf %298, %302 : vector<8x1000xf32>
    %c0_302 = arith.constant 0 : index
    %c238_303 = arith.constant 238 : index
    %304 = vector.load %arg10[%c0_302, %c238_303] : memref<8x1256xbf16, #tpu.memory_space<vmem>>, vector<8x1000xbf16>
    %c25_304 = arith.constant 25 : index
    %c0_305 = arith.constant 0 : index
    %c0_306 = arith.constant 0 : index
    %305 = vector.load %arg5[%c25_304, %c0_305, %c0_306] : memref<27x8x8xbf16, #tpu.memory_space<vmem>>, vector<1x8x8xbf16>
    %306 = vector.shape_cast %305 : vector<1x8x8xbf16> to vector<8x8xbf16>
    %cst_307 = arith.constant dense<0.000000e+00> : vector<8x1000xf32>
    %307 = tpu.matmul %306, %304, %cst_307 {dimension_numbers = #tpu.dot_dimension_numbers<[1], [0], [0], [1], [0, 0, 1, 1], [], []>} : vector<8x8xbf16>, vector<8x1000xbf16>, vector<8x1000xf32> -> vector<8x1000xf32>
    %308 = arith.addf %303, %307 : vector<8x1000xf32>
    %c0_308 = arith.constant 0 : index
    %c239_309 = arith.constant 239 : index
    %309 = vector.load %arg10[%c0_308, %c239_309] : memref<8x1256xbf16, #tpu.memory_space<vmem>>, vector<8x1000xbf16>
    %c26_310 = arith.constant 26 : index
    %c0_311 = arith.constant 0 : index
    %c0_312 = arith.constant 0 : index
    %310 = vector.load %arg5[%c26_310, %c0_311, %c0_312] : memref<27x8x8xbf16, #tpu.memory_space<vmem>>, vector<1x8x8xbf16>
    %311 = vector.shape_cast %310 : vector<1x8x8xbf16> to vector<8x8xbf16>
    %cst_313 = arith.constant dense<0.000000e+00> : vector<8x1000xf32>
    %312 = tpu.matmul %311, %309, %cst_313 {dimension_numbers = #tpu.dot_dimension_numbers<[1], [0], [0], [1], [0, 0, 1, 1], [], []>} : vector<8x8xbf16>, vector<8x1000xbf16>, vector<8x1000xf32> -> vector<8x1000xf32>
    %313 = arith.addf %308, %312 : vector<8x1000xf32>
    %c0_314 = arith.constant 0 : index
    %c0_315 = arith.constant 0 : index
    %314 = vector.load %arg6[%c0_314, %c0_315] : memref<8x1xf32, #tpu.memory_space<vmem>>, vector<8x1xf32>
    %315 = vector.broadcast %314 : vector<8x1xf32> to vector<8x1000xf32>
    %316 = arith.mulf %313, %315 : vector<8x1000xf32>
    %c0_316 = arith.constant 0 : index
    %c0_317 = arith.constant 0 : index
    %317 = vector.load %arg7[%c0_316, %c0_317] : memref<8x1xf32, #tpu.memory_space<vmem>>, vector<8x1xf32>
    %318 = vector.broadcast %317 : vector<8x1xf32> to vector<8x1000xf32>
    %319 = arith.addf %316, %318 : vector<8x1000xf32>
    %cst_318 = arith.constant 0.000000e+00 : f32
    %cst_319 = arith.constant 6.000000e+00 : f32
    %320 = vector.broadcast %cst_318 : f32 to vector<8x1000xf32>
    %321 = arith.maximumf %320, %319 : vector<8x1000xf32>
    %322 = vector.broadcast %cst_319 : f32 to vector<8x1000xf32>
    %323 = arith.minimumf %322, %321 : vector<8x1000xf32>
    %c0_320 = arith.constant 0 : index
    %c0_321 = arith.constant 0 : index
    %c0_322 = arith.constant 0 : index
    %324 = vector.load %arg9[%c0_320, %c0_321, %c0_322] : memref<1x8x1000xf32, #tpu.memory_space<vmem>>, vector<1x8x1000xf32>
    %325 = vector.shape_cast %324 : vector<1x8x1000xf32> to vector<8x1000xf32>
    %326 = vector.shape_cast %323 : vector<8x1000xf32> to vector<1x8x1000xf32>
    tpu.vector_store %arg9[%c0_320, %c0_321, %c0_322], %326 {strides = array<i32>} : memref<1x8x1000xf32, #tpu.memory_space<vmem>>, vector<1x8x1000xf32>,
    return
  }
  func.func @transform_0(%arg0: i32) -> (i32, i32, i32) {
    %c0_i32 = arith.constant 0 : i32
    %c0_i32_0 = arith.constant 0 : i32
    %c0_i32_1 = arith.constant 0 : i32
    return %arg0, %c0_i32, %c0_i32_0 : i32, i32, i32
  }
  func.func @transform_1(%arg0: i32) -> (i32, i32, i32) {
    %c0_i32 = arith.constant 0 : i32
    %c0_i32_0 = arith.constant 0 : i32
    %c0_i32_1 = arith.constant 0 : i32
    %c0_i32_2 = arith.constant 0 : i32
    return %c0_i32, %c0_i32_0, %c0_i32_1 : i32, i32, i32
  }
  func.func @transform_2(%arg0: i32) -> (i32, i32) {
    %c0_i32 = arith.constant 0 : i32
    %c0_i32_0 = arith.constant 0 : i32
    %c0_i32_1 = arith.constant 0 : i32
    return %c0_i32, %c0_i32_0 : i32, i32
  }
  func.func @transform_3(%arg0: i32) -> (i32, i32) {
    %c0_i32 = arith.constant 0 : i32
    %c0_i32_0 = arith.constant 0 : i32
    %c0_i32_1 = arith.constant 0 : i32
    return %c0_i32, %c0_i32_0 : i32, i32
  }
  func.func @transform_4(%arg0: i32) -> (i32, i32, i32) {
    %c0_i32 = arith.constant 0 : i32
    %c0_i32_0 = arith.constant 0 : i32
    %c0_i32_1 = arith.constant 0 : i32
    %c0_i32_2 = arith.constant 0 : i32
    return %c0_i32, %c0_i32_0, %c0_i32_1 : i32, i32, i32
  }
  func.func @transform_5(%arg0: i32) -> (i32, i32) {
    %c0_i32 = arith.constant 0 : i32
    %c0_i32_0 = arith.constant 0 : i32
    %c0_i32_1 = arith.constant 0 : i32
    return %c0_i32, %c0_i32_0 : i32, i32
  }
  func.func @transform_6(%arg0: i32) -> (i32, i32) {
    %c0_i32 = arith.constant 0 : i32
    %c0_i32_0 = arith.constant 0 : i32
    %c0_i32_1 = arith.constant 0 : i32
    return %c0_i32, %c0_i32_0 : i32, i32
  }
  func.func @transform_7(%arg0: i32) -> (i32, i32) {
    %c0_i32 = arith.constant 0 : i32
    %c0_i32_0 = arith.constant 0 : i32
    %c0_i32_1 = arith.constant 0 : i32
    return %c0_i32, %c0_i32_0 : i32, i32
  }
  func.func @transform_8(%arg0: i32) -> (i32, i32, i32) {
    %c0_i32 = arith.constant 0 : i32
    %c0_i32_0 = arith.constant 0 : i32
    %c0_i32_1 = arith.constant 0 : i32
    return %arg0, %c0_i32, %c0_i32_0 : i32, i32, i32
  }
}

</mosaic_0001>

<bundles_post_ra>
// kernel: tpu_custom_call.1
= control target key start
LH: loop header
LB: loop body
LE: loop exit
PB: predicated region body
PF: predicated region fallthrough
CT: control target
= control target key end

     0   :  { %13 = vsyncpa [#allocation4], 0  ;;  %s17401_s0 = inlined_call_operand.vmem [shape: bf16[2,8,1256], index: 0, kind: input, shape index: {}]   ;;  %s17402_s1 = inlined_call_operand.vmem [shape: bf16[27,8,8], index: 1, kind: input, shape index: {}]   ;;  %s17403_s2 = inlined_call_operand.vmem [shape: f32[8,1], index: 2, kind: input, shape index: {}]   ;;  %s17404_s3 = inlined_call_operand.vmem [shape: f32[8,1], index: 3, kind: input, shape index: {}]   ;;  %s17405_s4 = inlined_call_operand.vmem [shape: bf16[27,8,8], index: 4, kind: input, shape index: {}]   ;;  %s17406_s5 = inlined_call_operand.vmem [shape: f32[8,1], index: 5, kind: input, shape index: {}]   ;;  %s17407_s6 = inlined_call_operand.vmem [shape: f32[8,1], index: 6, kind: input, shape index: {}]   ;;  %s17408_s7 = inlined_call_operand.vmem [shape: f32[1,1000], index: 7, kind: input, shape index: {}]   ;;  %s17409_s8 = inlined_call_operand.hbm [shape: f32[2,8,1000], index: 8, kind: output, shape index: {}]  }
   0x1   :  { %15 = vsyncpa [#allocation4 + $0x1], 0  ;;  %s14580_s27 = smov 0   ;;  %s14582_s28 = smov 0  }
   0x2   :  { %s14584_s29 = smov 0   ;;  %s14586_s30 = smov 0  }
   0x3 LB: > { %s14601_s9 = sadd.s32 4294967295, %s14505_s30   ;;  %s12934_s10 = sadd.s32 4294967294, %s14505_s30   ;;  %s14505_s30 = sphi %s14586_s30, %s17597_s30   ;;  %s14501_s29 = sphi %s14584_s29, %s17596_s29   ;;  %s14497_s28 = sphi %s14582_s28, %s17595_s28   ;;  %s14493_s27 = sphi %s14580_s27, %s17594_s27  }
   0x4   : > { %s14605_s11 = sadd.s32 1, %s14505_s30   ;;  %s201_s12 = sadd.s32 1, %s14501_s29 }
   0x5   : > { %s198_s13 = ssub.s32 %s14505_s30, %s14605_s11  ;;  %p211_p0 = scmp.ne.s32.totalorder %s14501_s29, %s14497_s28 }
   0x6   : > { %p199_p1 = scmp.eq.s32.totalorder %s198_s13, 0  ;;  %p212_p2 = scmp.eq.s32.totalorder %s14601_s9, 1 }
   0x7   : > { %p217_p3 = scmp.ne.s32.totalorder %s14497_s28, %s14493_s27  ;;  %p218_p4 = scmp.eq.s32.totalorder %s12934_s10, 1 }
   0x8   : > { %s14616_s14 = scalar_select %p199_p1, %s14501_s29, %s201_s12  }
   0x9   : > { %p14618_p5 = por %p212_p2, %p211_p0  ;;  %p14622_p6 = por %p218_p4, %p217_p3 }
   0xa   : > { %p12937_p7 = scmp.ge.s32.totalorder %s14505_s30, 1  ;;  %p265_p8 = scmp.lt.s32.totalorder %s14505_s30, 3 }
   0xc   : > { %p266_p9 = pnand %p12937_p7, %p265_p8 }
   0xd   : > { %p299_p10 = scmp.lt.s32.totalorder (!%p266_p9), %s14601_s9, 1  ;;  %s14507_s22 = smov (!%p266_p9), 110   ;;  %v14508_v7 = vmov (!%p266_p9), 0   ;;  %vm348_vm0 = vcmask (!%p266_p9), 900096   ;;  %vm360_vm1 = vcmask (!%p266_p9), 1043456   ;;  %vm356_vm2 = vcmask (!%p266_p9), 64512  }
   0xe   : > { %269 = sbr.rel (%p266_p9) target bundleno = 1633 (0x661), region = 52  ;;  %417 = vmatprep.mubr.bf16.mxu0 (!%p266_p9), %v14508_v7  ;;  %6596 = vst [vmem:[#allocation2] sm:$0xf] (!%p266_p9), %v14508_v7  ;;  %458 = vmatprep.mubr.bf16.mxu1 (!%p266_p9), %v14508_v7  ;;  %s14509_s23 = smov (!%p266_p9), 111   ;;  %v12940_v24 = vld [vmem:[%s17402_s1 + $0x4] sm:$0xf] (!%p266_p9) }
   0xf   : > { %14405 = vset.pattern.permute.xlu1 (!%p266_p9), %v14508_v7  ;;  %14406 = vset.pattern.permute.xlu0 (!%p266_p9), %v14508_v7  ;;  %s14510_s24 = smov (!%p266_p9), 109   ;;  %s14511_s25 = smov (!%p266_p9), 101   ;;  %vm565_vm3 = vcmask (!%p266_p9), 908288   ;;  %v309_v44 = vld [vmem:[%s17402_s1] sm:$0xf] (!%p266_p9)  ;;  %vm782_vm4 = vcmask (!%p266_p9), 891904  }
  0x10   : > { %s14512_s26 = smov (!%p266_p9), 100   ;;  %s14513_s10 = smov (!%p266_p9), 99   ;;  %vm1037_vm5 = vcmask (!%p266_p9), 826368   ;;  %vm1265_vm6 = vcmask (!%p266_p9), 818176   ;;  %vm1493_vm7 = vcmask (!%p266_p9), 809984   ;;  %vm1721_vm8 = vcmask (!%p266_p9), 744448  }
  0x11   : > { %s14514_s12 = smov (!%p266_p9), 91   ;;  %s14515_s13 = smov (!%p266_p9), 90   ;;  %vm1949_vm9 = vcmask (!%p266_p9), 736256   ;;  %vm2177_vm10 = vcmask (!%p266_p9), 728064   ;;  %vm2405_vm11 = vcmask (!%p266_p9), 89088   ;;  %vm17458_vm12 = vcmask (!%p266_p9), 80896  }
  0x12   : > { %s17410_s19 = smov (!%p266_p9), 89   ;;  %vm17457_vm13 = vcmask (!%p266_p9), 72704   ;;  %vm17430_vm14 = vcmask (!%p266_p9), 7168   ;;  %vm17433_vm15 = vcmask (!%p266_p9), 1039360   ;;  %s17518_s20 = smov (!%p266_p9), 19  }
  0x15   : > { %s300_s17 = scalar_select %p299_p10, %s14601_s9, 1 }
  0x17   : > { %s14338_s18 = smul.u32 40, %s300_s17  ;;  %s17414_s17 = smov 11  }
  0x19   : > { %s14633_s21 = scalar_lea.vmem %s17401_s0, %s14338_s18  ;;  %s17418_s18 = smov 9  }
  0x1a   : > { %v306_v0 = vld [vmem:[%s14633_s21 + $0x8] sm:$0xff]  ;;  %v305_v1 = vld [vmem:[%s14633_s21] sm:$0xff]  ;;  %v307_v6 = vld [vmem:[%s14633_s21 + $0x10] sm:$0xff] }
  0x1b   : > { %v14637_v2 = vcombine.low %v306_v0, %v306_v0  ;;  %v14639_v3 = vcombine.low %v305_v1, %v305_v1  ;;  %v14645_v4 = vcombine.high %v306_v0, %v306_v0  ;;  %v14647_v5 = vcombine.high %v305_v1, %v305_v1  ;;  %v308_v10 = vld [vmem:[%s14633_s21 + $0x18] sm:$0xff]  ;;  %v14725_v13 = vld [vmem:[%s14633_s21 + $0x20] ss:$0 sps:$4 sm:$0xff]   ;;  %v12965_v0 = vld [vmem:[%s17402_s1 + $0x8] sm:$0xf] }
  0x1c   : > { %v14659_v8 = vcombine.high %v307_v6, %v307_v6  ;;  %v14661_v9 = vcombine.low %v307_v6, %v307_v6  ;;  %v14668_v11 = vcombine.high %v308_v10, %v308_v10  ;;  %v14670_v12 = vcombine.low %v308_v10, %v308_v10 }
  0x1d   : > { %336 = vrot.lane.b32.xlu1 %v14637_v2, %s14507_s22  ;;  %332 = vrot.lane.b32.xlu0 %v14639_v3, %s14507_s22 }
  0x21   : > { %338 = vrot.lane.b32.xlu1 %v14645_v4, %s14507_s22  ;;  %334 = vrot.lane.b32.xlu0 %v14647_v5, %s14507_s22 }
  0x25   : > { %342 = vrot.lane.b32.xlu1 %v14659_v8, %s14507_s22  ;;  %340 = vrot.lane.b32.xlu0 %v14661_v9, %s14507_s22 }
  0x29   : > { %346 = vrot.lane.b32.xlu1 %v14668_v11, %s14507_s22  ;;  %344 = vrot.lane.b32.xlu0 %v14670_v12, %s14507_s22 }
  0x2d   : > { %551 = vrot.lane.b32.xlu1 %v14647_v5, %s14509_s23  ;;  %549 = vrot.lane.b32.xlu0 %v14639_v3, %s14509_s23 }
  0x31   : > { %555 = vrot.lane.b32.xlu1 %v14645_v4, %s14509_s23  ;;  %553 = vrot.lane.b32.xlu0 %v14637_v2, %s14509_s23 }
  0x35   : > { %559 = vrot.lane.b32.xlu1 %v14659_v8, %s14509_s23  ;;  %557 = vrot.lane.b32.xlu0 %v14661_v9, %s14509_s23 }
  0x39   : > { %563 = vrot.lane.b32.xlu1 %v14668_v11, %s14509_s23  ;;  %561 = vrot.lane.b32.xlu0 %v14670_v12, %s14509_s23 }
  0x3d   : > { %768 = vrot.lane.b32.xlu1 %v14647_v5, %s14510_s24  ;;  %766 = vrot.lane.b32.xlu0 %v14639_v3, %s14510_s24 }
  0x41   : > { %772 = vrot.lane.b32.xlu1 %v14645_v4, %s14510_s24  ;;  %770 = vrot.lane.b32.xlu0 %v14637_v2, %s14510_s24 }
  0x45   : > { %776 = vrot.lane.b32.xlu1 %v14659_v8, %s14510_s24  ;;  %774 = vrot.lane.b32.xlu0 %v14661_v9, %s14510_s24 }
  0x49   : > { %780 = vrot.lane.b32.xlu1 %v14668_v11, %s14510_s24  ;;  %778 = vrot.lane.b32.xlu0 %v14670_v12, %s14510_s24 }
  0x4d   : > { %1021 = vrot.lane.b32.xlu1 %v14647_v5, %s14511_s25  ;;  %1019 = vrot.lane.b32.xlu0 %v14639_v3, %s14511_s25 }
  0x51   : > { %1025 = vrot.lane.b32.xlu1 %v14645_v4, %s14511_s25  ;;  %1023 = vrot.lane.b32.xlu0 %v14637_v2, %s14511_s25 }
  0x55   : > { %1029 = vrot.lane.b32.xlu1 %v14659_v8, %s14511_s25  ;;  %1027 = vrot.lane.b32.xlu0 %v14661_v9, %s14511_s25 }
  0x59   : > { %1033 = vrot.lane.b32.xlu1 %v14668_v11, %s14511_s25  ;;  %1031 = vrot.lane.b32.xlu0 %v14670_v12, %s14511_s25 }
  0x5d   : > { %1247 = vrot.lane.b32.xlu1 %v14639_v3, %s14512_s26  ;;  %1035 = vrot.lane.b32.xlu0 %v14725_v13, %s14511_s25 }
  0x61   : > { %1251 = vrot.lane.b32.xlu1 %v14637_v2, %s14512_s26  ;;  %1249 = vrot.lane.b32.xlu0 %v14647_v5, %s14512_s26 }
  0x65   : > { %1255 = vrot.lane.b32.xlu1 %v14661_v9, %s14512_s26  ;;  %1253 = vrot.lane.b32.xlu0 %v14645_v4, %s14512_s26 }
  0x69   : > { %1259 = vrot.lane.b32.xlu1 %v14670_v12, %s14512_s26  ;;  %1257 = vrot.lane.b32.xlu0 %v14659_v8, %s14512_s26 }
  0x6d   : > { %1263 = vrot.lane.b32.xlu1 %v14725_v13, %s14512_s26  ;;  %1261 = vrot.lane.b32.xlu0 %v14668_v11, %s14512_s26 }
  0x71   : > { %1477 = vrot.lane.b32.xlu1 %v14647_v5, %s14513_s10  ;;  %1475 = vrot.lane.b32.xlu0 %v14639_v3, %s14513_s10 }
  0x75   : > { %1481 = vrot.lane.b32.xlu1 %v14645_v4, %s14513_s10  ;;  %1479 = vrot.lane.b32.xlu0 %v14637_v2, %s14513_s10 }
  0x79   : > { %1485 = vrot.lane.b32.xlu1 %v14659_v8, %s14513_s10  ;;  %1483 = vrot.lane.b32.xlu0 %v14661_v9, %s14513_s10 }
  0x7d   : > { %1489 = vrot.lane.b32.xlu1 %v14668_v11, %s14513_s10  ;;  %1487 = vrot.lane.b32.xlu0 %v14670_v12, %s14513_s10 }
  0x81   : > { %1703 = vrot.lane.b32.xlu1 %v14639_v3, %s14514_s12  ;;  %1491 = vrot.lane.b32.xlu0 %v14725_v13, %s14513_s10 }
  0x85   : > { %1707 = vrot.lane.b32.xlu1 %v14637_v2, %s14514_s12  ;;  %1705 = vrot.lane.b32.xlu0 %v14647_v5, %s14514_s12 }
  0x89   : > { %1711 = vrot.lane.b32.xlu1 %v14661_v9, %s14514_s12  ;;  %1709 = vrot.lane.b32.xlu0 %v14645_v4, %s14514_s12 }
  0x8d   : > { %1715 = vrot.lane.b32.xlu1 %v14670_v12, %s14514_s12  ;;  %1713 = vrot.lane.b32.xlu0 %v14659_v8, %s14514_s12 }
  0x8f   : > { %v337_v14 = vpop.permute.xlu1 %336  ;;  %v333_v15 = vpop.permute.xlu0 %332 }
  0x91   : > { %1719 = vrot.lane.b32.xlu1 %v14725_v13, %s14514_s12  ;;  %1717 = vrot.lane.b32.xlu0 %v14668_v11, %s14514_s12 }
  0x93   : > { %v339_v16 = vpop.permute.xlu1 %338  ;;  %v335_v17 = vpop.permute.xlu0 %334 }
  0x94   : > { %v350_v18 = vsel %vm348_vm0, %v335_v17, %v337_v14  ;;  %v349_v19 = vsel %vm348_vm0, %v333_v15, %v335_v17  ;;  %v351_v23 = vsel %vm348_vm0, %v337_v14, %v339_v16 }
  0x95   : > { %1933 = vrot.lane.b32.xlu1 %v14647_v5, %s14515_s13  ;;  %1931 = vrot.lane.b32.xlu0 %v14639_v3, %s14515_s13  ;;  %v362_v20 = vsel %vm360_vm1, %v349_v19, 0  ;;  %v368_v26 = vsel %vm360_vm1, %v351_v23, 0 }
  0x96   : > { %12949 = vmatprep.subr.msk.bf16.mxu0 %vm360_vm1, %v350_v18 }
  0x97   : > { %386 = vmatpush1.bf16.msra.mxu0 %v362_v20  ;;  %v343_v21 = vpop.permute.xlu1 %342  ;;  %v341_v22 = vpop.permute.xlu0 %340 }
  0x98   : > { %v352_v25 = vsel %vm348_vm0, %v339_v16, %v341_v22  ;;  %v353_v27 = vsel %vm348_vm0, %v341_v22, %v343_v21 }
  0x99   : > { %1937 = vrot.lane.b32.xlu1 %v14645_v4, %s14515_s13  ;;  %1935 = vrot.lane.b32.xlu0 %v14637_v2, %s14515_s13  ;;  %v374_v33 = vsel %vm360_vm1, %v353_v27, 0 }
  0x9a   : > { %12951 = vmatprep.subr.msk.bf16.mxu1 %vm360_vm1, %v352_v25  ;;  %12950 = vmatmul.mubr.msk.bf16.vlgmr.msra.gmra.mrb[0].mxu0 %vm356_vm2, %v12940_v24 }
  0x9b   : > { %427 = vmatpush1.bf16.msra.mxu1 %v368_v26  ;;  %v347_v28 = vpop.permute.xlu1 %346  ;;  %v345_v29 = vpop.permute.xlu0 %344  ;;  %499 = vmatprep.mubr.bf16.mxu0 %v14508_v7 }
  0x9c   : > { %v355_v30 = vsel %vm348_vm0, %v345_v29, %v347_v28  ;;  %v354_v31 = vsel %vm348_vm0, %v343_v21, %v345_v29  ;;  %12955 = vmatprep.subr.msk.bf16.mxu1 %vm360_vm1, %v347_v28 }
  0x9d   : > { %1941 = vrot.lane.b32.xlu1 %v14659_v8, %s14515_s13  ;;  %1939 = vrot.lane.b32.xlu0 %v14661_v9, %s14515_s13  ;;  %v380_v32 = vsel %vm360_vm1, %v355_v30, 0  ;;  %v12974_v30 = vld [vmem:[%s17402_s1 + $0xc] sm:$0xf] }
  0x9e   : > { %12953 = vmatprep.subr.msk.bf16.mxu0 %vm360_vm1, %v354_v31  ;;  %12952 = vmatmul.mubr.msk.bf16.vlgmr.msra.gmra.mrb[0].mxu1 %vm356_vm2, %v12940_v24 }
  0x9f   : > { %468 = vmatpush1.bf16.msra.mxu0 %v374_v33  ;;  %509 = vmatpush1.bf16.msra.mxu1 %v380_v32  ;;  %v552_v34 = vpop.permute.xlu1 %551  ;;  %v550_v35 = vpop.permute.xlu0 %549 }
  0xa0   : > { %540 = vmatprep.mubr.bf16.mxu1 %v14508_v7  ;;  %v566_v36 = vsel %vm565_vm3, %v550_v35, %v552_v34 }
  0xa1   : > { %1945 = vrot.lane.b32.xlu1 %v14668_v11, %s14515_s13  ;;  %1943 = vrot.lane.b32.xlu0 %v14670_v12, %s14515_s13  ;;  %v577_v40 = vsel %vm360_vm1, %v566_v36, 0 }
  0xa2   : > { %12954 = vmatmul.mubr.msk.bf16.vlgmr.msra.gmra.mrb[4].mxu0 %vm356_vm2, %v12940_v24 }
  0xa3   : > { %v556_v37 = vpop.permute.xlu1 %555  ;;  %v554_v38 = vpop.permute.xlu0 %553  ;;  %632 = vmatprep.mubr.bf16.mxu0 %v14508_v7 }
  0xa4   : > { %v567_v39 = vsel %vm565_vm3, %v552_v34, %v554_v38  ;;  %v568_v41 = vsel %vm565_vm3, %v554_v38, %v556_v37 }
  0xa5   : > { %2159 = vrot.lane.b32.xlu1 %v14639_v3, %s17410_s19  ;;  %1947 = vrot.lane.b32.xlu0 %v14725_v13, %s14515_s13  ;;  %v583_v46 = vsel %vm360_vm1, %v568_v41, 0 }
  0xa6   : > { %12957 = vmatprep.subr.msk.bf16.mxu0 %vm360_vm1, %v567_v39  ;;  %12956 = vmatmul.mubr.msk.bf16.vlgmr.msra.gmra.mrb[4].mxu1 %vm356_vm2, %v12940_v24 }
  0xa7   : > { %601 = vmatpush1.bf16.msra.mxu0 %v577_v40  ;;  %v560_v42 = vpop.permute.xlu1 %559  ;;  %v558_v43 = vpop.permute.xlu0 %557  ;;  %673 = vmatprep.mubr.bf16.mxu1 %v14508_v7 }
  0xa8   : > { %v569_v45 = vsel %vm565_vm3, %v556_v37, %v558_v43  ;;  %v570_v47 = vsel %vm565_vm3, %v558_v43, %v560_v42 }
  0xa9   : > { %2163 = vrot.lane.b32.xlu1 %v14637_v2, %s17410_s19  ;;  %2161 = vrot.lane.b32.xlu0 %v14647_v5, %s17410_s19  ;;  %v589_v53 = vsel %vm360_vm1, %v570_v47, 0 }
  0xaa   : > { %12959 = vmatprep.subr.msk.bf16.mxu1 %vm360_vm1, %v569_v45  ;;  %12958 = vmatmul.mubr.msk.bf16.vlgmr.msra.gmra.mrb[0].mxu0 %vm356_vm2, %v309_v44 }
  0xab   : > { %642 = vmatpush1.bf16.msra.mxu1 %v583_v46  ;;  %v564_v48 = vpop.permute.xlu1 %563  ;;  %v562_v49 = vpop.permute.xlu0 %561  ;;  %714 = vmatprep.mubr.bf16.mxu0 %v14508_v7 }
  0xac   : > { %v572_v50 = vsel %vm565_vm3, %v562_v49, %v564_v48  ;;  %v571_v51 = vsel %vm565_vm3, %v560_v42, %v562_v49  ;;  %12963 = vmatprep.subr.msk.bf16.mxu1 %vm360_vm1, %v564_v48 }
  0xad   : > { %2167 = vrot.lane.b32.xlu1 %v14661_v9, %s17410_s19  ;;  %2165 = vrot.lane.b32.xlu0 %v14645_v4, %s17410_s19  ;;  %v595_v52 = vsel %vm360_vm1, %v572_v50, 0  ;;  %v12992_v50 = vld [vmem:[%s17402_s1 + $0x10] sm:$0xf] }
  0xae   : > { %12961 = vmatprep.subr.msk.bf16.mxu0 %vm360_vm1, %v571_v51  ;;  %12960 = vmatmul.mubr.msk.bf16.vlgmr.msra.gmra.mrb[0].mxu1 %vm356_vm2, %v309_v44 }
  0xaf   : > { %683 = vmatpush1.bf16.msra.mxu0 %v589_v53  ;;  %724 = vmatpush1.bf16.msra.mxu1 %v595_v52  ;;  %v769_v54 = vpop.permute.xlu1 %768  ;;  %v767_v55 = vpop.permute.xlu0 %766 }
  0xb0   : > { %755 = vmatprep.mubr.bf16.mxu1 %v14508_v7  ;;  %v783_v56 = vsel %vm782_vm4, %v767_v55, %v769_v54 }
  0xb1   : > { %2171 = vrot.lane.b32.xlu1 %v14670_v12, %s17410_s19  ;;  %2169 = vrot.lane.b32.xlu0 %v14659_v8, %s17410_s19  ;;  %v794_v60 = vsel %vm360_vm1, %v783_v56, 0 }
  0xb2   : > { %12962 = vmatmul.mubr.msk.bf16.vlgmr.msra.gmra.mrb[4].mxu0 %vm356_vm2, %v309_v44 }
  0xb3   : > { %v773_v57 = vpop.permute.xlu1 %772  ;;  %v771_v58 = vpop.permute.xlu0 %770  ;;  %849 = vmatprep.mubr.bf16.mxu0 %v14508_v7 }
  0xb4   : > { %v784_v59 = vsel %vm782_vm4, %v769_v54, %v771_v58  ;;  %v785_v61 = vsel %vm782_vm4, %v771_v58, %v773_v57 }
  0xb5   : > { %2175 = vrot.lane.b32.xlu1 %v14725_v13, %s17410_s19  ;;  %2173 = vrot.lane.b32.xlu0 %v14668_v11, %s17410_s19  ;;  %v800_v6 = vsel %vm360_vm1, %v785_v61, 0  ;;  %s17412_s19 = smov 10  }
  0xb6   : > { %12966 = vmatprep.subr.msk.bf16.mxu0 %vm360_vm1, %v784_v59  ;;  %12964 = vmatmul.mubr.msk.bf16.vlgmr.msra.gmra.mrb[4].mxu1 %vm356_vm2, %v309_v44 }
  0xb7   : > { %818 = vmatpush1.bf16.msra.mxu0 %v794_v60  ;;  %v777_v62 = vpop.permute.xlu1 %776  ;;  %v775_v63 = vpop.permute.xlu0 %774  ;;  %890 = vmatprep.mubr.bf16.mxu1 %v14508_v7 }
  0xb8   : > { %v786_v1 = vsel %vm782_vm4, %v773_v57, %v775_v63  ;;  %v787_v10 = vsel %vm782_vm4, %v775_v63, %v777_v62 }
  0xb9   : > { %2389 = vrot.lane.b32.xlu1 %v14647_v5, %s17414_s17  ;;  %2387 = vrot.lane.b32.xlu0 %v14639_v3, %s17414_s17  ;;  %v806_v19 = vsel %vm360_vm1, %v787_v10, 0 }
  0xba   : > { %12968 = vmatprep.subr.msk.bf16.mxu1 %vm360_vm1, %v786_v1  ;;  %12967 = vmatmul.mubr.msk.bf16.vlgmr.msra.gmra.mrb[0].mxu0 %vm356_vm2, %v12965_v0 }
  0xbb   : > { %859 = vmatpush1.bf16.msra.mxu1 %v800_v6  ;;  %v781_v14 = vpop.permute.xlu1 %780  ;;  %v779_v15 = vpop.permute.xlu0 %778  ;;  %931 = vmatprep.mubr.bf16.mxu0 %v14508_v7 }
  0xbc   : > { %v789_v16 = vsel %vm782_vm4, %v779_v15, %v781_v14  ;;  %v788_v17 = vsel %vm782_vm4, %v777_v62, %v779_v15  ;;  %12972 = vmatprep.subr.msk.bf16.mxu1 %vm360_vm1, %v781_v14 }
  0xbd   : > { %2393 = vrot.lane.b32.xlu1 %v14645_v4, %s17414_s17  ;;  %2391 = vrot.lane.b32.xlu0 %v14637_v2, %s17414_s17  ;;  %v812_v18 = vsel %vm360_vm1, %v789_v16, 0 }
  0xbe   : > { %12970 = vmatprep.subr.msk.bf16.mxu0 %vm360_vm1, %v788_v17  ;;  %12969 = vmatmul.mubr.msk.bf16.vlgmr.msra.gmra.mrb[0].mxu1 %vm356_vm2, %v12965_v0 }
  0xbf   : > { %900 = vmatpush1.bf16.msra.mxu0 %v806_v19  ;;  %941 = vmatpush1.bf16.msra.mxu1 %v812_v18  ;;  %v1022_v20 = vpop.permute.xlu1 %1021  ;;  %v1020_v21 = vpop.permute.xlu0 %1019 }
  0xc0   : > { %972 = vmatprep.mubr.bf16.mxu1 %v14508_v7  ;;  %v1038_v22 = vsel %vm1037_vm5, %v1020_v21, %v1022_v20 }
  0xc1   : > { %2397 = vrot.lane.b32.xlu1 %v14659_v8, %s17414_s17  ;;  %2395 = vrot.lane.b32.xlu0 %v14661_v9, %s17414_s17  ;;  %v1050_v26 = vsel %vm360_vm1, %v1038_v22, 0 }
  0xc2   : > { %12971 = vmatmul.mubr.msk.bf16.vlgmr.msra.gmra.mrb[4].mxu0 %vm356_vm2, %v12965_v0 }
  0xc3   : > { %v1026_v23 = vpop.permute.xlu1 %1025  ;;  %v1024_v24 = vpop.permute.xlu0 %1023  ;;  %1105 = vmatprep.mubr.bf16.mxu0 %v14508_v7 }
  0xc4   : > { %v1039_v25 = vsel %vm1037_vm5, %v1022_v20, %v1024_v24  ;;  %v1040_v27 = vsel %vm1037_vm5, %v1024_v24, %v1026_v23  ;;  %v13001_v20 = vld [vmem:[%s17402_s1 + $0x14] sm:$0xf] }
  0xc5   : > { %2401 = vrot.lane.b32.xlu1 %v14668_v11, %s17414_s17  ;;  %2399 = vrot.lane.b32.xlu0 %v14670_v12, %s17414_s17  ;;  %v1056_v32 = vsel %vm360_vm1, %v1040_v27, 0 }
  0xc6   : > { %12984 = vmatprep.subr.msk.bf16.mxu0 %vm360_vm1, %v1039_v25  ;;  %12973 = vmatmul.mubr.msk.bf16.vlgmr.msra.gmra.mrb[4].mxu1 %vm356_vm2, %v12965_v0 }
  0xc7   : > { %1074 = vmatpush1.bf16.msra.mxu0 %v1050_v26  ;;  %v1030_v28 = vpop.permute.xlu1 %1029  ;;  %v1028_v29 = vpop.permute.xlu0 %1027  ;;  %1146 = vmatprep.mubr.bf16.mxu1 %v14508_v7 }
  0xc8   : > { %v1041_v31 = vsel %vm1037_vm5, %v1026_v23, %v1028_v29  ;;  %v1042_v33 = vsel %vm1037_vm5, %v1028_v29, %v1030_v28 }
  0xc9   : > { %2615 = vrot.lane.b32.xlu1 %v14639_v3, %s17412_s19  ;;  %2403 = vrot.lane.b32.xlu0 %v14725_v13, %s17414_s17  ;;  %v1062_v37 = vsel %vm360_vm1, %v1042_v33, 0  ;;  %s17416_s17 = smov 1   ;;  %v3297_v33 = vld [vmem:[%s14633_s21 + $0x4] sm:$0xff] }
  0xca   : > { %12986 = vmatprep.subr.msk.bf16.mxu1 %vm360_vm1, %v1041_v31  ;;  %12985 = vmatmul.mubr.msk.bf16.vlgmr.msra.gmra.mrb[0].mxu0 %vm356_vm2, %v12974_v30 }
  0xcb   : > { %1115 = vmatpush1.bf16.msra.mxu1 %v1056_v32  ;;  %v1034_v34 = vpop.permute.xlu1 %1033  ;;  %v1032_v35 = vpop.permute.xlu0 %1031  ;;  %1187 = vmatprep.mubr.bf16.mxu0 %v14508_v7 }
  0xcc   : > { %v1043_v36 = vsel %vm1037_vm5, %v1030_v28, %v1032_v35  ;;  %v1044_v38 = vsel %vm1037_vm5, %v1032_v35, %v1034_v34 }
  0xcd   : > { %2619 = vrot.lane.b32.xlu1 %v14637_v2, %s17412_s19  ;;  %2617 = vrot.lane.b32.xlu0 %v14647_v5, %s17412_s19  ;;  %v1068_v42 = vsel %vm360_vm1, %v1044_v38, 0  ;;  %v15061_v38 = vcombine.high %v3297_v33, %v3297_v33 }
  0xce   : > { %12988 = vmatprep.subr.msk.bf16.mxu0 %vm360_vm1, %v1043_v36  ;;  %12987 = vmatmul.mubr.msk.bf16.vlgmr.msra.gmra.mrb[0].mxu1 %vm356_vm2, %v12974_v30  ;;  %v13010_v36 = vld [vmem:[%s17402_s1 + $0x18] sm:$0xf] }
  0xcf   : > { %1156 = vmatpush1.bf16.msra.mxu0 %v1062_v37  ;;  %v1248_v39 = vpop.permute.xlu1 %1247  ;;  %v1036_v40 = vpop.permute.xlu0 %1035  ;;  %1228 = vmatprep.mubr.bf16.mxu1 %v14508_v7 }
  0xd0   : > { %v1045_v41 = vsel %vm1037_vm5, %v1034_v34, %v1036_v40  ;;  %v3298_v40 = vld [vmem:[%s14633_s21 + $0xc] sm:$0xff] }
  0xd1   : > { %2623 = vrot.lane.b32.xlu1 %v14661_v9, %s17412_s19  ;;  %2621 = vrot.lane.b32.xlu0 %v14645_v4, %s17412_s19 }
  0xd2   : > { %12990 = vmatprep.subr.msk.bf16.mxu1 %vm360_vm1, %v1045_v41  ;;  %12989 = vmatmul.mubr.msk.bf16.vlgmr.msra.gmra.mrb[4].mxu0 %vm356_vm2, %v12974_v30 }
  0xd3   : > { %1197 = vmatpush1.bf16.msra.mxu1 %v1068_v42  ;;  %v1252_v43 = vpop.permute.xlu1 %1251  ;;  %v1250_v44 = vpop.permute.xlu0 %1249  ;;  %1333 = vmatprep.mubr.bf16.mxu0 %v14508_v7 }
  0xd4   : > { %v1266_v45 = vsel %vm1265_vm6, %v1248_v39, %v1250_v44  ;;  %v1267_v46 = vsel %vm1265_vm6, %v1250_v44, %v1252_v43  ;;  %v15063_v39 = vcombine.low %v3297_v33, %v3297_v33  ;;  %v15076_v44 = vcombine.high %v3298_v40, %v3298_v40 }
  0xd5   : > { %2627 = vrot.lane.b32.xlu1 %v14670_v12, %s17412_s19  ;;  %2625 = vrot.lane.b32.xlu0 %v14659_v8, %s17412_s19  ;;  %v1278_v47 = vsel %vm360_vm1, %v1266_v45, 0  ;;  %v15078_v45 = vcombine.low %v3298_v40, %v3298_v40 }
  0xd6   : > { %12993 = vmatprep.subr.msk.bf16.mxu0 %vm360_vm1, %v1267_v46  ;;  %12991 = vmatmul.mubr.msk.bf16.vlgmr.msra.gmra.mrb[4].mxu1 %vm356_vm2, %v12974_v30  ;;  %v3299_v46 = vld [vmem:[%s14633_s21 + $0x14] sm:$0xff] }
  0xd7   : > { %1302 = vmatpush1.bf16.msra.mxu0 %v1278_v47  ;;  %v1256_v48 = vpop.permute.xlu1 %1255  ;;  %v1254_v49 = vpop.permute.xlu0 %1253  ;;  %1374 = vmatprep.mubr.bf16.mxu1 %v14508_v7 }
  0xd8   : > { %v1268_v51 = vsel %vm1265_vm6, %v1252_v43, %v1254_v49  ;;  %v1269_v52 = vsel %vm1265_vm6, %v1254_v49, %v1256_v48 }
  0xd9   : > { %2631 = vrot.lane.b32.xlu1 %v14725_v13, %s17412_s19  ;;  %2629 = vrot.lane.b32.xlu0 %v14668_v11, %s17412_s19  ;;  %v1284_v53 = vsel %vm360_vm1, %v1268_v51, 0  ;;  %s17448_s19 = smov 127  }
  0xda   : > { %12995 = vmatprep.subr.msk.bf16.mxu1 %vm360_vm1, %v1269_v52  ;;  %12994 = vmatmul.mubr.msk.bf16.vlgmr.msra.gmra.mrb[0].mxu0 %vm356_vm2, %v12992_v50  ;;  %v15091_v52 = vcombine.high %v3299_v46, %v3299_v46 }
  0xdb   : > { %1343 = vmatpush1.bf16.msra.mxu1 %v1284_v53  ;;  %v1260_v54 = vpop.permute.xlu1 %1259  ;;  %v1258_v55 = vpop.permute.xlu0 %1257  ;;  %1415 = vmatprep.mubr.bf16.mxu0 %v14508_v7  ;;  %v15093_v53 = vcombine.low %v3299_v46, %v3299_v46 }
  0xdc   : > { %v1270_v56 = vsel %vm1265_vm6, %v1256_v48, %v1258_v55  ;;  %v1271_v57 = vsel %vm1265_vm6, %v1258_v55, %v1260_v54 }
  0xdd   : > { %2845 = vrot.lane.b32.xlu1 %v14647_v5, %s17418_s18  ;;  %2843 = vrot.lane.b32.xlu0 %v14639_v3, %s17418_s18  ;;  %v1290_v58 = vsel %vm360_vm1, %v1270_v56, 0 }
  0xde   : > { %12997 = vmatprep.subr.msk.bf16.mxu0 %vm360_vm1, %v1271_v57  ;;  %12996 = vmatmul.mubr.msk.bf16.vlgmr.msra.gmra.mrb[0].mxu1 %vm356_vm2, %v12992_v50 }
  0xdf   : > { %1384 = vmatpush1.bf16.msra.mxu0 %v1290_v58  ;;  %v1264_v59 = vpop.permute.xlu1 %1263  ;;  %v1262_v60 = vpop.permute.xlu0 %1261  ;;  %1456 = vmatprep.mubr.bf16.mxu1 %v14508_v7 }
  0xe0   : > { %v1272_v61 = vsel %vm1265_vm6, %v1260_v54, %v1262_v60  ;;  %v1273_v62 = vsel %vm1265_vm6, %v1262_v60, %v1264_v59  ;;  %v3300_v54 = vld [vmem:[%s14633_s21 + $0x1c] sm:$0xff] }
  0xe1   : > { %2849 = vrot.lane.b32.xlu1 %v14645_v4, %s17418_s18  ;;  %2847 = vrot.lane.b32.xlu0 %v14637_v2, %s17418_s18  ;;  %v1296_v63 = vsel %vm360_vm1, %v1272_v61, 0  ;;  %v15103_v57 = vcombine.high %v3300_v54, %v3300_v54  ;;  %v15105_v58 = vcombine.low %v3300_v54, %v3300_v54  ;;  %v13037_v54 = vld [vmem:[%s17402_s1 + $0x24] sm:$0xf] }
  0xe2   : > { %12999 = vmatprep.subr.msk.bf16.mxu1 %vm360_vm1, %v1273_v62  ;;  %12998 = vmatmul.mubr.msk.bf16.vlgmr.msra.gmra.mrb[4].mxu0 %vm356_vm2, %v12992_v50 }
  0xe3   : > { %1425 = vmatpush1.bf16.msra.mxu1 %v1296_v63  ;;  %v1478_v0 = vpop.permute.xlu1 %1477  ;;  %v1476_v1 = vpop.permute.xlu0 %1475  ;;  %1561 = vmatprep.mubr.bf16.mxu0 %v14508_v7 }
  0xe4   : > { %v1494_v6 = vsel %vm1493_vm7, %v1476_v1, %v1478_v0 }
  0xe5   : > { %2853 = vrot.lane.b32.xlu1 %v14659_v8, %s17418_s18  ;;  %2851 = vrot.lane.b32.xlu0 %v14661_v9, %s17418_s18  ;;  %v1506_v16 = vsel %vm360_vm1, %v1494_v6, 0 }
  0xe6   : > { %13000 = vmatmul.mubr.msk.bf16.vlgmr.msra.gmra.mrb[4].mxu1 %vm356_vm2, %v12992_v50 }
  0xe7   : > { %v1482_v10 = vpop.permute.xlu1 %1481  ;;  %v1480_v14 = vpop.permute.xlu0 %1479  ;;  %1602 = vmatprep.mubr.bf16.mxu1 %v14508_v7 }
  0xe8   : > { %v1495_v15 = vsel %vm1493_vm7, %v1478_v0, %v1480_v14  ;;  %v1496_v17 = vsel %vm1493_vm7, %v1480_v14, %v1482_v10 }
  0xe9   : > { %2857 = vrot.lane.b32.xlu1 %v14668_v11, %s17418_s18  ;;  %2855 = vrot.lane.b32.xlu0 %v14670_v12, %s17418_s18  ;;  %v1512_v22 = vsel %vm360_vm1, %v1496_v17, 0 }
  0xea   : > { %13002 = vmatprep.subr.msk.bf16.mxu0 %vm360_vm1, %v1495_v15 }
  0xeb   : > { %1530 = vmatpush1.bf16.msra.mxu0 %v1506_v16  ;;  %v1486_v18 = vpop.permute.xlu1 %1485  ;;  %v1484_v19 = vpop.permute.xlu0 %1483 }
  0xec   : > { %v1497_v21 = vsel %vm1493_vm7, %v1482_v10, %v1484_v19  ;;  %v1498_v23 = vsel %vm1493_vm7, %v1484_v19, %v1486_v18  ;;  %v13019_v10 = vld [vmem:[%s17402_s1 + $0x1c] sm:$0xf] }
  0xed   : > { %3071 = vrot.lane.b32.xlu1 %v14639_v3, %s17416_s17  ;;  %2859 = vrot.lane.b32.xlu0 %v14725_v13, %s17418_s18  ;;  %v1518_v3 = vsel %vm360_vm1, %v1498_v23, 0  ;;  %s17420_s18 = smov 119  }
  0xee   : > { %13004 = vmatprep.subr.msk.bf16.mxu1 %vm360_vm1, %v1497_v21  ;;  %13003 = vmatmul.mubr.msk.bf16.vlgmr.msra.gmra.mrb[0].mxu0 %vm356_vm2, %v13001_v20 }
  0xef   : > { %1571 = vmatpush1.bf16.msra.mxu1 %v1512_v22  ;;  %v1490_v24 = vpop.permute.xlu1 %1489  ;;  %v1488_v25 = vpop.permute.xlu0 %1487  ;;  %1643 = vmatprep.mubr.bf16.mxu0 %v14508_v7 }
  0xf0   : > { %v1499_v26 = vsel %vm1493_vm7, %v1486_v18, %v1488_v25  ;;  %v1500_v27 = vsel %vm1493_vm7, %v1488_v25, %v1490_v24 }
  0xf1   : > { %3075 = vrot.lane.b32.xlu1 %v14637_v2, %s17416_s17  ;;  %3073 = vrot.lane.b32.xlu0 %v14647_v5, %s17416_s17  ;;  %v1524_v2 = vsel %vm360_vm1, %v1500_v27, 0 }
  0xf2   : > { %13006 = vmatprep.subr.msk.bf16.mxu0 %vm360_vm1, %v1499_v26  ;;  %13005 = vmatmul.mubr.msk.bf16.vlgmr.msra.gmra.mrb[0].mxu1 %vm356_vm2, %v13001_v20 }
  0xf3   : > { %1612 = vmatpush1.bf16.msra.mxu0 %v1518_v3  ;;  %v1704_v28 = vpop.permute.xlu1 %1703  ;;  %v1492_v29 = vpop.permute.xlu0 %1491  ;;  %1684 = vmatprep.mubr.bf16.mxu1 %v14508_v7 }
  0xf4   : > { %v1501_v30 = vsel %vm1493_vm7, %v1490_v24, %v1492_v29 }
  0xf5   : > { %3079 = vrot.lane.b32.xlu1 %v14661_v9, %s17416_s17  ;;  %3077 = vrot.lane.b32.xlu0 %v14645_v4, %s17416_s17 }
  0xf6   : > { %13008 = vmatprep.subr.msk.bf16.mxu1 %vm360_vm1, %v1501_v30  ;;  %13007 = vmatmul.mubr.msk.bf16.vlgmr.msra.gmra.mrb[4].mxu0 %vm356_vm2, %v13001_v20 }
  0xf7   : > { %1653 = vmatpush1.bf16.msra.mxu1 %v1524_v2  ;;  %v1708_v5 = vpop.permute.xlu1 %1707  ;;  %v1706_v31 = vpop.permute.xlu0 %1705  ;;  %1789 = vmatprep.mubr.bf16.mxu0 %v14508_v7 }
  0xf8   : > { %v1722_v32 = vsel %vm1721_vm8, %v1704_v28, %v1706_v31  ;;  %v1723_v9 = vsel %vm1721_vm8, %v1706_v31, %v1708_v5 }
  0xf9   : > { %3083 = vrot.lane.b32.xlu1 %v14670_v12, %s17416_s17  ;;  %3081 = vrot.lane.b32.xlu0 %v14659_v8, %s17416_s17  ;;  %v1734_v4 = vsel %vm360_vm1, %v1722_v32, 0 }
  0xfa   : > { %13011 = vmatprep.subr.msk.bf16.mxu0 %vm360_vm1, %v1723_v9  ;;  %13009 = vmatmul.mubr.msk.bf16.vlgmr.msra.gmra.mrb[4].mxu1 %vm356_vm2, %v13001_v20 }
  0xfb   : > { %1758 = vmatpush1.bf16.msra.mxu0 %v1734_v4  ;;  %v1712_v34 = vpop.permute.xlu1 %1711  ;;  %v1710_v35 = vpop.permute.xlu0 %1709  ;;  %1830 = vmatprep.mubr.bf16.mxu1 %v14508_v7 }
  0xfc   : > { %v1724_v12 = vsel %vm1721_vm8, %v1708_v5, %v1710_v35  ;;  %v1725_v8 = vsel %vm1721_vm8, %v1710_v35, %v1712_v34  ;;  %v13028_v5 = vld [vmem:[%s17402_s1 + $0x20] sm:$0xf] }
  0xfd   : > { %3087 = vrot.lane.b32.xlu1 %v14725_v13, %s17416_s17  ;;  %3085 = vrot.lane.b32.xlu0 %v14668_v11, %s17416_s17  ;;  %v1740_v37 = vsel %vm360_vm1, %v1724_v12, 0  ;;  %s17424_s17 = smov 117  }
  0xfe   : > { %13013 = vmatprep.subr.msk.bf16.mxu1 %vm360_vm1, %v1725_v8  ;;  %13012 = vmatmul.mubr.msk.bf16.vlgmr.msra.gmra.mrb[0].mxu0 %vm356_vm2, %v13010_v36 }
  0xff   : > { %1799 = vmatpush1.bf16.msra.mxu1 %v1740_v37  ;;  %v1716_v41 = vpop.permute.xlu1 %1715  ;;  %v1714_v42 = vpop.permute.xlu0 %1713  ;;  %1871 = vmatprep.mubr.bf16.mxu0 %v14508_v7 }
 0x100   : > { %v1726_v13 = vsel %vm1721_vm8, %v1712_v34, %v1714_v42  ;;  %v1727_v11 = vsel %vm1721_vm8, %v1714_v42, %v1716_v41 }
 0x101   : > { %3526 = vrot.lane.b32.xlu1 %v15061_v38, %s17448_s19  ;;  %3524 = vrot.lane.b32.xlu0 %v15063_v39, %s17448_s19  ;;  %v1746_v43 = vsel %vm360_vm1, %v1726_v13, 0 }
 0x102   : > { %13015 = vmatprep.subr.msk.bf16.mxu0 %vm360_vm1, %v1727_v11  ;;  %13014 = vmatmul.mubr.msk.bf16.vlgmr.msra.gmra.mrb[0].mxu1 %vm356_vm2, %v13010_v36 }
 0x103   : > { %1840 = vmatpush1.bf16.msra.mxu0 %v1746_v43  ;;  %v1720_v47 = vpop.permute.xlu1 %1719  ;;  %v1718_v48 = vpop.permute.xlu0 %1717  ;;  %1912 = vmatprep.mubr.bf16.mxu1 %v14508_v7 }
 0x104   : > { %v1728_v49 = vsel %vm1721_vm8, %v1716_v41, %v1718_v48  ;;  %v1729_v50 = vsel %vm1721_vm8, %v1718_v48, %v1720_v47 }
 0x105   : > { %3530 = vrot.lane.b32.xlu1 %v15076_v44, %s17448_s19  ;;  %3528 = vrot.lane.b32.xlu0 %v15078_v45, %s17448_s19  ;;  %v1752_v51 = vsel %vm360_vm1, %v1728_v49, 0 }
 0x106   : > { %13017 = vmatprep.subr.msk.bf16.mxu1 %vm360_vm1, %v1729_v50  ;;  %13016 = vmatmul.mubr.msk.bf16.vlgmr.msra.gmra.mrb[4].mxu0 %vm356_vm2, %v13010_v36 }
 0x107   : > { %1881 = vmatpush1.bf16.msra.mxu1 %v1752_v51  ;;  %v1934_v55 = vpop.permute.xlu1 %1933  ;;  %v1932_v56 = vpop.permute.xlu0 %1931  ;;  %2017 = vmatprep.mubr.bf16.mxu0 %v14508_v7 }
 0x108   : > { %v1950_v59 = vsel %vm1949_vm9, %v1932_v56, %v1934_v55 }
 0x109   : > { %3534 = vrot.lane.b32.xlu1 %v15091_v52, %s17448_s19  ;;  %3532 = vrot.lane.b32.xlu0 %v15093_v53, %s17448_s19  ;;  %v1962_v63 = vsel %vm360_vm1, %v1950_v59, 0 }
 0x10a   : > { %13018 = vmatmul.mubr.msk.bf16.vlgmr.msra.gmra.mrb[4].mxu1 %vm356_vm2, %v13010_v36 }
 0x10b   : > { %v1938_v60 = vpop.permute.xlu1 %1937  ;;  %v1936_v61 = vpop.permute.xlu0 %1935  ;;  %2058 = vmatprep.mubr.bf16.mxu1 %v14508_v7 }
 0x10c   : > { %v1951_v62 = vsel %vm1949_vm9, %v1934_v55, %v1936_v61  ;;  %v1952_v0 = vsel %vm1949_vm9, %v1936_v61, %v1938_v60 }
 0x10d   : > { %3538 = vrot.lane.b32.xlu1 %v15103_v57, %s17448_s19  ;;  %3536 = vrot.lane.b32.xlu0 %v15105_v58, %s17448_s19  ;;  %v1968_v15 = vsel %vm360_vm1, %v1952_v0, 0  ;;  %s17510_s19 = smov 27  }
 0x10e   : > { %13020 = vmatprep.subr.msk.bf16.mxu0 %vm360_vm1, %v1951_v62 }
 0x10f   : > { %1986 = vmatpush1.bf16.msra.mxu0 %v1962_v63  ;;  %v1942_v1 = vpop.permute.xlu1 %1941  ;;  %v1940_v6 = vpop.permute.xlu0 %1939 }
 0x110   : > { %v1953_v14 = vsel %vm1949_vm9, %v1938_v60, %v1940_v6  ;;  %v1954_v16 = vsel %vm1949_vm9, %v1940_v6, %v1942_v1 }
 0x111   : > { %3751 = vrot.lane.b32.xlu1 %v15061_v38, %s17420_s18  ;;  %3749 = vrot.lane.b32.xlu0 %v15063_v39, %s17420_s18  ;;  %v1974_v20 = vsel %vm360_vm1, %v1954_v16, 0 }
 0x112   : > { %13022 = vmatprep.subr.msk.bf16.mxu1 %vm360_vm1, %v1953_v14  ;;  %13021 = vmatmul.mubr.msk.bf16.vlgmr.msra.gmra.mrb[0].mxu0 %vm356_vm2, %v13019_v10 }
 0x113   : > { %2027 = vmatpush1.bf16.msra.mxu1 %v1968_v15  ;;  %v1946_v17 = vpop.permute.xlu1 %1945  ;;  %v1944_v18 = vpop.permute.xlu0 %1943  ;;  %2099 = vmatprep.mubr.bf16.mxu0 %v14508_v7 }
 0x114   : > { %v1955_v19 = vsel %vm1949_vm9, %v1942_v1, %v1944_v18  ;;  %v1956_v21 = vsel %vm1949_vm9, %v1944_v18, %v1946_v17 }
 0x115   : > { %3755 = vrot.lane.b32.xlu1 %v15076_v44, %s17420_s18  ;;  %3753 = vrot.lane.b32.xlu0 %v15078_v45, %s17420_s18  ;;  %v1980_v25 = vsel %vm360_vm1, %v1956_v21, 0 }
 0x116   : > { %13024 = vmatprep.subr.msk.bf16.mxu0 %vm360_vm1, %v1955_v19  ;;  %13023 = vmatmul.mubr.msk.bf16.vlgmr.msra.gmra.mrb[0].mxu1 %vm356_vm2, %v13019_v10 }
 0x117   : > { %2068 = vmatpush1.bf16.msra.mxu0 %v1974_v20  ;;  %v2160_v22 = vpop.permute.xlu1 %2159  ;;  %v1948_v23 = vpop.permute.xlu0 %1947  ;;  %2140 = vmatprep.mubr.bf16.mxu1 %v14508_v7 }
 0x118   : > { %v1957_v24 = vsel %vm1949_vm9, %v1946_v17, %v1948_v23 }
 0x119   : > { %3759 = vrot.lane.b32.xlu1 %v15091_v52, %s17420_s18  ;;  %3757 = vrot.lane.b32.xlu0 %v15093_v53, %s17420_s18 }
 0x11a   : > { %13026 = vmatprep.subr.msk.bf16.mxu1 %vm360_vm1, %v1957_v24  ;;  %13025 = vmatmul.mubr.msk.bf16.vlgmr.msra.gmra.mrb[4].mxu0 %vm356_vm2, %v13019_v10 }
 0x11b   : > { %2109 = vmatpush1.bf16.msra.mxu1 %v1980_v25  ;;  %v2164_v26 = vpop.permute.xlu1 %2163  ;;  %v2162_v3 = vpop.permute.xlu0 %2161  ;;  %2245 = vmatprep.mubr.bf16.mxu0 %v14508_v7 }
 0x11c   : > { %v2178_v27 = vsel %vm2177_vm10, %v2160_v22, %v2162_v3  ;;  %v2179_v28 = vsel %vm2177_vm10, %v2162_v3, %v2164_v26  ;;  %v13046_v22 = vld [vmem:[%s17402_s1 + $0x28] sm:$0xf] }
 0x11d   : > { %3763 = vrot.lane.b32.xlu1 %v15103_v57, %s17420_s18  ;;  %3761 = vrot.lane.b32.xlu0 %v15105_v58, %s17420_s18  ;;  %v2190_v29 = vsel %vm360_vm1, %v2178_v27, 0  ;;  %s17422_s18 = smov 118  }
 0x11e   : > { %13029 = vmatprep.subr.msk.bf16.mxu0 %vm360_vm1, %v2179_v28  ;;  %13027 = vmatmul.mubr.msk.bf16.vlgmr.msra.gmra.mrb[4].mxu1 %vm356_vm2, %v13019_v10 }
 0x11f   : > { %2214 = vmatpush1.bf16.msra.mxu0 %v2190_v29  ;;  %v2168_v30 = vpop.permute.xlu1 %2167  ;;  %v2166_v2 = vpop.permute.xlu0 %2165  ;;  %2286 = vmatprep.mubr.bf16.mxu1 %v14508_v7 }
 0x120   : > { %v2180_v31 = vsel %vm2177_vm10, %v2164_v26, %v2166_v2  ;;  %v2181_v32 = vsel %vm2177_vm10, %v2166_v2, %v2168_v30 }
 0x121   : > { %3976 = vrot.lane.b32.xlu1 %v15061_v38, %s17422_s18  ;;  %3974 = vrot.lane.b32.xlu0 %v15063_v39, %s17422_s18  ;;  %v2196_v9 = vsel %vm360_vm1, %v2180_v31, 0 }
 0x122   : > { %13031 = vmatprep.subr.msk.bf16.mxu1 %vm360_vm1, %v2181_v32  ;;  %13030 = vmatmul.mubr.msk.bf16.vlgmr.msra.gmra.mrb[0].mxu0 %vm356_vm2, %v13028_v5 }
 0x123   : > { %2255 = vmatpush1.bf16.msra.mxu1 %v2196_v9  ;;  %v2172_v4 = vpop.permute.xlu1 %2171  ;;  %v2170_v33 = vpop.permute.xlu0 %2169  ;;  %2327 = vmatprep.mubr.bf16.mxu0 %v14508_v7  ;;  %v15281_v9 = vld [vmem:[%s14633_s21 + $0x24] ss:$0 sps:$4 sm:$0xff]   ;;  %s17431_s21 = smov 37  }
 0x124   : > { %v2182_v34 = vsel %vm2177_vm10, %v2168_v30, %v2170_v33  ;;  %v2183_v35 = vsel %vm2177_vm10, %v2170_v33, %v2172_v4 }
 0x125   : > { %3980 = vrot.lane.b32.xlu1 %v15076_v44, %s17422_s18  ;;  %3978 = vrot.lane.b32.xlu0 %v15078_v45, %s17422_s18  ;;  %v2202_v36 = vsel %vm360_vm1, %v2182_v34, 0 }
 0x126   : > { %13033 = vmatprep.subr.msk.bf16.mxu0 %vm360_vm1, %v2183_v35  ;;  %13032 = vmatmul.mubr.msk.bf16.vlgmr.msra.gmra.mrb[0].mxu1 %vm356_vm2, %v13028_v5 }
 0x127   : > { %2296 = vmatpush1.bf16.msra.mxu0 %v2202_v36  ;;  %v2176_v12 = vpop.permute.xlu1 %2175  ;;  %v2174_v8 = vpop.permute.xlu0 %2173  ;;  %2368 = vmatprep.mubr.bf16.mxu1 %v14508_v7 }
 0x128   : > { %v2184_v37 = vsel %vm2177_vm10, %v2172_v4, %v2174_v8  ;;  %v2185_v40 = vsel %vm2177_vm10, %v2174_v8, %v2176_v12 }
 0x129   : > { %3984 = vrot.lane.b32.xlu1 %v15091_v52, %s17422_s18  ;;  %3982 = vrot.lane.b32.xlu0 %v15093_v53, %s17422_s18  ;;  %v2208_v41 = vsel %vm360_vm1, %v2184_v37, 0 }
 0x12a   : > { %13035 = vmatprep.subr.msk.bf16.mxu1 %vm360_vm1, %v2185_v40  ;;  %13034 = vmatmul.mubr.msk.bf16.vlgmr.msra.gmra.mrb[4].mxu0 %vm356_vm2, %v13028_v5 }
 0x12b   : > { %2337 = vmatpush1.bf16.msra.mxu1 %v2208_v41  ;;  %v2390_v42 = vpop.permute.xlu1 %2389  ;;  %v2388_v13 = vpop.permute.xlu0 %2387  ;;  %2473 = vmatprep.mubr.bf16.mxu0 %v14508_v7 }
 0x12c   : > { %v2406_v11 = vsel %vm2405_vm11, %v2388_v13, %v2390_v42 }
 0x12d   : > { %3988 = vrot.lane.b32.xlu1 %v15103_v57, %s17422_s18  ;;  %3986 = vrot.lane.b32.xlu0 %v15105_v58, %s17422_s18  ;;  %v2418_v48 = vsel %vm360_vm1, %v2406_v11, 0  ;;  %s17428_s18 = smov 39  }
 0x12e   : > { %13036 = vmatmul.mubr.msk.bf16.vlgmr.msra.gmra.mrb[4].mxu1 %vm356_vm2, %v13028_v5 }
 0x12f   : > { %v2394_v43 = vpop.permute.xlu1 %2393  ;;  %v2392_v46 = vpop.permute.xlu0 %2391  ;;  %2514 = vmatprep.mubr.bf16.mxu1 %v14508_v7 }
 0x130   : > { %v2407_v47 = vsel %vm2405_vm11, %v2390_v42, %v2392_v46  ;;  %v2408_v49 = vsel %vm2405_vm11, %v2392_v46, %v2394_v43  ;;  %v13055_v42 = vld [vmem:[%s17402_s1 + $0x2c] sm:$0xf] }
 0x131   : > { %4201 = vrot.lane.b32.xlu1 %v15061_v38, %s17424_s17  ;;  %4199 = vrot.lane.b32.xlu0 %v15063_v39, %s17424_s17  ;;  %v2424_v56 = vsel %vm360_vm1, %v2408_v49, 0 }
 0x132   : > { %13038 = vmatprep.subr.msk.bf16.mxu0 %vm360_vm1, %v2407_v47 }
 0x133   : > { %2442 = vmatpush1.bf16.msra.mxu0 %v2418_v48  ;;  %v2398_v50 = vpop.permute.xlu1 %2397  ;;  %v2396_v51 = vpop.permute.xlu0 %2395 }
 0x134   : > { %v2409_v55 = vsel %vm2405_vm11, %v2394_v43, %v2396_v51  ;;  %v2410_v59 = vsel %vm2405_vm11, %v2396_v51, %v2398_v50 }
 0x135   : > { %4205 = vrot.lane.b32.xlu1 %v15076_v44, %s17424_s17  ;;  %4203 = vrot.lane.b32.xlu0 %v15078_v45, %s17424_s17  ;;  %v2430_v63 = vsel %vm360_vm1, %v2410_v59, 0 }
 0x136   : > { %13040 = vmatprep.subr.msk.bf16.mxu1 %vm360_vm1, %v2409_v55  ;;  %13039 = vmatmul.mubr.msk.bf16.vlgmr.msra.gmra.mrb[0].mxu0 %vm356_vm2, %v13037_v54 }
 0x137   : > { %2483 = vmatpush1.bf16.msra.mxu1 %v2424_v56  ;;  %v2402_v60 = vpop.permute.xlu1 %2401  ;;  %v2400_v61 = vpop.permute.xlu0 %2399  ;;  %2555 = vmatprep.mubr.bf16.mxu0 %v14508_v7 }
 0x138   : > { %v2411_v62 = vsel %vm2405_vm11, %v2398_v50, %v2400_v61  ;;  %v2412_v0 = vsel %vm2405_vm11, %v2400_v61, %v2402_v60 }
 0x139   : > { %4209 = vrot.lane.b32.xlu1 %v15091_v52, %s17424_s17  ;;  %4207 = vrot.lane.b32.xlu0 %v15093_v53, %s17424_s17  ;;  %v2436_v14 = vsel %vm360_vm1, %v2412_v0, 0 }
 0x13a   : > { %13042 = vmatprep.subr.msk.bf16.mxu0 %vm360_vm1, %v2411_v62  ;;  %13041 = vmatmul.mubr.msk.bf16.vlgmr.msra.gmra.mrb[0].mxu1 %vm356_vm2, %v13037_v54 }
 0x13b   : > { %2524 = vmatpush1.bf16.msra.mxu0 %v2430_v63  ;;  %v2616_v1 = vpop.permute.xlu1 %2615  ;;  %v2404_v6 = vpop.permute.xlu0 %2403  ;;  %2596 = vmatprep.mubr.bf16.mxu1 %v14508_v7 }
 0x13c   : > { %v2413_v10 = vsel %vm2405_vm11, %v2402_v60, %v2404_v6  ;;  %v13064_v6 = vld [vmem:[%s17402_s1 + $0x30] sm:$0xf] }
 0x13d   : > { %4213 = vrot.lane.b32.xlu1 %v15103_v57, %s17424_s17  ;;  %4211 = vrot.lane.b32.xlu0 %v15105_v58, %s17424_s17  ;;  %s17426_s17 = smov 38  }
 0x13e   : > { %13044 = vmatprep.subr.msk.bf16.mxu1 %vm360_vm1, %v2413_v10  ;;  %13043 = vmatmul.mubr.msk.bf16.vlgmr.msra.gmra.mrb[4].mxu0 %vm356_vm2, %v13037_v54 }
 0x13f   : > { %2565 = vmatpush1.bf16.msra.mxu1 %v2436_v14  ;;  %v2620_v15 = vpop.permute.xlu1 %2619  ;;  %v2618_v16 = vpop.permute.xlu0 %2617  ;;  %2701 = vmatprep.mubr.bf16.mxu0 %v14508_v7 }
 0x140   : > { %v2634_v17 = vsel %vm17458_vm12, %v2616_v1, %v2618_v16  ;;  %v2635_v18 = vsel %vm17458_vm12, %v2618_v16, %v2620_v15 }
 0x141   : > { %4454 = vrot.lane.b32.xlu1 %v15061_v38, %s17428_s18  ;;  %4452 = vrot.lane.b32.xlu0 %v15063_v39, %s17428_s18  ;;  %v2646_v19 = vsel %vm360_vm1, %v2634_v17, 0 }
 0x142   : > { %13047 = vmatprep.subr.msk.bf16.mxu0 %vm360_vm1, %v2635_v18  ;;  %13045 = vmatmul.mubr.msk.bf16.vlgmr.msra.gmra.mrb[4].mxu1 %vm356_vm2, %v13037_v54 }
 0x143   : > { %2670 = vmatpush1.bf16.msra.mxu0 %v2646_v19  ;;  %v2624_v20 = vpop.permute.xlu1 %2623  ;;  %v2622_v21 = vpop.permute.xlu0 %2621  ;;  %2742 = vmatprep.mubr.bf16.mxu1 %v14508_v7 }
 0x144   : > { %v2636_v23 = vsel %vm17458_vm12, %v2620_v15, %v2622_v21  ;;  %v2637_v24 = vsel %vm17458_vm12, %v2622_v21, %v2624_v20 }
 0x145   : > { %4458 = vrot.lane.b32.xlu1 %v15076_v44, %s17428_s18  ;;  %4456 = vrot.lane.b32.xlu0 %v15078_v45, %s17428_s18  ;;  %v2652_v25 = vsel %vm360_vm1, %v2636_v23, 0 }
 0x146   : > { %13049 = vmatprep.subr.msk.bf16.mxu1 %vm360_vm1, %v2637_v24  ;;  %13048 = vmatmul.mubr.msk.bf16.vlgmr.msra.gmra.mrb[0].mxu0 %vm356_vm2, %v13046_v22 }
 0x147   : > { %2711 = vmatpush1.bf16.msra.mxu1 %v2652_v25  ;;  %v2628_v26 = vpop.permute.xlu1 %2627  ;;  %v2626_v3 = vpop.permute.xlu0 %2625  ;;  %2783 = vmatprep.mubr.bf16.mxu0 %v14508_v7  ;;  %v3327_v25 = vsel %vm360_vm1, %v15063_v39, 0 }
 0x148   : > { %v2638_v27 = vsel %vm17458_vm12, %v2624_v20, %v2626_v3  ;;  %v2639_v28 = vsel %vm17458_vm12, %v2626_v3, %v2628_v26 }
 0x149   : > { %4462 = vrot.lane.b32.xlu1 %v15091_v52, %s17428_s18  ;;  %4460 = vrot.lane.b32.xlu0 %v15093_v53, %s17428_s18  ;;  %v2658_v29 = vsel %vm360_vm1, %v2638_v27, 0 }
 0x14a   : > { %13051 = vmatprep.subr.msk.bf16.mxu0 %vm360_vm1, %v2639_v28  ;;  %13050 = vmatmul.mubr.msk.bf16.vlgmr.msra.gmra.mrb[0].mxu1 %vm356_vm2, %v13046_v22  ;;  %v3333_v28 = vsel %vm360_vm1, %v15078_v45, 0 }
 0x14b   : > { %2752 = vmatpush1.bf16.msra.mxu0 %v2658_v29  ;;  %v2632_v30 = vpop.permute.xlu1 %2631  ;;  %v2630_v2 = vpop.permute.xlu0 %2629  ;;  %2824 = vmatprep.mubr.bf16.mxu1 %v14508_v7 }
 0x14c   : > { %v2640_v5 = vsel %vm17458_vm12, %v2628_v26, %v2630_v2  ;;  %v2641_v31 = vsel %vm17458_vm12, %v2630_v2, %v2632_v30  ;;  %v13073_v2 = vld [vmem:[%s17402_s1 + $0x34] sm:$0xf] }
 0x14d   : > { %4466 = vrot.lane.b32.xlu1 %v15103_v57, %s17428_s18  ;;  %4464 = vrot.lane.b32.xlu0 %v15105_v58, %s17428_s18  ;;  %v2664_v32 = vsel %vm360_vm1, %v2640_v5, 0  ;;  %v3339_v5 = vsel %vm360_vm1, %v15093_v53, 0 }
 0x14e   : > { %13053 = vmatprep.subr.msk.bf16.mxu1 %vm360_vm1, %v2641_v31  ;;  %13052 = vmatmul.mubr.msk.bf16.vlgmr.msra.gmra.mrb[4].mxu0 %vm356_vm2, %v13046_v22 }
 0x14f   : > { %2793 = vmatpush1.bf16.msra.mxu1 %v2664_v32  ;;  %v2846_v4 = vpop.permute.xlu1 %2845  ;;  %v2844_v33 = vpop.permute.xlu0 %2843  ;;  %2929 = vmatprep.mubr.bf16.mxu0 %v14508_v7 }
 0x150   : > { %v2862_v34 = vsel %vm17457_vm13, %v2844_v33, %v2846_v4  ;;  %v3345_v33 = vsel %vm360_vm1, %v15105_v58, 0 }
 0x151   : > { %4680 = vrot.lane.b32.xlu1 %v15063_v39, %s17426_s17  ;;  %4468 = vrot.lane.b32.xlu0 %v15281_v9, %s17428_s18  ;;  %v2874_v8 = vsel %vm360_vm1, %v2862_v34, 0  ;;  %s17441_s18 = smov 19  }
 0x152   : > { %13054 = vmatmul.mubr.msk.bf16.vlgmr.msra.gmra.mrb[4].mxu1 %vm356_vm2, %v13046_v22 }
 0x153   : > { %v2850_v35 = vpop.permute.xlu1 %2849  ;;  %v2848_v36 = vpop.permute.xlu0 %2847  ;;  %2970 = vmatprep.mubr.bf16.mxu1 %v14508_v7 }
 0x154   : > { %v2863_v12 = vsel %vm17457_vm13, %v2846_v4, %v2848_v36  ;;  %v2864_v37 = vsel %vm17457_vm13, %v2848_v36, %v2850_v35 }
 0x155   : > { %4684 = vrot.lane.b32.xlu1 %v15078_v45, %s17426_s17  ;;  %4682 = vrot.lane.b32.xlu0 %v15061_v38, %s17426_s17  ;;  %v2880_v11 = vsel %vm360_vm1, %v2864_v37, 0 }
 0x156   : > { %13056 = vmatprep.subr.msk.bf16.mxu0 %vm360_vm1, %v2863_v12 }
 0x157   : > { %2898 = vmatpush1.bf16.msra.mxu0 %v2874_v8  ;;  %v2854_v40 = vpop.permute.xlu1 %2853  ;;  %v2852_v41 = vpop.permute.xlu0 %2851 }
 0x158   : > { %v2865_v13 = vsel %vm17457_vm13, %v2850_v35, %v2852_v41  ;;  %v2866_v43 = vsel %vm17457_vm13, %v2852_v41, %v2854_v40 }
 0x159   : > { %4688 = vrot.lane.b32.xlu1 %v15093_v53, %s17426_s17  ;;  %4686 = vrot.lane.b32.xlu0 %v15076_v44, %s17426_s17  ;;  %v2886_v49 = vsel %vm360_vm1, %v2866_v43, 0 }
 0x15a   : > { %13057 = vmatmul.mubr.msk.bf16.vlgmr.msra.gmra.mrb[0].mxu0 %vm356_vm2, %v13055_v42  ;;  %13058 = vmatprep.subr.msk.bf16.mxu1 %vm360_vm1, %v2865_v13 }
 0x15b   : > { %2939 = vmatpush1.bf16.msra.mxu1 %v2880_v11  ;;  %v2858_v46 = vpop.permute.xlu1 %2857  ;;  %v2856_v47 = vpop.permute.xlu0 %2855  ;;  %3011 = vmatprep.mubr.bf16.mxu0 %v14508_v7 }
 0x15c   : > { %v2867_v48 = vsel %vm17457_vm13, %v2854_v40, %v2856_v47  ;;  %v2868_v50 = vsel %vm17457_vm13, %v2856_v47, %v2858_v46  ;;  %v13090_v47 = vld [vmem:[%s17402_s1 + $0x38] sm:$0xf] }
 0x15d   : > { %4692 = vrot.lane.b32.xlu1 %v15105_v58, %s17426_s17  ;;  %4690 = vrot.lane.b32.xlu0 %v15091_v52, %s17426_s17  ;;  %v2892_v56 = vsel %vm360_vm1, %v2868_v50, 0 }
 0x15e   : > { %13059 = vmatmul.mubr.msk.bf16.vlgmr.msra.gmra.mrb[0].mxu1 %vm356_vm2, %v13055_v42  ;;  %13060 = vmatprep.subr.msk.bf16.mxu0 %vm360_vm1, %v2867_v48 }
 0x15f   : > { %2980 = vmatpush1.bf16.msra.mxu0 %v2886_v49  ;;  %v3072_v51 = vpop.permute.xlu1 %3071  ;;  %v2860_v54 = vpop.permute.xlu0 %2859  ;;  %3052 = vmatprep.mubr.bf16.mxu1 %v14508_v7 }
 0x160   : > { %v2869_v55 = vsel %vm17457_vm13, %v2858_v46, %v2860_v54  ;;  %vm6598_vm13 = vcmask 850948  }
 0x161   : > { %4696 = vrot.lane.b32.xlu1 %v15281_v9, %s17426_s17  ;;  %4694 = vrot.lane.b32.xlu0 %v15103_v57, %s17426_s17  ;;  %s17434_s17 = smov 29  }
 0x162   : > { %13061 = vmatmul.mubr.msk.bf16.vlgmr.msra.gmra.mrb[4].mxu0 %vm356_vm2, %v13055_v42  ;;  %13062 = vmatprep.subr.msk.bf16.mxu1 %vm360_vm1, %v2869_v55 }
 0x163   : > { %3021 = vmatpush1.bf16.msra.mxu1 %v2892_v56  ;;  %v3076_v59 = vpop.permute.xlu1 %3075  ;;  %v3074_v60 = vpop.permute.xlu0 %3073  ;;  %3157 = vmatprep.mubr.bf16.mxu0 %v14508_v7 }
 0x164   : > { %v3090_v61 = vsel %vm17430_vm14, %v3072_v51, %v3074_v60  ;;  %v3091_v62 = vsel %vm17430_vm14, %v3074_v60, %v3076_v59 }
 0x165   : > { %4910 = vrot.lane.b32.xlu1 %v15061_v38, %s17431_s21  ;;  %4908 = vrot.lane.b32.xlu0 %v15063_v39, %s17431_s21  ;;  %v3102_v63 = vsel %vm360_vm1, %v3090_v61, 0 }
 0x166   : > { %13063 = vmatmul.mubr.msk.bf16.vlgmr.msra.gmra.mrb[4].mxu1 %vm356_vm2, %v13055_v42  ;;  %13065 = vmatprep.subr.msk.bf16.mxu0 %vm360_vm1, %v3091_v62 }
 0x167   : > { %3126 = vmatpush1.bf16.msra.mxu0 %v3102_v63  ;;  %v3080_v0 = vpop.permute.xlu1 %3079  ;;  %v3078_v1 = vpop.permute.xlu0 %3077  ;;  %3198 = vmatprep.mubr.bf16.mxu1 %v14508_v7 }
 0x168   : > { %v3092_v10 = vsel %vm17430_vm14, %v3076_v59, %v3078_v1  ;;  %v3093_v14 = vsel %vm17430_vm14, %v3078_v1, %v3080_v0 }
 0x169   : > { %4914 = vrot.lane.b32.xlu1 %v15076_v44, %s17431_s21  ;;  %4912 = vrot.lane.b32.xlu0 %v15078_v45, %s17431_s21  ;;  %v3108_v15 = vsel %vm360_vm1, %v3092_v10, 0 }
 0x16a   : > { %13066 = vmatmul.mubr.msk.bf16.vlgmr.msra.gmra.mrb[0].mxu0 %vm356_vm2, %v13064_v6  ;;  %13067 = vmatprep.subr.msk.bf16.mxu1 %vm360_vm1, %v3093_v14 }
 0x16b   : > { %3167 = vmatpush1.bf16.msra.mxu1 %v3108_v15  ;;  %v3084_v16 = vpop.permute.xlu1 %3083  ;;  %v3082_v17 = vpop.permute.xlu0 %3081  ;;  %3239 = vmatprep.mubr.bf16.mxu0 %v14508_v7 }
 0x16c   : > { %v3094_v18 = vsel %vm17430_vm14, %v3080_v0, %v3082_v17  ;;  %v3095_v19 = vsel %vm17430_vm14, %v3082_v17, %v3084_v16  ;;  %v13099_v17 = vld [vmem:[%s17402_s1 + $0x3c] sm:$0xf] }
 0x16d   : > { %4918 = vrot.lane.b32.xlu1 %v15091_v52, %s17431_s21  ;;  %4916 = vrot.lane.b32.xlu0 %v15093_v53, %s17431_s21  ;;  %v3114_v20 = vsel %vm360_vm1, %v3094_v18, 0 }
 0x16e   : > { %13068 = vmatmul.mubr.msk.bf16.vlgmr.msra.gmra.mrb[0].mxu1 %vm356_vm2, %v13064_v6  ;;  %13069 = vmatprep.subr.msk.bf16.mxu0 %vm360_vm1, %v3095_v19 }
 0x16f   : > { %3208 = vmatpush1.bf16.msra.mxu0 %v3114_v20  ;;  %v3088_v21 = vpop.permute.xlu1 %3087  ;;  %v3086_v22 = vpop.permute.xlu0 %3085  ;;  %3280 = vmatprep.mubr.bf16.mxu1 %v14508_v7 }
 0x170   : > { %v3096_v23 = vsel %vm17430_vm14, %v3084_v16, %v3086_v22  ;;  %v3097_v24 = vsel %vm17430_vm14, %v3086_v22, %v3088_v21  ;;  %13082 = vmatprep.subr.msk.bf16.mxu0 %vm360_vm1, %v15061_v38  ;;  %vm17436_vm14 = vcmask 973824  }
 0x171   : > { %4922 = vrot.lane.b32.xlu1 %v15103_v57, %s17431_s21  ;;  %4920 = vrot.lane.b32.xlu0 %v15105_v58, %s17431_s21  ;;  %v3120_v26 = vsel %vm360_vm1, %v3096_v23, 0 }
 0x172   : > { %13070 = vmatmul.mubr.msk.bf16.vlgmr.msra.gmra.mrb[4].mxu0 %vm356_vm2, %v13064_v6  ;;  %13071 = vmatprep.subr.msk.bf16.mxu1 %vm360_vm1, %v3097_v24 }
 0x173   : > { %3249 = vmatpush1.bf16.msra.mxu1 %v3120_v26  ;;  %v3527_v3 = vpop.permute.xlu1 %3526  ;;  %v3525_v27 = vpop.permute.xlu0 %3524  ;;  %3351 = vmatpush1.bf16.msra.mxu0 %v3327_v25 }
 0x174   : > { %3382 = vmatprep.mubr.bf16.mxu0 %v14508_v7  ;;  %13084 = vmatprep.subr.msk.bf16.mxu1 %vm360_vm1, %v15076_v44  ;;  %v3541_v35 = vsel %vm17433_vm15, %v3525_v27, %v3527_v3 }
 0x175   : > { %5136 = vrot.lane.b32.xlu1 %v15063_v39, %s17434_s17  ;;  %4924 = vrot.lane.b32.xlu0 %v15281_v9, %s17431_s21  ;;  %v3552_v37 = vsel %vm360_vm1, %v3541_v35, 0  ;;  %s17446_s21 = smov 28  }
 0x176   : > { %13072 = vmatmul.mubr.msk.bf16.vlgmr.msra.gmra.mrb[4].mxu1 %vm356_vm2, %v13064_v6  ;;  %13086 = vmatprep.subr.msk.bf16.mxu0 %vm360_vm1, %v15091_v52 }
 0x177   : > { %v3531_v29 = vpop.permute.xlu1 %3530  ;;  %v3529_v30 = vpop.permute.xlu0 %3528  ;;  %3392 = vmatpush1.bf16.msra.mxu1 %v3333_v28  ;;  %3423 = vmatprep.mubr.bf16.mxu1 %v14508_v7 }
 0x178   : > { %13088 = vmatprep.subr.msk.bf16.mxu1 %vm360_vm1, %v15103_v57  ;;  %v3542_v31 = vsel %vm17433_vm15, %v3527_v3, %v3529_v30  ;;  %v3543_v40 = vsel %vm17433_vm15, %v3529_v30, %v3531_v29 }
 0x179   : > { %5140 = vrot.lane.b32.xlu1 %v15078_v45, %s17434_s17  ;;  %5138 = vrot.lane.b32.xlu0 %v15061_v38, %s17434_s17  ;;  %v3558_v13 = vsel %vm360_vm1, %v3543_v40, 0 }
 0x17a   : > { %13083 = vmatmul.mubr.msk.bf16.vlgmr.msra.gmra.mrb[0].mxu0 %vm356_vm2, %v13073_v2 }
 0x17b   : > { %3433 = vmatpush1.bf16.msra.mxu0 %v3339_v5  ;;  %v3535_v32 = vpop.permute.xlu1 %3534  ;;  %v3533_v4 = vpop.permute.xlu0 %3532  ;;  %3464 = vmatprep.mubr.bf16.mxu0 %v14508_v7 }
 0x17c   : > { %13091 = vmatprep.subr.msk.bf16.mxu0 %vm360_vm1, %v3542_v31  ;;  %v3544_v34 = vsel %vm17433_vm15, %v3531_v29, %v3533_v4  ;;  %v3545_v11 = vsel %vm17433_vm15, %v3533_v4, %v3535_v32 }
 0x17d   : > { %5144 = vrot.lane.b32.xlu1 %v15093_v53, %s17434_s17  ;;  %5142 = vrot.lane.b32.xlu0 %v15076_v44, %s17434_s17  ;;  %v3564_v49 = vsel %vm360_vm1, %v3545_v11, 0 }
 0x17e   : > { %13085 = vmatmul.mubr.msk.bf16.vlgmr.msra.gmra.mrb[0].mxu1 %vm356_vm2, %v13073_v2 }
 0x17f   : > { %3474 = vmatpush1.bf16.msra.mxu1 %v3345_v33  ;;  %v3539_v36 = vpop.permute.xlu1 %3538  ;;  %v3537_v12 = vpop.permute.xlu0 %3536  ;;  %3505 = vmatprep.mubr.bf16.mxu1 %v14508_v7  ;;  %v13108_v33 = vld [vmem:[%s17402_s1 + $0x40] sm:$0xf] }
 0x180   : > { %13093 = vmatprep.subr.msk.bf16.mxu1 %vm360_vm1, %v3544_v34  ;;  %v3546_v8 = vsel %vm17433_vm15, %v3535_v32, %v3537_v12  ;;  %v3547_v50 = vsel %vm17433_vm15, %v3537_v12, %v3539_v36  ;;  %vm17439_vm15 = vcmask 965632  }
 0x181   : > { %5148 = vrot.lane.b32.xlu1 %v15105_v58, %s17434_s17  ;;  %5146 = vrot.lane.b32.xlu0 %v15091_v52, %s17434_s17  ;;  %v3570_v56 = vsel %vm360_vm1, %v3547_v50, 0 }
 0x182   : > { %13087 = vmatmul.mubr.msk.bf16.vlgmr.msra.gmra.mrb[4].mxu0 %vm356_vm2, %v13073_v2 }
 0x183   : > { %3576 = vmatpush1.bf16.msra.mxu0 %v3552_v37  ;;  %v3752_v41 = vpop.permute.xlu1 %3751  ;;  %v3750_v42 = vpop.permute.xlu0 %3749  ;;  %3607 = vmatprep.mubr.bf16.mxu0 %v14508_v7 }
 0x184   : > { %13095 = vmatprep.subr.msk.bf16.mxu0 %vm360_vm1, %v3546_v8  ;;  %v3766_v59 = vsel %vm17436_vm14, %v3750_v42, %v3752_v41 }
 0x185   : > { %5152 = vrot.lane.b32.xlu1 %v15281_v9, %s17434_s17  ;;  %5150 = vrot.lane.b32.xlu0 %v15103_v57, %s17434_s17  ;;  %v3777_v63 = vsel %vm360_vm1, %v3766_v59, 0  ;;  %s17437_s17 = smov 27  }
 0x186   : > { %13089 = vmatmul.mubr.msk.bf16.vlgmr.msra.gmra.mrb[4].mxu1 %vm356_vm2, %v13073_v2 }
 0x187   : > { %3617 = vmatpush1.bf16.msra.mxu1 %v3558_v13  ;;  %v3756_v43 = vpop.permute.xlu1 %3755  ;;  %v3754_v46 = vpop.permute.xlu0 %3753  ;;  %3648 = vmatprep.mubr.bf16.mxu1 %v14508_v7 }
 0x188   : > { %13097 = vmatprep.subr.msk.bf16.mxu1 %vm360_vm1, %v3539_v36  ;;  %v3767_v48 = vsel %vm17436_vm14, %v3752_v41, %v3754_v46  ;;  %v3768_v0 = vsel %vm17436_vm14, %v3754_v46, %v3756_v43 }
 0x189   : > { %5366 = vrot.lane.b32.xlu1 %v15061_v38, %s17446_s21  ;;  %5364 = vrot.lane.b32.xlu0 %v15063_v39, %s17446_s21  ;;  %v3783_v10 = vsel %vm360_vm1, %v3768_v0, 0 }
 0x18a   : > { %13092 = vmatmul.mubr.msk.bf16.vlgmr.msra.gmra.mrb[0].mxu0 %vm356_vm2, %v13090_v47 }
 0x18b   : > { %3658 = vmatpush1.bf16.msra.mxu0 %v3564_v49  ;;  %v3760_v51 = vpop.permute.xlu1 %3759  ;;  %v3758_v54 = vpop.permute.xlu0 %3757  ;;  %3689 = vmatprep.mubr.bf16.mxu0 %v14508_v7 }
 0x18c   : > { %13100 = vmatprep.subr.msk.bf16.mxu0 %vm360_vm1, %v3767_v48  ;;  %v3769_v55 = vsel %vm17436_vm14, %v3756_v43, %v3758_v54  ;;  %v3770_v14 = vsel %vm17436_vm14, %v3758_v54, %v3760_v51 }
 0x18d   : > { %5370 = vrot.lane.b32.xlu1 %v15076_v44, %s17446_s21  ;;  %5368 = vrot.lane.b32.xlu0 %v15078_v45, %s17446_s21  ;;  %v3789_v19 = vsel %vm360_vm1, %v3770_v14, 0 }
 0x18e   : > { %13094 = vmatmul.mubr.msk.bf16.vlgmr.msra.gmra.mrb[0].mxu1 %vm356_vm2, %v13090_v47 }
 0x18f   : > { %3699 = vmatpush1.bf16.msra.mxu1 %v3570_v56  ;;  %v3764_v60 = vpop.permute.xlu1 %3763  ;;  %v3762_v61 = vpop.permute.xlu0 %3761  ;;  %3730 = vmatprep.mubr.bf16.mxu1 %v14508_v7 }
 0x190   : > { %13102 = vmatprep.subr.msk.bf16.mxu1 %vm360_vm1, %v3769_v55  ;;  %v3771_v62 = vsel %vm17436_vm14, %v3760_v51, %v3762_v61  ;;  %v3772_v20 = vsel %vm17436_vm14, %v3762_v61, %v3764_v60  ;;  %vm17440_vm14 = vcmask 957440   ;;  %v13117_v55 = vld [vmem:[%s17402_s1 + $0x44] sm:$0xf] }
 0x191   : > { %5374 = vrot.lane.b32.xlu1 %v15091_v52, %s17446_s21  ;;  %5372 = vrot.lane.b32.xlu0 %v15093_v53, %s17446_s21  ;;  %v3795_v24 = vsel %vm360_vm1, %v3772_v20, 0 }
 0x192   : > { %13096 = vmatmul.mubr.msk.bf16.vlgmr.msra.gmra.mrb[4].mxu0 %vm356_vm2, %v13090_v47 }
 0x193   : > { %3801 = vmatpush1.bf16.msra.mxu0 %v3777_v63  ;;  %v3977_v1 = vpop.permute.xlu1 %3976  ;;  %v3975_v6 = vpop.permute.xlu0 %3974  ;;  %3832 = vmatprep.mubr.bf16.mxu0 %v14508_v7 }
 0x194   : > { %13104 = vmatprep.subr.msk.bf16.mxu0 %vm360_vm1, %v3771_v62  ;;  %v3991_v25 = vsel %vm17439_vm15, %v3975_v6, %v3977_v1 }
 0x195   : > { %5378 = vrot.lane.b32.xlu1 %v15103_v57, %s17446_s21  ;;  %5376 = vrot.lane.b32.xlu0 %v15105_v58, %s17446_s21  ;;  %v4002_v28 = vsel %vm360_vm1, %v3991_v25, 0 }
 0x196   : > { %13098 = vmatmul.mubr.msk.bf16.vlgmr.msra.gmra.mrb[4].mxu1 %vm356_vm2, %v13090_v47 }
 0x197   : > { %3842 = vmatpush1.bf16.msra.mxu1 %v3783_v10  ;;  %v3981_v15 = vpop.permute.xlu1 %3980  ;;  %v3979_v16 = vpop.permute.xlu0 %3978  ;;  %3873 = vmatprep.mubr.bf16.mxu1 %v14508_v7 }
 0x198   : > { %13106 = vmatprep.subr.msk.bf16.mxu1 %vm360_vm1, %v3764_v60  ;;  %v3992_v18 = vsel %vm17439_vm15, %v3977_v1, %v3979_v16  ;;  %v3993_v29 = vsel %vm17439_vm15, %v3979_v16, %v3981_v15 }
 0x199   : > { %5592 = vrot.lane.b32.xlu1 %v15063_v39, %s17437_s17  ;;  %5380 = vrot.lane.b32.xlu0 %v15281_v9, %s17446_s21  ;;  %v4008_v5 = vsel %vm360_vm1, %v3993_v29, 0  ;;  %s17464_s21 = smov 9  }
 0x19a   : > { %13101 = vmatmul.mubr.msk.bf16.vlgmr.msra.gmra.mrb[0].mxu0 %vm356_vm2, %v13099_v17 }
 0x19b   : > { %3883 = vmatpush1.bf16.msra.mxu0 %v3789_v19  ;;  %v3985_v21 = vpop.permute.xlu1 %3984  ;;  %v3983_v22 = vpop.permute.xlu0 %3982  ;;  %3914 = vmatprep.mubr.bf16.mxu0 %v14508_v7 }
 0x19c   : > { %13109 = vmatprep.subr.msk.bf16.mxu0 %vm360_vm1, %v3992_v18  ;;  %v3994_v23 = vsel %vm17439_vm15, %v3981_v15, %v3983_v22  ;;  %v3995_v31 = vsel %vm17439_vm15, %v3983_v22, %v3985_v21 }
 0x19d   : > { %5596 = vrot.lane.b32.xlu1 %v15078_v45, %s17437_s17  ;;  %5594 = vrot.lane.b32.xlu0 %v15061_v38, %s17437_s17  ;;  %v4014_v35 = vsel %vm360_vm1, %v3995_v31, 0 }
 0x19e   : > { %13103 = vmatmul.mubr.msk.bf16.vlgmr.msra.gmra.mrb[0].mxu1 %vm356_vm2, %v13099_v17 }
 0x19f   : > { %3924 = vmatpush1.bf16.msra.mxu1 %v3795_v24  ;;  %v3989_v26 = vpop.permute.xlu1 %3988  ;;  %v3987_v3 = vpop.permute.xlu0 %3986  ;;  %3955 = vmatprep.mubr.bf16.mxu1 %v14508_v7  ;;  %v13126_v24 = vld [vmem:[%s17402_s1 + $0x48] sm:$0xf] }
 0x1a0   : > { %13111 = vmatprep.subr.msk.bf16.mxu1 %vm360_vm1, %v3994_v23  ;;  %v3996_v27 = vsel %vm17439_vm15, %v3985_v21, %v3987_v3  ;;  %v3997_v36 = vsel %vm17439_vm15, %v3987_v3, %v3989_v26  ;;  %vm17445_vm15 = vcmask 318464  }
 0x1a1   : > { %5600 = vrot.lane.b32.xlu1 %v15093_v53, %s17437_s17  ;;  %5598 = vrot.lane.b32.xlu0 %v15076_v44, %s17437_s17  ;;  %v4020_v40 = vsel %vm360_vm1, %v3997_v36, 0 }
 0x1a2   : > { %13105 = vmatmul.mubr.msk.bf16.vlgmr.msra.gmra.mrb[4].mxu0 %vm356_vm2, %v13099_v17 }
 0x1a3   : > { %4026 = vmatpush1.bf16.msra.mxu0 %v4002_v28  ;;  %v4202_v30 = vpop.permute.xlu1 %4201  ;;  %v4200_v2 = vpop.permute.xlu0 %4199  ;;  %4057 = vmatprep.mubr.bf16.mxu0 %v14508_v7 }
 0x1a4   : > { %13113 = vmatprep.subr.msk.bf16.mxu0 %vm360_vm1, %v3996_v27  ;;  %v4216_v41 = vsel %vm17440_vm14, %v4200_v2, %v4202_v30 }
 0x1a5   : > { %5604 = vrot.lane.b32.xlu1 %v15105_v58, %s17437_s17  ;;  %5602 = vrot.lane.b32.xlu0 %v15091_v52, %s17437_s17  ;;  %v4227_v43 = vsel %vm360_vm1, %v4216_v41, 0 }
 0x1a6   : > { %13107 = vmatmul.mubr.msk.bf16.vlgmr.msra.gmra.mrb[4].mxu1 %vm356_vm2, %v13099_v17 }
 0x1a7   : > { %4067 = vmatpush1.bf16.msra.mxu1 %v4008_v5  ;;  %v4206_v32 = vpop.permute.xlu1 %4205  ;;  %v4204_v4 = vpop.permute.xlu0 %4203  ;;  %4098 = vmatprep.mubr.bf16.mxu1 %v14508_v7 }
 0x1a8   : > { %13115 = vmatprep.subr.msk.bf16.mxu1 %vm360_vm1, %v3989_v26  ;;  %v4217_v34 = vsel %vm17440_vm14, %v4202_v30, %v4204_v4  ;;  %v4218_v46 = vsel %vm17440_vm14, %v4204_v4, %v4206_v32 }
 0x1a9   : > { %5608 = vrot.lane.b32.xlu1 %v15281_v9, %s17437_s17  ;;  %5606 = vrot.lane.b32.xlu0 %v15103_v57, %s17437_s17  ;;  %v4233_v49 = vsel %vm360_vm1, %v4218_v46, 0  ;;  %s17443_s17 = smov 18   ;;  %v6516_v46 = vld [vmem:[%s17404_s3] sm:$0xff] }
 0x1aa   : > { %13110 = vmatmul.mubr.msk.bf16.vlgmr.msra.gmra.mrb[0].mxu0 %vm356_vm2, %v13108_v33 }
 0x1ab   : > { %4108 = vmatpush1.bf16.msra.mxu0 %v4014_v35  ;;  %v4210_v12 = vpop.permute.xlu1 %4209  ;;  %v4208_v8 = vpop.permute.xlu0 %4207  ;;  %4139 = vmatprep.mubr.bf16.mxu0 %v14508_v7 }
 0x1ac   : > { %13118 = vmatprep.subr.msk.bf16.mxu0 %vm360_vm1, %v4217_v34  ;;  %v4219_v37 = vsel %vm17440_vm14, %v4206_v32, %v4208_v8  ;;  %v4220_v50 = vsel %vm17440_vm14, %v4208_v8, %v4210_v12 }
 0x1ad   : > { %5822 = vrot.lane.b32.xlu1 %v15061_v38, %s17441_s18  ;;  %5820 = vrot.lane.b32.xlu0 %v15063_v39, %s17441_s18  ;;  %v4239_v59 = vsel %vm360_vm1, %v4220_v50, 0 }
 0x1ae   : > { %13112 = vmatmul.mubr.msk.bf16.vlgmr.msra.gmra.mrb[0].mxu1 %vm356_vm2, %v13108_v33 }
 0x1af   : > { %4149 = vmatpush1.bf16.msra.mxu1 %v4020_v40  ;;  %v4214_v42 = vpop.permute.xlu1 %4213  ;;  %v4212_v13 = vpop.permute.xlu0 %4211  ;;  %4180 = vmatprep.mubr.bf16.mxu1 %v14508_v7 }
 0x1b0   : > { %13120 = vmatprep.subr.msk.bf16.mxu1 %vm360_vm1, %v4219_v37  ;;  %v4221_v11 = vsel %vm17440_vm14, %v4210_v12, %v4212_v13  ;;  %v4222_v60 = vsel %vm17440_vm14, %v4212_v13, %v4214_v42  ;;  %vm17450_vm14 = vcmask 310272   ;;  %v13144_v37 = vld [vmem:[%s17402_s1 + $0x4c] sm:$0xf] }
 0x1b1   : > { %5826 = vrot.lane.b32.xlu1 %v15076_v44, %s17441_s18  ;;  %5824 = vrot.lane.b32.xlu0 %v15078_v45, %s17441_s18  ;;  %v4245_v0 = vsel %vm360_vm1, %v4222_v60, 0 }
 0x1b2   : > { %13114 = vmatmul.mubr.msk.bf16.vlgmr.msra.gmra.mrb[4].mxu0 %vm356_vm2, %v13108_v33 }
 0x1b3   : > { %4251 = vmatpush1.bf16.msra.mxu0 %v4227_v43  ;;  %v4455_v47 = vpop.permute.xlu1 %4454  ;;  %v4453_v48 = vpop.permute.xlu0 %4452  ;;  %4282 = vmatprep.mubr.bf16.mxu0 %v14508_v7 }
 0x1b4   : > { %13122 = vmatprep.subr.msk.bf16.mxu0 %vm360_vm1, %v4221_v11  ;;  %v4471_v1 = vsel %vm17445_vm15, %v4453_v48, %v4455_v47 }
 0x1b5   : > { %5830 = vrot.lane.b32.xlu1 %v15091_v52, %s17441_s18  ;;  %5828 = vrot.lane.b32.xlu0 %v15093_v53, %s17441_s18  ;;  %v4483_v15 = vsel %vm360_vm1, %v4471_v1, 0 }
 0x1b6   : > { %13116 = vmatmul.mubr.msk.bf16.vlgmr.msra.gmra.mrb[4].mxu1 %vm356_vm2, %v13108_v33 }
 0x1b7   : > { %4292 = vmatpush1.bf16.msra.mxu1 %v4233_v49  ;;  %v4459_v51 = vpop.permute.xlu1 %4458  ;;  %v4457_v54 = vpop.permute.xlu0 %4456  ;;  %4323 = vmatprep.mubr.bf16.mxu1 %v14508_v7 }
 0x1b8   : > { %13124 = vmatprep.subr.msk.bf16.mxu1 %vm360_vm1, %v4214_v42  ;;  %v4472_v56 = vsel %vm17445_vm15, %v4455_v47, %v4457_v54  ;;  %v4473_v16 = vsel %vm17445_vm15, %v4457_v54, %v4459_v51 }
 0x1b9   : > { %5834 = vrot.lane.b32.xlu1 %v15103_v57, %s17441_s18  ;;  %5832 = vrot.lane.b32.xlu0 %v15105_v58, %s17441_s18  ;;  %v4489_v20 = vsel %vm360_vm1, %v4473_v16, 0 }
 0x1ba   : > { %13119 = vmatmul.mubr.msk.bf16.vlgmr.msra.gmra.mrb[0].mxu0 %vm356_vm2, %v13117_v55 }
 0x1bb   : > { %4333 = vmatpush1.bf16.msra.mxu0 %v4239_v59  ;;  %v4463_v61 = vpop.permute.xlu1 %4462  ;;  %v4461_v62 = vpop.permute.xlu0 %4460  ;;  %4364 = vmatprep.mubr.bf16.mxu0 %v14508_v7 }
 0x1bc   : > { %13136 = vmatprep.subr.msk.bf16.mxu0 %vm360_vm1, %v4472_v56  ;;  %v4474_v63 = vsel %vm17445_vm15, %v4459_v51, %v4461_v62  ;;  %v4475_v21 = vsel %vm17445_vm15, %v4461_v62, %v4463_v61  ;;  %v13153_v56 = vld [vmem:[%s17402_s1 + $0x50] sm:$0xf] }
 0x1bd   : > { %6048 = vrot.lane.b32.xlu1 %v15063_v39, %s17443_s17  ;;  %5836 = vrot.lane.b32.xlu0 %v15281_v9, %s17441_s18  ;;  %v4495_v26 = vsel %vm360_vm1, %v4475_v21, 0  ;;  %s14533_s18 = smov 17  }
 0x1be   : > { %13121 = vmatmul.mubr.msk.bf16.vlgmr.msra.gmra.mrb[0].mxu1 %vm356_vm2, %v13117_v55 }
 0x1bf   : > { %4374 = vmatpush1.bf16.msra.mxu1 %v4245_v0  ;;  %v4467_v6 = vpop.permute.xlu1 %4466  ;;  %v4465_v10 = vpop.permute.xlu0 %4464  ;;  %4405 = vmatprep.mubr.bf16.mxu1 %v14508_v7 }
 0x1c0   : > { %13138 = vmatprep.subr.msk.bf16.mxu1 %vm360_vm1, %v4474_v63  ;;  %v4476_v14 = vsel %vm17445_vm15, %v4463_v61, %v4465_v10  ;;  %v4477_v3 = vsel %vm17445_vm15, %v4465_v10, %v4467_v6 }
 0x1c1   : > { %6052 = vrot.lane.b32.xlu1 %v15078_v45, %s17443_s17  ;;  %6050 = vrot.lane.b32.xlu0 %v15061_v38, %s17443_s17  ;;  %v4501_v30 = vsel %vm360_vm1, %v4477_v3, 0 }
 0x1c2   : > { %13123 = vmatmul.mubr.msk.bf16.vlgmr.msra.gmra.mrb[4].mxu0 %vm356_vm2, %v13117_v55 }
 0x1c3   : > { %4507 = vmatpush1.bf16.msra.mxu0 %v4483_v15  ;;  %v4681_v17 = vpop.permute.xlu1 %4680  ;;  %v4469_v18 = vpop.permute.xlu0 %4468  ;;  %4538 = vmatprep.mubr.bf16.mxu0 %v14508_v7 }
 0x1c4   : > { %13140 = vmatprep.subr.msk.bf16.mxu0 %vm360_vm1, %v4476_v14  ;;  %v4478_v19 = vsel %vm17445_vm15, %v4467_v6, %v4469_v18  ;;  %vm17451_vm15 = vcmask 302080  }
 0x1c5   : > { %6056 = vrot.lane.b32.xlu1 %v15093_v53, %s17443_s17  ;;  %6054 = vrot.lane.b32.xlu0 %v15076_v44, %s17443_s17 }
 0x1c6   : > { %13125 = vmatmul.mubr.msk.bf16.vlgmr.msra.gmra.mrb[4].mxu1 %vm356_vm2, %v13117_v55 }
 0x1c7   : > { %4548 = vmatpush1.bf16.msra.mxu1 %v4489_v20  ;;  %v4685_v22 = vpop.permute.xlu1 %4684  ;;  %v4683_v23 = vpop.permute.xlu0 %4682  ;;  %4579 = vmatprep.mubr.bf16.mxu1 %v14508_v7 }
 0x1c8   : > { %13142 = vmatprep.subr.msk.bf16.mxu1 %vm360_vm1, %v4478_v19  ;;  %v4700_v25 = vsel %vm17450_vm14, %v4683_v23, %v4685_v22  ;;  %v4699_v2 = vsel %vm17450_vm14, %v4681_v17, %v4683_v23 }
 0x1c9   : > { %6060 = vrot.lane.b32.xlu1 %v15105_v58, %s17443_s17  ;;  %6058 = vrot.lane.b32.xlu0 %v15091_v52, %s17443_s17  ;;  %v4711_v4 = vsel %vm360_vm1, %v4699_v2, 0 }
 0x1ca   : > { %13137 = vmatmul.mubr.msk.bf16.vlgmr.msra.gmra.mrb[0].mxu0 %vm356_vm2, %v13126_v24 }
 0x1cb   : > { %4589 = vmatpush1.bf16.msra.mxu0 %v4495_v26  ;;  %v4689_v27 = vpop.permute.xlu1 %4688  ;;  %v4687_v28 = vpop.permute.xlu0 %4686  ;;  %4620 = vmatprep.mubr.bf16.mxu0 %v14508_v7 }
 0x1cc   : > { %13145 = vmatprep.subr.msk.bf16.mxu0 %vm360_vm1, %v4700_v25  ;;  %v4702_v29 = vsel %vm17450_vm14, %v4687_v28, %v4689_v27  ;;  %v4701_v33 = vsel %vm17450_vm14, %v4685_v22, %v4687_v28  ;;  %v13162_v25 = vld [vmem:[%s17402_s1 + $0x54] sm:$0xf] }
 0x1cd   : > { %6064 = vrot.lane.b32.xlu1 %v15281_v9, %s17443_s17  ;;  %6062 = vrot.lane.b32.xlu0 %v15103_v57, %s17443_s17  ;;  %s17469_s17 = smov 117  }
 0x1ce   : > { %13139 = vmatmul.mubr.msk.bf16.vlgmr.msra.gmra.mrb[0].mxu1 %vm356_vm2, %v13126_v24 }
 0x1cf   : > { %4630 = vmatpush1.bf16.msra.mxu1 %v4501_v30  ;;  %v4693_v5 = vpop.permute.xlu1 %4692  ;;  %v4691_v31 = vpop.permute.xlu0 %4690  ;;  %4661 = vmatprep.mubr.bf16.mxu1 %v14508_v7 }
 0x1d0   : > { %13147 = vmatprep.subr.msk.bf16.mxu1 %vm360_vm1, %v4702_v29  ;;  %v4704_v32 = vsel %vm17450_vm14, %v4691_v31, %v4693_v5  ;;  %v4703_v36 = vsel %vm17450_vm14, %v4689_v27, %v4691_v31 }
 0x1d1   : > { %6278 = vrot.lane.b32.xlu1 %v15061_v38, %s14533_s18  ;;  %6276 = vrot.lane.b32.xlu0 %v15063_v39, %s14533_s18  ;;  %v4717_v39 = vsel %vm360_vm1, %v4701_v33, 0 }
 0x1d2   : > { %13141 = vmatmul.mubr.msk.bf16.vlgmr.msra.gmra.mrb[4].mxu0 %vm356_vm2, %v13126_v24 }
 0x1d3   : > { %4735 = vmatpush1.bf16.msra.mxu0 %v4711_v4  ;;  %v4697_v34 = vpop.permute.xlu1 %4696  ;;  %v4695_v35 = vpop.permute.xlu0 %4694  ;;  %4766 = vmatprep.mubr.bf16.mxu0 %v14508_v7 }
 0x1d4   : > { %13149 = vmatprep.subr.msk.bf16.mxu0 %vm360_vm1, %v4704_v32  ;;  %v4706_v38 = vsel %vm17450_vm14, %v4695_v35, %v4697_v34 }
 0x1d5   : > { %6282 = vrot.lane.b32.xlu1 %v15076_v44, %s14533_s18  ;;  %6280 = vrot.lane.b32.xlu0 %v15078_v45, %s14533_s18  ;;  %v4723_v44 = vsel %vm360_vm1, %v4703_v36, 0  ;;  %v4705_v45 = vsel %vm17450_vm14, %v4693_v5, %v4695_v35  ;;  %vm17452_vm14 = vcmask 236544  }
 0x1d6   : > { %13143 = vmatmul.mubr.msk.bf16.vlgmr.msra.gmra.mrb[4].mxu1 %vm356_vm2, %v13126_v24 }
 0x1d7   : > { %4776 = vmatpush1.bf16.msra.mxu1 %v4717_v39  ;;  %v4911_v12 = vpop.permute.xlu1 %4910  ;;  %v4909_v8 = vpop.permute.xlu0 %4908  ;;  %4807 = vmatprep.mubr.bf16.mxu1 %v14508_v7 }
 0x1d8   : > { %13151 = vmatprep.subr.msk.bf16.mxu1 %vm360_vm1, %v4706_v38 }
 0x1d9   : > { %6286 = vrot.lane.b32.xlu1 %v15091_v52, %s14533_s18  ;;  %6284 = vrot.lane.b32.xlu0 %v15093_v53, %s14533_s18  ;;  %v4729_v52 = vsel %vm360_vm1, %v4705_v45, 0  ;;  %v4927_v53 = vsel %vm17451_vm15, %v4909_v8, %v4911_v12 }
 0x1da   : > { %13146 = vmatmul.mubr.msk.bf16.vlgmr.msra.gmra.mrb[0].mxu0 %vm356_vm2, %v13144_v37 }
 0x1db   : > { %4817 = vmatpush1.bf16.msra.mxu0 %v4723_v44  ;;  %v4915_v40 = vpop.permute.xlu1 %4914  ;;  %v4913_v41 = vpop.permute.xlu0 %4912  ;;  %4848 = vmatprep.mubr.bf16.mxu0 %v14508_v7 }
 0x1dc   : > { %v4928_v42 = vsel %vm17451_vm15, %v4911_v12, %v4913_v41  ;;  %v4929_v47 = vsel %vm17451_vm15, %v4913_v41, %v4915_v40 }
 0x1dd   : > { %6288 = vrot.lane.b32.xlu0 %v15105_v58, %s14533_s18  ;;  %13154 = vmatprep.subr.msk.bf16.mxu0 %vm360_vm1, %v4928_v42  ;;  %v6502_v58 = vld [vmem:[%s17403_s2] sm:$0xff]  ;;  %v4945_v50 = vsel %vm360_vm1, %v4929_v47, 0 }
 0x1de   : > { %13148 = vmatmul.mubr.msk.bf16.vlgmr.msra.gmra.mrb[0].mxu1 %vm356_vm2, %v13144_v37  ;;  %6290 = vrot.lane.b32.xlu1 %v15103_v57, %s14533_s18  ;;  %v4939_v57 = vsel %vm360_vm1, %v4927_v53, 0 }
 0x1df   : > { %4858 = vmatpush1.bf16.msra.mxu1 %v4729_v52  ;;  %v4919_v13 = vpop.permute.xlu1 %4918  ;;  %v4917_v11 = vpop.permute.xlu0 %4916  ;;  %4889 = vmatprep.mubr.bf16.mxu1 %v14508_v7 }
 0x1e0   : > { %v4930_v43 = vsel %vm17451_vm15, %v4915_v40, %v4917_v11  ;;  %v4931_v51 = vsel %vm17451_vm15, %v4917_v11, %v4919_v13 }
 0x1e1   : > { %6292 = vrot.lane.b32.xlu0 %v15281_v9, %s14533_s18  ;;  %13156 = vmatprep.subr.msk.bf16.mxu1 %vm360_vm1, %v4930_v43  ;;  %v4951_v60 = vsel %vm360_vm1, %v4931_v51, 0 }
 0x1e2   : > { %13150 = vmatmul.mubr.msk.bf16.vlgmr.msra.gmra.mrb[4].mxu0 %vm356_vm2, %v13144_v37  ;;  %6505 = vperm.xlu1 %14405, %v6502_v58  }
 0x1e3   : > { %4963 = vmatpush1.bf16.msra.mxu0 %v4939_v57  ;;  %v4923_v48 = vpop.permute.xlu1 %4922  ;;  %v4921_v49 = vpop.permute.xlu0 %4920  ;;  %4994 = vmatprep.mubr.bf16.mxu0 %v14508_v7 }
 0x1e4   : > { %v4932_v9 = vsel %vm17451_vm15, %v4919_v13, %v4921_v49  ;;  %v4933_v61 = vsel %vm17451_vm15, %v4921_v49, %v4923_v48 }
 0x1e5   : > { %13158 = vmatprep.subr.msk.bf16.mxu0 %vm360_vm1, %v4932_v9  ;;  %6519 = vperm.xlu0 %14406, %v6516_v46   ;;  %v4957_v1 = vsel %vm360_vm1, %v4933_v61, 0 }
 0x1e6   : > { %13152 = vmatmul.mubr.msk.bf16.vlgmr.msra.gmra.mrb[4].mxu1 %vm356_vm2, %v13144_v37  ;;  %v13171_v37 = vld [vmem:[%s17402_s1 + $0x58] sm:$0xf] }
 0x1e7   : > { %5004 = vmatpush1.bf16.msra.mxu1 %v4945_v50  ;;  %v5137_v54 = vpop.permute.xlu1 %5136  ;;  %v4925_v55 = vpop.permute.xlu0 %4924  ;;  %5035 = vmatprep.mubr.bf16.mxu1 %v14508_v7 }
 0x1e8   : > { %v4934_v59 = vsel %vm17451_vm15, %v4923_v48, %v4925_v55  ;;  %vm17453_vm15 = vcmask 228352  }
 0x1e9   : > { %13160 = vmatprep.subr.msk.bf16.mxu1 %vm360_vm1, %v4934_v59 }
 0x1ea   : > { %13155 = vmatmul.mubr.msk.bf16.vlgmr.msra.gmra.mrb[0].mxu0 %vm356_vm2, %v13153_v56 }
 0x1eb   : > { %5045 = vmatpush1.bf16.msra.mxu0 %v4951_v60  ;;  %v5141_v62 = vpop.permute.xlu1 %5140  ;;  %v5139_v63 = vpop.permute.xlu0 %5138  ;;  %5076 = vmatprep.mubr.bf16.mxu0 %v14508_v7 }
 0x1ec   : > { %v5156_v0 = vsel %vm17452_vm14, %v5139_v63, %v5141_v62  ;;  %v5155_v6 = vsel %vm17452_vm14, %v5137_v54, %v5139_v63  ;;  %v13180_v54 = vld [vmem:[%s17402_s1 + $0x5c] sm:$0xf] }
 0x1ed   : > { %13163 = vmatprep.subr.msk.bf16.mxu0 %vm360_vm1, %v5156_v0  ;;  %v5167_v16 = vsel %vm360_vm1, %v5155_v6, 0 }
 0x1ee   : > { %13157 = vmatmul.mubr.msk.bf16.vlgmr.msra.gmra.mrb[0].mxu1 %vm356_vm2, %v13153_v56 }
 0x1ef   : > { %5086 = vmatpush1.bf16.msra.mxu1 %v4957_v1  ;;  %v5145_v10 = vpop.permute.xlu1 %5144  ;;  %v5143_v14 = vpop.permute.xlu0 %5142  ;;  %5117 = vmatprep.mubr.bf16.mxu1 %v14508_v7 }
 0x1f0   : > { %v5158_v15 = vsel %vm17452_vm14, %v5143_v14, %v5145_v10  ;;  %v5157_v17 = vsel %vm17452_vm14, %v5141_v62, %v5143_v14 }
 0x1f1   : > { %13165 = vmatprep.subr.msk.bf16.mxu1 %vm360_vm1, %v5158_v15  ;;  %v5173_v21 = vsel %vm360_vm1, %v5157_v17, 0 }
 0x1f2   : > { %13159 = vmatmul.mubr.msk.bf16.vlgmr.msra.gmra.mrb[4].mxu0 %vm356_vm2, %v13153_v56 }
 0x1f3   : > { %5191 = vmatpush1.bf16.msra.mxu0 %v5167_v16  ;;  %v5149_v18 = vpop.permute.xlu1 %5148  ;;  %v5147_v19 = vpop.permute.xlu0 %5146  ;;  %5222 = vmatprep.mubr.bf16.mxu0 %v14508_v7 }
 0x1f4   : > { %v5160_v20 = vsel %vm17452_vm14, %v5147_v19, %v5149_v18  ;;  %v5159_v22 = vsel %vm17452_vm14, %v5145_v10, %v5147_v19 }
 0x1f5   : > { %13167 = vmatprep.subr.msk.bf16.mxu0 %vm360_vm1, %v5160_v20  ;;  %v5179_v3 = vsel %vm360_vm1, %v5159_v22, 0 }
 0x1f6   : > { %13161 = vmatmul.mubr.msk.bf16.vlgmr.msra.gmra.mrb[4].mxu1 %vm356_vm2, %v13153_v56 }
 0x1f7   : > { %5232 = vmatpush1.bf16.msra.mxu1 %v5173_v21  ;;  %v5153_v23 = vpop.permute.xlu1 %5152  ;;  %v5151_v24 = vpop.permute.xlu0 %5150  ;;  %5263 = vmatprep.mubr.bf16.mxu1 %v14508_v7  ;;  %v13189_v21 = vld [vmem:[%s17402_s1 + $0x60] sm:$0xf] }
 0x1f8   : > { %v5162_v26 = vsel %vm17452_vm14, %v5151_v24, %v5153_v23  ;;  %v5161_v27 = vsel %vm17452_vm14, %v5149_v18, %v5151_v24  ;;  %vm17454_vm14 = vcmask 220160  }
 0x1f9   : > { %13169 = vmatprep.subr.msk.bf16.mxu1 %vm360_vm1, %v5162_v26  ;;  %v5185_v30 = vsel %vm360_vm1, %v5161_v27, 0 }
 0x1fa   : > { %13164 = vmatmul.mubr.msk.bf16.vlgmr.msra.gmra.mrb[0].mxu0 %vm356_vm2, %v13162_v25 }
 0x1fb   : > { %5273 = vmatpush1.bf16.msra.mxu0 %v5179_v3  ;;  %v5367_v28 = vpop.permute.xlu1 %5366  ;;  %v5365_v29 = vpop.permute.xlu0 %5364  ;;  %5304 = vmatprep.mubr.bf16.mxu0 %v14508_v7 }
 0x1fc   : > { %v5383_v2 = vsel %vm17453_vm15, %v5365_v29, %v5367_v28 }
 0x1fd   : > { %v5395_v4 = vsel %vm360_vm1, %v5383_v2, 0 }
 0x1fe   : > { %13166 = vmatmul.mubr.msk.bf16.vlgmr.msra.gmra.mrb[0].mxu1 %vm356_vm2, %v13162_v25 }
 0x1ff   : > { %5314 = vmatpush1.bf16.msra.mxu1 %v5185_v30  ;;  %v5371_v5 = vpop.permute.xlu1 %5370  ;;  %v5369_v31 = vpop.permute.xlu0 %5368  ;;  %5345 = vmatprep.mubr.bf16.mxu1 %v14508_v7 }
 0x200   : > { %v5384_v32 = vsel %vm17453_vm15, %v5367_v28, %v5369_v31  ;;  %v5385_v33 = vsel %vm17453_vm15, %v5369_v31, %v5371_v5 }
 0x201   : > { %13172 = vmatprep.subr.msk.bf16.mxu0 %vm360_vm1, %v5384_v32  ;;  %v5401_v39 = vsel %vm360_vm1, %v5385_v33, 0 }
 0x202   : > { %13168 = vmatmul.mubr.msk.bf16.vlgmr.msra.gmra.mrb[4].mxu0 %vm356_vm2, %v13162_v25 }
 0x203   : > { %5419 = vmatpush1.bf16.msra.mxu0 %v5395_v4  ;;  %v5375_v34 = vpop.permute.xlu1 %5374  ;;  %v5373_v35 = vpop.permute.xlu0 %5372  ;;  %5450 = vmatprep.mubr.bf16.mxu0 %v14508_v7 }
 0x204   : > { %v5386_v38 = vsel %vm17453_vm15, %v5371_v5, %v5373_v35  ;;  %v5387_v36 = vsel %vm17453_vm15, %v5373_v35, %v5375_v34 }
 0x205   : > { %13174 = vmatprep.subr.msk.bf16.mxu1 %vm360_vm1, %v5386_v38  ;;  %v5407_v45 = vsel %vm360_vm1, %v5387_v36, 0 }
 0x206   : > { %13170 = vmatmul.mubr.msk.bf16.vlgmr.msra.gmra.mrb[4].mxu1 %vm356_vm2, %v13162_v25 }
 0x207   : > { %5460 = vmatpush1.bf16.msra.mxu1 %v5401_v39  ;;  %v5379_v12 = vpop.permute.xlu1 %5378  ;;  %v5377_v8 = vpop.permute.xlu0 %5376  ;;  %5491 = vmatprep.mubr.bf16.mxu1 %v14508_v7  ;;  %v13198_v39 = vld [vmem:[%s17402_s1 + $0x64] sm:$0xf] }
 0x208   : > { %v5388_v44 = vsel %vm17453_vm15, %v5375_v34, %v5377_v8  ;;  %v5389_v40 = vsel %vm17453_vm15, %v5377_v8, %v5379_v12 }
 0x209   : > { %13176 = vmatprep.subr.msk.bf16.mxu0 %vm360_vm1, %v5388_v44  ;;  %v5413_v53 = vsel %vm360_vm1, %v5389_v40, 0 }
 0x20a   : > { %13173 = vmatmul.mubr.msk.bf16.vlgmr.msra.gmra.mrb[0].mxu0 %vm356_vm2, %v13171_v37 }
 0x20b   : > { %5501 = vmatpush1.bf16.msra.mxu0 %v5407_v45  ;;  %v5593_v41 = vpop.permute.xlu1 %5592  ;;  %v5381_v42 = vpop.permute.xlu0 %5380  ;;  %5532 = vmatprep.mubr.bf16.mxu0 %v14508_v7 }
 0x20c   : > { %v5390_v52 = vsel %vm17453_vm15, %v5379_v12, %v5381_v42  ;;  %vm17455_vm15 = vcmask 154624  }
 0x20d   : > { %13178 = vmatprep.subr.msk.bf16.mxu1 %vm360_vm1, %v5390_v52 }
 0x20e   : > { %13175 = vmatmul.mubr.msk.bf16.vlgmr.msra.gmra.mrb[0].mxu1 %vm356_vm2, %v13171_v37 }
 0x20f   : > { %5542 = vmatpush1.bf16.msra.mxu1 %v5413_v53  ;;  %v5597_v13 = vpop.permute.xlu1 %5596  ;;  %v5595_v11 = vpop.permute.xlu0 %5594  ;;  %5573 = vmatprep.mubr.bf16.mxu1 %v14508_v7 }
 0x210   : > { %v5611_v58 = vsel %vm17454_vm14, %v5593_v41, %v5595_v11  ;;  %v5612_v43 = vsel %vm17454_vm14, %v5595_v11, %v5597_v13 }
 0x211   : > { %13181 = vmatprep.subr.msk.bf16.mxu0 %vm360_vm1, %v5612_v43  ;;  %v5623_v57 = vsel %vm360_vm1, %v5611_v58, 0 }
 0x212   : > { %13177 = vmatmul.mubr.msk.bf16.vlgmr.msra.gmra.mrb[4].mxu0 %vm356_vm2, %v13171_v37 }
 0x213   : > { %5647 = vmatpush1.bf16.msra.mxu0 %v5623_v57  ;;  %v5601_v46 = vpop.permute.xlu1 %5600  ;;  %v5599_v47 = vpop.permute.xlu0 %5598  ;;  %5678 = vmatprep.mubr.bf16.mxu0 %v14508_v7 }
 0x214   : > { %v5613_v48 = vsel %vm17454_vm14, %v5597_v13, %v5599_v47  ;;  %v5614_v49 = vsel %vm17454_vm14, %v5599_v47, %v5601_v46 }
 0x215   : > { %13183 = vmatprep.subr.msk.bf16.mxu1 %vm360_vm1, %v5614_v49  ;;  %v5629_v9 = vsel %vm360_vm1, %v5613_v48, 0 }
 0x216   : > { %13179 = vmatmul.mubr.msk.bf16.vlgmr.msra.gmra.mrb[4].mxu1 %vm356_vm2, %v13171_v37 }
 0x217   : > { %5688 = vmatpush1.bf16.msra.mxu1 %v5629_v9  ;;  %v5605_v50 = vpop.permute.xlu1 %5604  ;;  %v5603_v51 = vpop.permute.xlu0 %5602  ;;  %5719 = vmatprep.mubr.bf16.mxu1 %v14508_v7 }
 0x218   : > { %v5615_v55 = vsel %vm17454_vm14, %v5601_v46, %v5603_v51  ;;  %v5616_v56 = vsel %vm17454_vm14, %v5603_v51, %v5605_v50 }
 0x219   : > { %13185 = vmatprep.subr.msk.bf16.mxu0 %vm360_vm1, %v5616_v56  ;;  %v5635_v59 = vsel %vm360_vm1, %v5615_v55, 0 }
 0x21a   : > { %13182 = vmatmul.mubr.msk.bf16.vlgmr.msra.gmra.mrb[0].mxu0 %vm356_vm2, %v13180_v54 }
 0x21b   : > { %5729 = vmatpush1.bf16.msra.mxu0 %v5635_v59  ;;  %v5609_v60 = vpop.permute.xlu1 %5608  ;;  %v5607_v61 = vpop.permute.xlu0 %5606  ;;  %5760 = vmatprep.mubr.bf16.mxu0 %v14508_v7 }
 0x21c   : > { %v5617_v62 = vsel %vm17454_vm14, %v5605_v50, %v5607_v61  ;;  %v5618_v63 = vsel %vm17454_vm14, %v5607_v61, %v5609_v60  ;;  %vm17456_vm14 = vcmask 146432   ;;  %v13207_v50 = vld [vmem:[%s17402_s1 + $0x68] sm:$0xf] }
 0x21d   : > { %13187 = vmatprep.subr.msk.bf16.mxu1 %vm360_vm1, %v5618_v63  ;;  %v5641_v0 = vsel %vm360_vm1, %v5617_v62, 0 }
 0x21e   : > { %13184 = vmatmul.mubr.msk.bf16.vlgmr.msra.gmra.mrb[0].mxu1 %vm356_vm2, %v13180_v54 }
 0x21f   : > { %5770 = vmatpush1.bf16.msra.mxu1 %v5641_v0  ;;  %v5823_v1 = vpop.permute.xlu1 %5822  ;;  %v5821_v6 = vpop.permute.xlu0 %5820  ;;  %5801 = vmatprep.mubr.bf16.mxu1 %v14508_v7 }
 0x220   : > { %v5839_v10 = vsel %vm17455_vm15, %v5821_v6, %v5823_v1 }
 0x221   : > { %v5851_v17 = vsel %vm360_vm1, %v5839_v10, 0 }
 0x222   : > { %13186 = vmatmul.mubr.msk.bf16.vlgmr.msra.gmra.mrb[4].mxu0 %vm356_vm2, %v13180_v54 }
 0x223   : > { %v5827_v14 = vpop.permute.xlu1 %5826  ;;  %v5825_v15 = vpop.permute.xlu0 %5824  ;;  %5906 = vmatprep.mubr.bf16.mxu0 %v14508_v7 }
 0x224   : > { %v5840_v16 = vsel %vm17455_vm15, %v5823_v1, %v5825_v15  ;;  %v5841_v18 = vsel %vm17455_vm15, %v5825_v15, %v5827_v14 }
 0x225   : > { %13190 = vmatprep.subr.msk.bf16.mxu0 %vm360_vm1, %v5840_v16  ;;  %v5857_v23 = vsel %vm360_vm1, %v5841_v18, 0 }
 0x226   : > { %5875 = vmatpush1.bf16.msra.mxu0 %v5851_v17  ;;  %13188 = vmatmul.mubr.msk.bf16.vlgmr.msra.gmra.mrb[4].mxu1 %vm356_vm2, %v13180_v54 }
 0x227   : > { %v5831_v19 = vpop.permute.xlu1 %5830  ;;  %v5829_v20 = vpop.permute.xlu0 %5828  ;;  %5947 = vmatprep.mubr.bf16.mxu1 %v14508_v7 }
 0x228   : > { %v5842_v22 = vsel %vm17455_vm15, %v5827_v14, %v5829_v20  ;;  %v5843_v24 = vsel %vm17455_vm15, %v5829_v20, %v5831_v19  ;;  %v6548_v14 = vlaneseq }
 0x229   : > { %13192 = vmatprep.subr.msk.bf16.mxu1 %vm360_vm1, %v5842_v22  ;;  %v5863_v27 = vsel %vm360_vm1, %v5843_v24, 0  ;;  %v15878_v24 = vld [vmem:[%s17408_s7] sm:$0xff] }
 0x22a   : > { %5916 = vmatpush1.bf16.msra.mxu1 %v5857_v23  ;;  %13191 = vmatmul.mubr.msk.bf16.vlgmr.msra.gmra.mrb[0].mxu0 %vm356_vm2, %v13189_v21  ;;  %v15870_v15 = vshrl.u32 %v6548_v14, 7 }
 0x22b   : > { %v5835_v25 = vpop.permute.xlu1 %5834  ;;  %v5833_v26 = vpop.permute.xlu0 %5832  ;;  %5988 = vmatprep.mubr.bf16.mxu0 %v14508_v7 }
 0x22c   : > { %v5844_v3 = vsel %vm17455_vm15, %v5831_v19, %v5833_v26  ;;  %v5845_v28 = vsel %vm17455_vm15, %v5833_v26, %v5835_v25 }
 0x22d   : > { %13194 = vmatprep.subr.msk.bf16.mxu0 %vm360_vm1, %v5844_v3  ;;  %v5869_v5 = vsel %vm360_vm1, %v5845_v28, 0 }
 0x22e   : > { %5957 = vmatpush1.bf16.msra.mxu0 %v5863_v27  ;;  %13193 = vmatmul.mubr.msk.bf16.vlgmr.msra.gmra.mrb[0].mxu1 %vm356_vm2, %v13189_v21 }
 0x22f   : > { %v6049_v29 = vpop.permute.xlu1 %6048  ;;  %v5837_v30 = vpop.permute.xlu0 %5836  ;;  %6029 = vmatprep.mubr.bf16.mxu1 %v14508_v7 }
 0x230   : > { %v5846_v2 = vsel %vm17455_vm15, %v5835_v25, %v5837_v30  ;;  %vm6294_vm15 = vcmask 138240   ;;  %v6554_v25 = vsub.s32 1, %v15870_v15 }
 0x231   : > { %13196 = vmatprep.subr.msk.bf16.mxu1 %vm360_vm1, %v5846_v2 }
 0x232   : > { %5998 = vmatpush1.bf16.msra.mxu1 %v5869_v5  ;;  %13195 = vmatmul.mubr.msk.bf16.vlgmr.msra.gmra.mrb[4].mxu0 %vm356_vm2, %v13189_v21  ;;  %v6558_v5 = vsub.s32 2, %v15870_v15 }
 0x233   : > { %v6053_v31 = vpop.permute.xlu1 %6052  ;;  %v6051_v32 = vpop.permute.xlu0 %6050  ;;  %6134 = vmatprep.mubr.bf16.mxu0 %v14508_v7 }
 0x234   : > { %v6067_v4 = vsel %vm17456_vm14, %v6049_v29, %v6051_v32  ;;  %v6068_v33 = vsel %vm17456_vm14, %v6051_v32, %v6053_v31 }
 0x235   : > { %13199 = vmatprep.subr.msk.bf16.mxu0 %vm360_vm1, %v6068_v33  ;;  %v6079_v34 = vsel %vm360_vm1, %v6067_v4, 0  ;;  %v6555_v4 = vrot.slane %v15878_v24, %v6554_v25 }
 0x236   : > { %6103 = vmatpush1.bf16.msra.mxu0 %v6079_v34  ;;  %13197 = vmatmul.mubr.msk.bf16.vlgmr.msra.gmra.mrb[4].mxu1 %vm356_vm2, %v13189_v21  ;;  %v6550_v21 = vsub.s32 0, %v15870_v15  ;;  %v6562_v34 = vsub.s32 3, %v15870_v15 }
 0x237   : > { %v6057_v35 = vpop.permute.xlu1 %6056  ;;  %v6055_v38 = vpop.permute.xlu0 %6054  ;;  %6175 = vmatprep.mubr.bf16.mxu1 %v14508_v7 }
 0x238   : > { %v6069_v36 = vsel %vm17456_vm14, %v6053_v31, %v6055_v38  ;;  %v6070_v12 = vsel %vm17456_vm14, %v6055_v38, %v6057_v35  ;;  %v6551_v2 = vrot.slane %v15878_v24, %v6550_v21 }
 0x239   : > { %13201 = vmatprep.subr.msk.bf16.mxu1 %vm360_vm1, %v6070_v12  ;;  %v6085_v8 = vsel %vm360_vm1, %v6069_v36, 0  ;;  %v6566_v12 = vsub.s32 4, %v15870_v15 }
 0x23a   : > { %6144 = vmatpush1.bf16.msra.mxu1 %v6085_v8  ;;  %13200 = vmatmul.mubr.msk.bf16.vlgmr.msra.gmra.mrb[0].mxu0 %vm356_vm2, %v13198_v39 }
 0x23b   : > { %v6061_v37 = vpop.permute.xlu1 %6060  ;;  %v6059_v44 = vpop.permute.xlu0 %6058  ;;  %6216 = vmatprep.mubr.bf16.mxu0 %v14508_v7 }
 0x23c   : > { %v6071_v45 = vsel %vm17456_vm14, %v6057_v35, %v6059_v44  ;;  %v6072_v40 = vsel %vm17456_vm14, %v6059_v44, %v6061_v37 }
 0x23d   : > { %13203 = vmatprep.subr.msk.bf16.mxu0 %vm360_vm1, %v6072_v40  ;;  %v6091_v41 = vsel %vm360_vm1, %v6071_v45, 0  ;;  %v6570_v45 = vsub.s32 5, %v15870_v15 }
 0x23e   : > { %6185 = vmatpush1.bf16.msra.mxu0 %v6091_v41  ;;  %13202 = vmatmul.mubr.msk.bf16.vlgmr.msra.gmra.mrb[0].mxu1 %vm356_vm2, %v13198_v39  ;;  %v6559_v41 = vrot.slane %v15878_v24, %v6558_v5 }
 0x23f   : > { %v6065_v42 = vpop.permute.xlu1 %6064  ;;  %v6063_v52 = vpop.permute.xlu0 %6062  ;;  %6257 = vmatprep.mubr.bf16.mxu1 %v14508_v7 }
 0x240   : > { %v6073_v53 = vsel %vm17456_vm14, %v6061_v37, %v6063_v52  ;;  %v6074_v13 = vsel %vm17456_vm14, %v6063_v52, %v6065_v42  ;;  %vm6597_vm14 = vcmask 1044288  }
 0x241   : > { %13205 = vmatprep.subr.msk.bf16.mxu1 %vm360_vm1, %v6074_v13  ;;  %v6097_v11 = vsel %vm360_vm1, %v6073_v53, 0  ;;  %vm6599_vm12 = vmor %vm6598_vm13, %vm6597_vm14 }
 0x242   : > { %6226 = vmatpush1.bf16.msra.mxu1 %v6097_v11  ;;  %13204 = vmatmul.mubr.msk.bf16.vlgmr.msra.gmra.mrb[4].mxu0 %vm356_vm2, %v13198_v39  ;;  %6600 = vst.msk [vmem:[#allocation2 + $0x20] sm:$0xff] %vm6599_vm12, %v14508_v7  ;;  %vm6636_vm12 = vmor %vm6598_vm13, %vm360_vm1 }
 0x243   : > { %v6279_v58 = vpop.permute.xlu1 %6278  ;;  %v6277_v43 = vpop.permute.xlu0 %6276  ;;  %6362 = vmatprep.mubr.bf16.mxu0 %v14508_v7 }
 0x244   : > { %v6295_v57 = vsel %vm6294_vm15, %v6277_v43, %v6279_v58 }
 0x245   : > { %v6307_v49 = vsel %vm360_vm1, %v6295_v57, 0 }
 0x246   : > { %13206 = vmatmul.mubr.msk.bf16.vlgmr.msra.gmra.mrb[4].mxu1 %vm356_vm2, %v13198_v39 }
 0x247   : > { %v6283_v46 = vpop.permute.xlu1 %6282  ;;  %v6281_v47 = vpop.permute.xlu0 %6280  ;;  %6403 = vmatprep.mubr.bf16.mxu1 %v14508_v7 }
 0x248   : > { %v6296_v48 = vsel %vm6294_vm15, %v6279_v58, %v6281_v47  ;;  %v6297_v9 = vsel %vm6294_vm15, %v6281_v47, %v6283_v46  ;;  %v6563_v58 = vrot.slane %v15878_v24, %v6562_v34 }
 0x249   : > { %13208 = vmatprep.subr.msk.bf16.mxu0 %vm360_vm1, %v6296_v48  ;;  %v6313_v56 = vsel %vm360_vm1, %v6297_v9, 0  ;;  %v6567_v48 = vrot.slane %v15878_v24, %v6566_v12 }
 0x24a   : > { %6331 = vmatpush1.bf16.msra.mxu0 %v6307_v49 }
 0x24b   : > { %v6287_v51 = vpop.permute.xlu1 %6286  ;;  %v6285_v54 = vpop.permute.xlu0 %6284 }
 0x24c   : > { %v6298_v55 = vsel %vm6294_vm15, %v6283_v46, %v6285_v54  ;;  %v6299_v59 = vsel %vm6294_vm15, %v6285_v54, %v6287_v51 }
 0x24d   : > { %13209 = vmatmul.mubr.msk.bf16.vlgmr.msra.gmra.mrb[0].mxu0 %vm356_vm2, %v13207_v50  ;;  %13210 = vmatprep.subr.msk.bf16.mxu1 %vm360_vm1, %v6298_v55  ;;  %v6319_v63 = vsel %vm360_vm1, %v6299_v59, 0 }
 0x24e   : > { %6372 = vmatpush1.bf16.msra.mxu1 %v6313_v56  ;;  %6444 = vmatprep.mubr.bf16.mxu0 %v14508_v7 }
 0x24f   : > { %v6289_v60 = vpop.permute.xlu0 %6288 }
 0x250   : > { %v6300_v61 = vsel %vm6294_vm15, %v6287_v51, %v6289_v60  ;;  %v6291_v62 = vpop.permute.xlu1 %6290  ;;  %v6571_v51 = vrot.slane %v15878_v24, %v6570_v45 }
 0x251   : > { %13211 = vmatmul.mubr.msk.bf16.vlgmr.msra.gmra.mrb[0].mxu1 %vm356_vm2, %v13207_v50  ;;  %13212 = vmatprep.subr.msk.bf16.mxu0 %vm360_vm1, %v6300_v61  ;;  %v6301_v0 = vsel %vm6294_vm15, %v6289_v60, %v6291_v62  ;;  %v6574_v61 = vsub.s32 6, %v15870_v15 }
 0x252   : > { %6413 = vmatpush1.bf16.msra.mxu0 %v6319_v63  ;;  %6485 = vmatprep.mubr.bf16.mxu1 %v14508_v7  ;;  %v6325_v6 = vsel %vm360_vm1, %v6301_v0, 0 }
 0x253   : > { %v6293_v1 = vpop.permute.xlu0 %6292 }
 0x254   : > { %v6302_v10 = vsel %vm6294_vm15, %v6291_v62, %v6293_v1 }
 0x255   : > { %13213 = vmatmul.mubr.msk.bf16.vlgmr.msra.gmra.mrb[4].mxu0 %vm356_vm2, %v13207_v50  ;;  %13214 = vmatprep.subr.msk.bf16.mxu1 %vm360_vm1, %v6302_v10 }
 0x256   : > { %6454 = vmatpush1.bf16.msra.mxu1 %v6325_v6  ;;  %6747 = vmatprep.mubr.bf16.mxu0 %v14508_v7  ;;  %v6578_v6 = vsub.s32 7, %v15870_v15 }
 0x259   : > { %13215 = vmatmul.mubr.msk.bf16.vlgmr.msra.gmra.mrb[4].mxu1 %vm356_vm2, %v13207_v50 }
 0x25a   : > { %6788 = vmatprep.mubr.bf16.mxu1 %v14508_v7 }
 0x261   : > { %v6506_v16 = vpop.permute.xlu1 %6505 }
 0x264   : > { %v15872_v18 = vpop.permute.xlu0 %6519 }
 0x320   : > { %v6364_v17 = vpop.f32.mrb[0].mxu0 }
 0x321   : > { %v6508_v19 = vmul.f32 %v6506_v16, %v6364_v17  ;;  %v6366_v20 = vpop.f32.mrb[1].mxu0 }
 0x322   : > { %v6509_v22 = vmul.f32 %v6506_v16, %v6366_v20  ;;  %v6368_v23 = vpop.f32.mrb[2].mxu0 }
 0x323   : > { %v6522_v26 = vadd.f32 %v15872_v18, %v6508_v19  ;;  %v6369_v3 = vpop.f32.mrb[3].mxu0 }
 0x324   : > { %v6523_v27 = vadd.f32 %v15872_v18, %v6509_v22  ;;  %v6405_v28 = vpop.f32.mrb[0].mxu1  ;;  %v6579_v3 = vrot.slane %v15878_v24, %v6578_v6 }
 0x325   : > { %v6530_v29 = vmax.f32 %v6522_v26, 0.0  ;;  %v6510_v30 = vmul.f32 %v6506_v16, %v6405_v28  ;;  %v6407_v31 = vpop.f32.mrb[1].mxu1  ;;  %v6575_v26 = vrot.slane %v15878_v24, %v6574_v61 }
 0x326   : > { %v6531_v32 = vmax.f32 %v6523_v27, 0.0  ;;  %v6511_v33 = vmul.f32 %v6506_v16, %v6407_v31  ;;  %v6409_v35 = vpop.f32.mrb[2].mxu1 }
 0x327   : > { %v6538_v38 = vmin.f32 %v6530_v29, 6.0  ;;  %v6524_v39 = vadd.f32 %v15872_v18, %v6510_v30  ;;  %v6410_v36 = vpop.f32.mrb[3].mxu1 }
 0x328   : > { %v6539_v8 = vmin.f32 %v6531_v32, 6.0  ;;  %v6525_v37 = vadd.f32 %v15872_v18, %v6511_v33  ;;  %v6446_v44 = vpop.f32.mrb[4].mxu0 }
 0x329   : > { %v6532_v40 = vmax.f32 %v6524_v39, 0.0  ;;  %v15892_v42 = vmul.f32 %v6551_v2, %v6538_v38  ;;  %v6512_v52 = vmul.f32 %v6506_v16, %v6446_v44  ;;  %v6448_v53 = vpop.f32.mrb[5].mxu0 }
 0x32a   : > { %v15894_v13 = vmul.f32 %v6555_v4, %v6539_v8  ;;  %v6533_v11 = vmax.f32 %v6525_v37, 0.0  ;;  %v6513_v43 = vmul.f32 %v6506_v16, %v6448_v53  ;;  %v6450_v57 = vpop.f32.mrb[6].mxu0 }
 0x32b   : > { %v6540_v46 = vmin.f32 %v6532_v40, 6.0  ;;  %v6526_v47 = vadd.f32 %v15872_v18, %v6512_v52  ;;  %v6451_v49 = vpop.f32.mrb[7].mxu0 }
 0x32c   : > { %v6541_v9 = vmin.f32 %v6533_v11, 6.0  ;;  %v6527_v50 = vadd.f32 %v15872_v18, %v6513_v43  ;;  %v6487_v54 = vpop.f32.mrb[4].mxu1  ;;  %v13501_v55 = vpack.c.bf16 %v15894_v13, %v15892_v42 }
 0x32d   : > { %v15903_v56 = vmul.f32 %v6559_v41, %v6540_v46  ;;  %v6534_v59 = vmax.f32 %v6526_v47, 0.0  ;;  %v6514_v60 = vmul.f32 %v6506_v16, %v6487_v54  ;;  %v6489_v62 = vpop.f32.mrb[5].mxu1 }
 0x32e   : > { %v15906_v63 = vmul.f32 %v6563_v58, %v6541_v9  ;;  %v6535_v0 = vmax.f32 %v6527_v50, 0.0  ;;  %v6515_v1 = vmul.f32 %v6506_v16, %v6489_v62  ;;  %v6491_v10 = vpop.f32.mrb[6].mxu1  ;;  %6633 = vst [vmem:[#allocation2 + $0x4] sm:$0xff] %v13501_v55  ;;  %v13220_v58 = vld [vmem:[%s17405_s4 + $0x4] sm:$0xf] }
 0x32f   : > { %v6542_v14 = vmin.f32 %v6534_v59, 6.0  ;;  %v6528_v17 = vadd.f32 %v15872_v18, %v6514_v60  ;;  %v6492_v19 = vpop.f32.mrb[7].mxu1 }
 0x330   : > { %v13502_v20 = vpack.c.bf16 %v15906_v63, %v15903_v56  ;;  %v6543_v21 = vmin.f32 %v6535_v0, 6.0  ;;  %v6529_v22 = vadd.f32 %v15872_v18, %v6515_v1 }
 0x331   : > { %v15913_v23 = vmul.f32 %v6567_v48, %v6542_v14  ;;  %v6536_v25 = vmax.f32 %v6528_v17, 0.0 }
 0x332   : > { %6634 = vst [vmem:[#allocation2 + $0xc] sm:$0xff] %v13502_v20  ;;  %v15916_v16 = vmul.f32 %v6571_v51, %v6543_v21  ;;  %v6537_v15 = vmax.f32 %v6529_v22, 0.0 }
 0x333   : > { %v6544_v27 = vmin.f32 %v6536_v25, 6.0 }
 0x334   : > { %v13503_v28 = vpack.c.bf16 %v15916_v16, %v15913_v23  ;;  %v6545_v29 = vmin.f32 %v6537_v15, 6.0 }
 0x335   : > { %v6594_v30 = vmul.f32 %v6575_v26, %v6544_v27  ;;  %v6638_v2 = vld [vmem:[#allocation2] sm:$0xff] }
 0x336   : > { %6635 = vst [vmem:[#allocation2 + $0x14] sm:$0xff] %v13503_v28  ;;  %v6595_v18 = vmul.f32 %v6579_v3, %v6545_v29  ;;  %v15921_v5 = vcombine.low %v6638_v2, %v6638_v2  ;;  %v15929_v4 = vcombine.high %v6638_v2, %v6638_v2 }
 0x338   : > { %v13504_v31 = vpack.c.bf16 %v6595_v18, %v6594_v30  ;;  %6665 = vrot.lane.b32.xlu1 %v15921_v5, %s14507_s22  ;;  %v6642_v18 = vld [vmem:[%s17405_s4] sm:$0xf] }
 0x339   : > { %v6639_v32 = vld [vmem:[#allocation2 + $0x8] sm:$0xff] }
 0x33a   : > { %6637 = vst.msk [vmem:[#allocation2 + $0x1c] sm:$0xff] %vm6636_vm12, %v13504_v31  ;;  %v15927_v24 = vcombine.low %v6639_v32, %v6639_v32  ;;  %v15935_v33 = vcombine.high %v6639_v32, %v6639_v32 }
 0x33c   : > { %6669 = vrot.lane.b32.xlu0 %v15927_v24, %s14507_s22  ;;  %6667 = vrot.lane.b32.xlu1 %v15929_v4, %s14507_s22 }
 0x33d   : > { %v7319_v34 = vld [vmem:[#allocation2 + $0x10] sm:$0xff] }
 0x33e   : > { %v15957_v35 = vcombine.low %v7319_v34, %v7319_v34  ;;  %v15963_v38 = vcombine.high %v7319_v34, %v7319_v34 }
 0x340   : > { %6879 = vrot.lane.b32.xlu0 %v15921_v5, %s14509_s23  ;;  %6671 = vrot.lane.b32.xlu1 %v15935_v33, %s14507_s22 }
 0x341   : > { %v7320_v39 = vld [vmem:[#allocation2 + $0x18] sm:$0xff]  ;;  %v16021_v8 = vld [vmem:[#allocation2 + $0x20] ss:$0 sps:$4 sm:$0xff]  }
 0x342   : > { %v15969_v36 = vcombine.low %v7320_v39, %v7320_v39  ;;  %v15971_v12 = vcombine.high %v7320_v39, %v7320_v39 }
 0x344   : > { %6883 = vrot.lane.b32.xlu0 %v15927_v24, %s14509_s23  ;;  %6881 = vrot.lane.b32.xlu1 %v15929_v4, %s14509_s23 }
 0x348   : > { %7095 = vrot.lane.b32.xlu0 %v15921_v5, %s14510_s24  ;;  %6885 = vrot.lane.b32.xlu1 %v15935_v33, %s14509_s23 }
 0x34c   : > { %7099 = vrot.lane.b32.xlu0 %v15927_v24, %s14510_s24  ;;  %7097 = vrot.lane.b32.xlu1 %v15929_v4, %s14510_s24 }
 0x350   : > { %7347 = vrot.lane.b32.xlu0 %v15921_v5, %s14511_s25  ;;  %7101 = vrot.lane.b32.xlu1 %v15935_v33, %s14510_s24 }
 0x354   : > { %6673 = vrot.lane.b32.xlu0 %v15957_v35, %s14507_s22  ;;  %7349 = vrot.lane.b32.xlu1 %v15929_v4, %s14511_s25 }
 0x358   : > { %7351 = vrot.lane.b32.xlu0 %v15927_v24, %s14511_s25  ;;  %6675 = vrot.lane.b32.xlu1 %v15963_v38, %s14507_s22 }
 0x35c   : > { %6677 = vrot.lane.b32.xlu0 %v15969_v36, %s14507_s22  ;;  %6679 = vrot.lane.b32.xlu1 %v15971_v12, %s14507_s22  ;;  %s17461_s22 = smov 89  }
 0x360   : > { %7576 = vrot.lane.b32.xlu0 %v15929_v4, %s14512_s26  ;;  %7353 = vrot.lane.b32.xlu1 %v15935_v33, %s14511_s25 }
 0x364   : > { %6887 = vrot.lane.b32.xlu0 %v15957_v35, %s14509_s23  ;;  %7574 = vrot.lane.b32.xlu1 %v15921_v5, %s14512_s26 }
 0x368   : > { %6891 = vrot.lane.b32.xlu0 %v15969_v36, %s14509_s23  ;;  %6889 = vrot.lane.b32.xlu1 %v15963_v38, %s14509_s23 }
 0x36c   : > { %7580 = vrot.lane.b32.xlu0 %v15935_v33, %s14512_s26  ;;  %6893 = vrot.lane.b32.xlu1 %v15971_v12, %s14509_s23  ;;  %s17470_s23 = smov 39  }
 0x370   : > { %7801 = vrot.lane.b32.xlu0 %v15921_v5, %s14513_s10  ;;  %7578 = vrot.lane.b32.xlu1 %v15927_v24, %s14512_s26 }
 0x374   : > { %7103 = vrot.lane.b32.xlu0 %v15957_v35, %s14510_s24  ;;  %7803 = vrot.lane.b32.xlu1 %v15929_v4, %s14513_s10 }
 0x378   : > { %7805 = vrot.lane.b32.xlu0 %v15927_v24, %s14513_s10  ;;  %7105 = vrot.lane.b32.xlu1 %v15963_v38, %s14510_s24 }
 0x37c   : > { %7107 = vrot.lane.b32.xlu0 %v15969_v36, %s14510_s24  ;;  %7109 = vrot.lane.b32.xlu1 %v15971_v12, %s14510_s24  ;;  %s17497_s24 = smov 29  }
 0x380   : > { %8030 = vrot.lane.b32.xlu0 %v15929_v4, %s14514_s12  ;;  %7807 = vrot.lane.b32.xlu1 %v15935_v33, %s14513_s10 }
 0x384   : > { %7355 = vrot.lane.b32.xlu0 %v15957_v35, %s14511_s25  ;;  %8028 = vrot.lane.b32.xlu1 %v15921_v5, %s14514_s12 }
 0x388   : > { %7359 = vrot.lane.b32.xlu0 %v15969_v36, %s14511_s25  ;;  %7357 = vrot.lane.b32.xlu1 %v15963_v38, %s14511_s25 }
 0x38c   : > { %7363 = vrot.lane.b32.xlu0 %v16021_v8, %s14511_s25  ;;  %7361 = vrot.lane.b32.xlu1 %v15971_v12, %s14511_s25  ;;  %s17462_s25 = smov 11  }
 0x390   : > { %8034 = vrot.lane.b32.xlu0 %v15935_v33, %s14514_s12  ;;  %8032 = vrot.lane.b32.xlu1 %v15927_v24, %s14514_s12 }
 0x394   : > { %8255 = vrot.lane.b32.xlu0 %v15921_v5, %s14515_s13  ;;  %7582 = vrot.lane.b32.xlu1 %v15957_v35, %s14512_s26 }
 0x398   : > { %7584 = vrot.lane.b32.xlu0 %v15963_v38, %s14512_s26  ;;  %7586 = vrot.lane.b32.xlu1 %v15969_v36, %s14512_s26 }
 0x39c   : > { %7588 = vrot.lane.b32.xlu0 %v15971_v12, %s14512_s26  ;;  %7590 = vrot.lane.b32.xlu1 %v16021_v8, %s14512_s26  ;;  %s17526_s26 = smov 18  }
 0x3a0   : > { %8259 = vrot.lane.b32.xlu0 %v15927_v24, %s14515_s13  ;;  %8257 = vrot.lane.b32.xlu1 %v15929_v4, %s14515_s13 }
 0x3a4   : > { %7809 = vrot.lane.b32.xlu0 %v15957_v35, %s14513_s10  ;;  %8261 = vrot.lane.b32.xlu1 %v15935_v33, %s14515_s13 }
 0x3a8   : > { %7813 = vrot.lane.b32.xlu0 %v15969_v36, %s14513_s10  ;;  %7811 = vrot.lane.b32.xlu1 %v15963_v38, %s14513_s10 }
 0x3aa   : > { %v6666_v37 = vpop.permute.xlu1 %6665 }
 0x3ac   : > { %7817 = vrot.lane.b32.xlu0 %v16021_v8, %s14513_s10  ;;  %7815 = vrot.lane.b32.xlu1 %v15971_v12, %s14513_s10  ;;  %s17500_s10 = smov 28  }
 0x3ae   : > { %v6670_v44 = vpop.permute.xlu0 %6669  ;;  %v6668_v45 = vpop.permute.xlu1 %6667 }
 0x3af   : > { %v6681_v40 = vsel %vm348_vm0, %v6666_v37, %v6668_v45  ;;  %v6682_v41 = vsel %vm348_vm0, %v6668_v45, %v6670_v44 }
 0x3b0   : > { %8484 = vrot.lane.b32.xlu0 %v15929_v4, %s17461_s22  ;;  %8482 = vrot.lane.b32.xlu1 %v15921_v5, %s17461_s22  ;;  %v6692_v52 = vsel %vm360_vm1, %v6681_v40, 0 }
 0x3b1   : > { %13229 = vmatprep.subr.msk.bf16.mxu0 %vm360_vm1, %v6682_v41 }
 0x3b2   : > { %6716 = vmatpush1.bf16.msra.mxu0 %v6692_v52  ;;  %v6880_v53 = vpop.permute.xlu0 %6879  ;;  %v6672_v11 = vpop.permute.xlu1 %6671 }
 0x3b3   : > { %v6683_v51 = vsel %vm348_vm0, %v6670_v44, %v6672_v11 }
 0x3b4   : > { %8038 = vrot.lane.b32.xlu0 %v15963_v38, %s14514_s12  ;;  %8036 = vrot.lane.b32.xlu1 %v15957_v35, %s14514_s12  ;;  %v6698_v60 = vsel %vm360_vm1, %v6683_v51, 0 }
 0x3b5   : > { %13230 = vmatmul.mubr.msk.bf16.vlgmr.msra.gmra.mrb[8].mxu0 %vm356_vm2, %v13220_v58 }
 0x3b6   : > { %v6884_v43 = vpop.permute.xlu0 %6883  ;;  %v6882_v57 = vpop.permute.xlu1 %6881  ;;  %6829 = vmatprep.mubr.bf16.mxu0 %v14508_v7 }
 0x3b7   : > { %v6895_v20 = vsel %vm565_vm3, %v6880_v53, %v6882_v57  ;;  %v6896_v22 = vsel %vm565_vm3, %v6882_v57, %v6884_v43 }
 0x3b8   : > { %8042 = vrot.lane.b32.xlu0 %v15971_v12, %s14514_s12  ;;  %8040 = vrot.lane.b32.xlu1 %v15969_v36, %s14514_s12  ;;  %v6906_v26 = vsel %vm360_vm1, %v6895_v20, 0 }
 0x3ba   : > { %v16080_v46 = vpop.permute.xlu0 %7095  ;;  %v6886_v47 = vpop.permute.xlu1 %6885 }
 0x3bb   : > { %v6897_v15 = vsel %vm565_vm3, %v6884_v43, %v6886_v47 }
 0x3bc   : > { %8488 = vrot.lane.b32.xlu0 %v15935_v33, %s17461_s22  ;;  %8044 = vrot.lane.b32.xlu1 %v16021_v8, %s14514_s12  ;;  %v6912_v29 = vsel %vm360_vm1, %v6897_v15, 0  ;;  %s17463_s12 = smov 10  }
 0x3be   : > { %v16086_v48 = vpop.permute.xlu0 %7099  ;;  %v16088_v49 = vpop.permute.xlu1 %7097 }
 0x3bf   : > { %v7112_v44 = vsel %vm782_vm4, %v16088_v49, %v16086_v48  ;;  %v7111_v41 = vsel %vm782_vm4, %v16080_v46, %v16088_v49 }
 0x3c0   : > { %8709 = vrot.lane.b32.xlu0 %v15921_v5, %s17462_s25  ;;  %8486 = vrot.lane.b32.xlu1 %v15927_v24, %s17461_s22 }
 0x3c2   : > { %v16094_v9 = vpop.permute.xlu0 %7347  ;;  %v16096_v50 = vpop.permute.xlu1 %7101 }
 0x3c4   : > { %8263 = vrot.lane.b32.xlu0 %v15957_v35, %s14515_s13  ;;  %8711 = vrot.lane.b32.xlu1 %v15929_v4, %s17462_s25 }
 0x3c6   : > { %v6674_v54 = vpop.permute.xlu0 %6673  ;;  %v16103_v55 = vpop.permute.xlu1 %7349 }
 0x3c7   : > { %v6684_v59 = vsel %vm348_vm0, %v6672_v11, %v6674_v54  ;;  %v7113_v11 = vsel %vm782_vm4, %v16086_v48, %v16096_v50 }
 0x3c8   : > { %8267 = vrot.lane.b32.xlu0 %v15969_v36, %s14515_s13  ;;  %8265 = vrot.lane.b32.xlu1 %v15963_v38, %s14515_s13 }
 0x3c9   : > { %13231 = vmatprep.subr.msk.bf16.mxu1 %vm360_vm1, %v6684_v59 }
 0x3ca   : > { %6757 = vmatpush1.bf16.msra.mxu1 %v6698_v60  ;;  %v16112_v61 = vpop.permute.xlu0 %7351  ;;  %v6676_v62 = vpop.permute.xlu1 %6675 }
 0x3cb   : > { %v6685_v0 = vsel %vm348_vm0, %v6674_v54, %v6676_v62 }
 0x3cc   : > { %8271 = vrot.lane.b32.xlu0 %v16021_v8, %s14515_s13  ;;  %8269 = vrot.lane.b32.xlu1 %v15971_v12, %s14515_s13  ;;  %v6704_v19 = vsel %vm360_vm1, %v6685_v0, 0 }
 0x3cd   : > { %13232 = vmatmul.mubr.msk.bf16.vlgmr.msra.gmra.mrb[8].mxu1 %vm356_vm2, %v13220_v58 }
 0x3ce   : > { %v6678_v1 = vpop.permute.xlu0 %6677  ;;  %v6680_v6 = vpop.permute.xlu1 %6679  ;;  %6870 = vmatprep.mubr.bf16.mxu1 %v14508_v7 }
 0x3cf   : > { %v6687_v10 = vsel %vm348_vm0, %v6678_v1, %v6680_v6  ;;  %13235 = vmatprep.subr.msk.bf16.mxu1 %vm360_vm1, %v6680_v6  ;;  %v6686_v14 = vsel %vm348_vm0, %v6676_v62, %v6678_v1  ;;  %v7366_v6 = vsel %vm1037_vm5, %v16103_v55, %v16112_v61  ;;  %vm17471_vm0 = vcmask 80896  }
 0x3d0   : > { %8713 = vrot.lane.b32.xlu0 %v15927_v24, %s17462_s25  ;;  %8715 = vrot.lane.b32.xlu1 %v15935_v33, %s17462_s25  ;;  %v6710_v17 = vsel %vm360_vm1, %v6687_v10, 0  ;;  %v7365_v10 = vsel %vm1037_vm5, %v16094_v9, %v16103_v55 }
 0x3d1   : > { %13233 = vmatprep.subr.msk.bf16.mxu0 %vm360_vm1, %v6686_v14  ;;  %6839 = vmatpush1.bf16.msra.mxu1 %v6710_v17  ;;  %v7377_v9 = vsel %vm360_vm1, %v7365_v10, 0  ;;  %v13281_v10 = vld [vmem:[%s17405_s4 + $0x14] sm:$0xf] }
 0x3d2   : > { %6798 = vmatpush1.bf16.msra.mxu0 %v6704_v19  ;;  %v16132_v21 = vpop.permute.xlu0 %7576  ;;  %v16135_v25 = vpop.permute.xlu1 %7353 }
 0x3d3   : > { %13237 = vmatprep.subr.msk.bf16.mxu0 %vm360_vm1, %v6896_v22  ;;  %v7367_v19 = vsel %vm1037_vm5, %v16112_v61, %v16135_v25 }
 0x3d4   : > { %8492 = vrot.lane.b32.xlu0 %v15963_v38, %s17461_s22  ;;  %8490 = vrot.lane.b32.xlu1 %v15957_v35, %s17461_s22  ;;  %v7383_v61 = vsel %vm360_vm1, %v7367_v19, 0 }
 0x3d5   : > { %13234 = vmatmul.mubr.msk.bf16.vlgmr.msra.gmra.mrb[12].mxu0 %vm356_vm2, %v13220_v58  ;;  %13236 = vmatmul.mubr.msk.bf16.vlgmr.msra.gmra.mrb[12].mxu1 %vm356_vm2, %v13220_v58  ;;  %v7122_v58 = vsel %vm360_vm1, %v7111_v41, 0 }
 0x3d6   : > { %6930 = vmatpush1.bf16.msra.mxu0 %v6906_v26  ;;  %v6888_v3 = vpop.permute.xlu0 %6887  ;;  %v16146_v27 = vpop.permute.xlu1 %7574  ;;  %6961 = vmatprep.mubr.bf16.mxu0 %v14508_v7 }
 0x3d7   : > { %v6898_v28 = vsel %vm565_vm3, %v6886_v47, %v6888_v3  ;;  %7002 = vmatprep.mubr.bf16.mxu1 %v14508_v7  ;;  %v7128_v47 = vsel %vm360_vm1, %v7113_v11, 0 }
 0x3d8   : > { %8496 = vrot.lane.b32.xlu0 %v15971_v12, %s17461_s22  ;;  %8494 = vrot.lane.b32.xlu1 %v15969_v36, %s17461_s22 }
 0x3d9   : > { %13239 = vmatprep.subr.msk.bf16.mxu1 %vm360_vm1, %v6898_v28 }
 0x3da   : > { %6971 = vmatpush1.bf16.msra.mxu1 %v6912_v29  ;;  %v6892_v30 = vpop.permute.xlu0 %6891  ;;  %v6890_v2 = vpop.permute.xlu1 %6889 }
 0x3db   : > { %v6899_v31 = vsel %vm565_vm3, %v6888_v3, %v6890_v2  ;;  %v6900_v32 = vsel %vm565_vm3, %v6890_v2, %v6892_v30 }
 0x3dc   : > { %8938 = vrot.lane.b32.xlu0 %v15929_v4, %s17463_s12  ;;  %8498 = vrot.lane.b32.xlu1 %v16021_v8, %s17461_s22  ;;  %v6918_v34 = vsel %vm360_vm1, %v6899_v31, 0  ;;  %s17465_s22 = smov 1  }
 0x3dd   : > { %13238 = vmatmul.mubr.msk.bf16.vlgmr.msra.gmra.mrb[8].mxu0 %vm356_vm2, %v6642_v18  ;;  %13240 = vmatmul.mubr.msk.bf16.vlgmr.msra.gmra.mrb[8].mxu1 %vm356_vm2, %v6642_v18 }
 0x3de   : > { %13241 = vmatprep.subr.msk.bf16.mxu0 %vm360_vm1, %v6900_v32  ;;  %v16170_v39 = vpop.permute.xlu0 %7580  ;;  %v6894_v37 = vpop.permute.xlu1 %6893  ;;  %7043 = vmatprep.mubr.bf16.mxu0 %v14508_v7 }
 0x3df   : > { %7012 = vmatpush1.bf16.msra.mxu0 %v6918_v34  ;;  %v6901_v45 = vsel %vm565_vm3, %v6892_v30, %v6894_v37  ;;  %13243 = vmatprep.subr.msk.bf16.mxu1 %vm360_vm1, %v6894_v37  ;;  %v7592_v37 = vsel %vm1265_vm6, %v16146_v27, %v16132_v21  ;;  %vm17473_vm3 = vmmov %vm17471_vm0 }
 0x3e0   : > { %13246 = vmatprep.subr.msk.bf16.mxu0 %vm360_vm1, %v7112_v44  ;;  %8942 = vrot.lane.b32.xlu0 %v15935_v33, %s17463_s12  ;;  %v6924_v40 = vsel %vm360_vm1, %v6901_v45, 0 }
 0x3e1   : > { %8936 = vrot.lane.b32.xlu1 %v15921_v5, %s17463_s12  ;;  %7053 = vmatpush1.bf16.msra.mxu1 %v6924_v40 }
 0x3e2   : > { %v16187_v52 = vpop.permute.xlu0 %7801  ;;  %v16189_v53 = vpop.permute.xlu1 %7578  ;;  %7084 = vmatprep.mubr.bf16.mxu1 %v14508_v7 }
 0x3e3   : > { %v7593_v2 = vsel %vm1265_vm6, %v16132_v21, %v16189_v53  ;;  %v7594_v40 = vsel %vm1265_vm6, %v16189_v53, %v16170_v39 }
 0x3e4   : > { %8717 = vrot.lane.b32.xlu0 %v15957_v35, %s17462_s25 }
 0x3e5   : > { %8940 = vrot.lane.b32.xlu1 %v15927_v24, %s17463_s12  ;;  %13242 = vmatmul.mubr.msk.bf16.vlgmr.msra.gmra.mrb[12].mxu0 %vm356_vm2, %v6642_v18 }
 0x3e6   : > { %13244 = vmatmul.mubr.msk.bf16.vlgmr.msra.gmra.mrb[12].mxu1 %vm356_vm2, %v6642_v18  ;;  %7146 = vmatpush1.bf16.msra.mxu0 %v7122_v58  ;;  %v7104_v43 = vpop.permute.xlu0 %7103  ;;  %v16202_v57 = vpop.permute.xlu1 %7803 }
 0x3e7   : > { %v7114_v46 = vsel %vm782_vm4, %v16096_v50, %v7104_v43  ;;  %7177 = vmatprep.mubr.bf16.mxu0 %v14508_v7  ;;  %7218 = vmatprep.mubr.bf16.mxu1 %v14508_v7  ;;  %v13245_v50 = vld [vmem:[%s17405_s4 + $0x8] sm:$0xf] }
 0x3e8   : > { %8721 = vrot.lane.b32.xlu0 %v15969_v36, %s17462_s25  ;;  %13248 = vmatprep.subr.msk.bf16.mxu1 %vm360_vm1, %v7114_v46 }
 0x3e9   : > { %8719 = vrot.lane.b32.xlu1 %v15963_v38, %s17462_s25  ;;  %7187 = vmatpush1.bf16.msra.mxu1 %v7128_v47 }
 0x3ea   : > { %v16214_v48 = vpop.permute.xlu0 %7805  ;;  %v7106_v49 = vpop.permute.xlu1 %7105 }
 0x3eb   : > { %v7115_v51 = vsel %vm782_vm4, %v7104_v43, %v7106_v49 }
 0x3ec   : > { %8725 = vrot.lane.b32.xlu0 %v16021_v8, %s17462_s25  ;;  %v7134_v0 = vsel %vm360_vm1, %v7115_v51, 0 }
 0x3ed   : > { %8723 = vrot.lane.b32.xlu1 %v15971_v12, %s17462_s25  ;;  %13247 = vmatmul.mubr.msk.bf16.vlgmr.msra.gmra.mrb[8].mxu0 %vm356_vm2, %v13245_v50  ;;  %s17466_s25 = smov 127  }
 0x3ee   : > { %13249 = vmatmul.mubr.msk.bf16.vlgmr.msra.gmra.mrb[8].mxu1 %vm356_vm2, %v13245_v50  ;;  %v7108_v54 = vpop.permute.xlu0 %7107  ;;  %v7110_v59 = vpop.permute.xlu1 %7109  ;;  %7259 = vmatprep.mubr.bf16.mxu0 %v14508_v7 }
 0x3ef   : > { %v7117_v60 = vsel %vm782_vm4, %v7108_v54, %v7110_v59  ;;  %13252 = vmatprep.subr.msk.bf16.mxu1 %vm360_vm1, %v7110_v59  ;;  %v7116_v62 = vsel %vm782_vm4, %v7106_v49, %v7108_v54  ;;  %7300 = vmatprep.mubr.bf16.mxu1 %v14508_v7  ;;  %v7820_v49 = vsel %vm1493_vm7, %v16202_v57, %v16214_v48  ;;  %vm17474_vm4 = vmmov %vm17471_vm0 }
 0x3f0   : > { %9163 = vrot.lane.b32.xlu0 %v15921_v5, %s17464_s21  ;;  %13250 = vmatprep.subr.msk.bf16.mxu0 %vm360_vm1, %v7116_v62  ;;  %v7140_v1 = vsel %vm360_vm1, %v7117_v60, 0  ;;  %v7819_v60 = vsel %vm1493_vm7, %v16187_v52, %v16202_v57 }
 0x3f1   : > { %9165 = vrot.lane.b32.xlu1 %v15929_v4, %s17464_s21  ;;  %7228 = vmatpush1.bf16.msra.mxu0 %v7134_v0  ;;  %v7831_v52 = vsel %vm360_vm1, %v7819_v60, 0 }
 0x3f2   : > { %7269 = vmatpush1.bf16.msra.mxu1 %v7140_v1  ;;  %v16244_v14 = vpop.permute.xlu0 %8030  ;;  %13264 = vmatprep.subr.msk.bf16.mxu0 %vm360_vm1, %v7366_v6  ;;  %v16247_v17 = vpop.permute.xlu1 %7807 }
 0x3f4   : > { %9167 = vrot.lane.b32.xlu0 %v15927_v24, %s17464_s21 }
 0x3f5   : > { %8944 = vrot.lane.b32.xlu1 %v15957_v35, %s17463_s12  ;;  %13251 = vmatmul.mubr.msk.bf16.vlgmr.msra.gmra.mrb[12].mxu0 %vm356_vm2, %v13245_v50 }
 0x3f6   : > { %13253 = vmatmul.mubr.msk.bf16.vlgmr.msra.gmra.mrb[12].mxu1 %vm356_vm2, %v13245_v50  ;;  %7401 = vmatpush1.bf16.msra.mxu0 %v7377_v9  ;;  %v7356_v55 = vpop.permute.xlu0 %7355  ;;  %v16259_v20 = vpop.permute.xlu1 %8028 }
 0x3f7   : > { %v7368_v22 = vsel %vm1037_vm5, %v16135_v25, %v7356_v55  ;;  %7432 = vmatprep.mubr.bf16.mxu0 %v14508_v7  ;;  %7473 = vmatprep.mubr.bf16.mxu1 %v14508_v7  ;;  %v13254_v25 = vld [vmem:[%s17405_s4 + $0xc] sm:$0xf] }
 0x3f8   : > { %8946 = vrot.lane.b32.xlu0 %v15963_v38, %s17463_s12  ;;  %13266 = vmatprep.subr.msk.bf16.mxu1 %vm360_vm1, %v7368_v22 }
 0x3f9   : > { %8948 = vrot.lane.b32.xlu1 %v15969_v36, %s17463_s12  ;;  %7442 = vmatpush1.bf16.msra.mxu1 %v7383_v61 }
 0x3fa   : > { %v7360_v26 = vpop.permute.xlu0 %7359  ;;  %v7358_v15 = vpop.permute.xlu1 %7357 }
 0x3fb   : > { %v7369_v3 = vsel %vm1037_vm5, %v7356_v55, %v7358_v15  ;;  %v7370_v28 = vsel %vm1037_vm5, %v7358_v15, %v7360_v26 }
 0x3fc   : > { %8950 = vrot.lane.b32.xlu0 %v15971_v12, %s17463_s12  ;;  %13268 = vmatprep.subr.msk.bf16.mxu0 %vm360_vm1, %v7370_v28  ;;  %v7389_v29 = vsel %vm360_vm1, %v7369_v3, 0 }
 0x3fd   : > { %8952 = vrot.lane.b32.xlu1 %v16021_v8, %s17463_s12  ;;  %13265 = vmatmul.mubr.msk.bf16.vlgmr.msra.gmra.mrb[8].mxu0 %vm356_vm2, %v13254_v25  ;;  %s17467_s12 = smov 119  }
 0x3fe   : > { %13267 = vmatmul.mubr.msk.bf16.vlgmr.msra.gmra.mrb[8].mxu1 %vm356_vm2, %v13254_v25  ;;  %7483 = vmatpush1.bf16.msra.mxu0 %v7389_v29  ;;  %v7364_v30 = vpop.permute.xlu0 %7363  ;;  %v7362_v18 = vpop.permute.xlu1 %7361 }
 0x3ff   : > { %13273 = vmatprep.subr.msk.bf16.mxu0 %vm360_vm1, %v7593_v2  ;;  %v7371_v31 = vsel %vm1037_vm5, %v7360_v26, %v7362_v18  ;;  %v7372_v32 = vsel %vm1037_vm5, %v7362_v18, %v7364_v30  ;;  %7514 = vmatprep.mubr.bf16.mxu0 %v14508_v7  ;;  %vm17475_vm5 = vmmov %vm17471_vm0 }
 0x400   : > { %9392 = vrot.lane.b32.xlu0 %v15929_v4, %s17465_s22  ;;  %13270 = vmatprep.subr.msk.bf16.mxu1 %vm360_vm1, %v7372_v32  ;;  %v7395_v34 = vsel %vm360_vm1, %v7371_v31, 0  ;;  %v7604_v4 = vsel %vm360_vm1, %v7592_v37, 0  ;;  %v13290_v31 = vld [vmem:[%s17405_s4 + $0x18] sm:$0xf] }
 0x401   : > { %9169 = vrot.lane.b32.xlu1 %v15935_v33, %s17464_s21  ;;  %7524 = vmatpush1.bf16.msra.mxu1 %v7395_v34 }
 0x402   : > { %v16300_v44 = vpop.permute.xlu0 %8034  ;;  %v16302_v45 = vpop.permute.xlu1 %8032  ;;  %7555 = vmatprep.mubr.bf16.mxu1 %v14508_v7 }
 0x403   : > { %v8047_v9 = vsel %vm1721_vm8, %v16244_v14, %v16302_v45  ;;  %v8048_v28 = vsel %vm1721_vm8, %v16302_v45, %v16300_v44 }
 0x404   : > { %9171 = vrot.lane.b32.xlu0 %v15957_v35, %s17464_s21  ;;  %v8064_v29 = vsel %vm360_vm1, %v8048_v28, 0 }
 0x405   : > { %9390 = vrot.lane.b32.xlu1 %v15921_v5, %s17465_s22  ;;  %13269 = vmatmul.mubr.msk.bf16.vlgmr.msra.gmra.mrb[12].mxu0 %vm356_vm2, %v13254_v25  ;;  %v7610_v5 = vsel %vm360_vm1, %v7594_v40, 0 }
 0x406   : > { %13271 = vmatmul.mubr.msk.bf16.vlgmr.msra.gmra.mrb[12].mxu1 %vm356_vm2, %v13254_v25  ;;  %7628 = vmatpush1.bf16.msra.mxu0 %v7604_v4  ;;  %v16315_v21 = vpop.permute.xlu0 %8255  ;;  %v7583_v27 = vpop.permute.xlu1 %7582  ;;  %v16431_v25 = vpack.c.bf16 %v15906_v63, %v15906_v63 }
 0x407   : > { %v7595_v41 = vsel %vm1265_vm6, %v16170_v39, %v7583_v27  ;;  %7659 = vmatprep.mubr.bf16.mxu0 %v14508_v7  ;;  %7700 = vmatprep.mubr.bf16.mxu1 %v14508_v7  ;;  %v13272_v39 = vld [vmem:[%s17405_s4 + $0x10] sm:$0xf] }
 0x408   : > { %9175 = vrot.lane.b32.xlu0 %v15969_v36, %s17464_s21  ;;  %13275 = vmatprep.subr.msk.bf16.mxu1 %vm360_vm1, %v7595_v41 }
 0x409   : > { %9173 = vrot.lane.b32.xlu1 %v15963_v38, %s17464_s21  ;;  %7669 = vmatpush1.bf16.msra.mxu1 %v7610_v5 }
 0x40a   : > { %v7585_v53 = vpop.permute.xlu0 %7584  ;;  %v7587_v11 = vpop.permute.xlu1 %7586 }
 0x40b   : > { %v7596_v58 = vsel %vm1265_vm6, %v7583_v27, %v7585_v53  ;;  %v7597_v43 = vsel %vm1265_vm6, %v7585_v53, %v7587_v11 }
 0x40c   : > { %9179 = vrot.lane.b32.xlu0 %v16021_v8, %s17464_s21  ;;  %13277 = vmatprep.subr.msk.bf16.mxu0 %vm360_vm1, %v7597_v43  ;;  %v7616_v46 = vsel %vm360_vm1, %v7596_v58, 0  ;;  %v16505_v43 = vpack.c.bf16 %v15916_v16, %v15916_v16 }
 0x40d   : > { %9177 = vrot.lane.b32.xlu1 %v15971_v12, %s17464_s21  ;;  %13274 = vmatmul.mubr.msk.bf16.vlgmr.msra.gmra.mrb[8].mxu0 %vm356_vm2, %v13272_v39  ;;  %s17468_s21 = smov 118  }
 0x40e   : > { %13276 = vmatmul.mubr.msk.bf16.vlgmr.msra.gmra.mrb[8].mxu1 %vm356_vm2, %v13272_v39  ;;  %7710 = vmatpush1.bf16.msra.mxu0 %v7616_v46  ;;  %v7589_v47 = vpop.permute.xlu0 %7588  ;;  %v7591_v50 = vpop.permute.xlu1 %7590 }
 0x40f   : > { %v7598_v51 = vsel %vm1265_vm6, %v7587_v11, %v7589_v47  ;;  %13282 = vmatprep.subr.msk.bf16.mxu0 %vm360_vm1, %v7820_v49  ;;  %v7599_v54 = vsel %vm1265_vm6, %v7589_v47, %v7591_v50  ;;  %7741 = vmatprep.mubr.bf16.mxu0 %v14508_v7  ;;  %v16489_v11 = vpack.c.bf16 %v15913_v23, %v15913_v23  ;;  %v9618_v47 = vld [vmem:[#allocation2 + $0x1c] sm:$0xff]  ;;  %vm17476_vm6 = vmmov %vm17471_vm0 }
 0x410   : > { %9396 = vrot.lane.b32.xlu0 %v15935_v33, %s17465_s22  ;;  %13279 = vmatprep.subr.msk.bf16.mxu1 %vm360_vm1, %v7599_v54  ;;  %v7622_v59 = vsel %vm360_vm1, %v7598_v51, 0  ;;  %v16363_v33 = vpack.c.bf16 %v15892_v42, %v15892_v42  ;;  %v16517_v51 = vcombine.low %v9618_v47, %v9618_v47  ;;  %v13299_v54 = vld [vmem:[%s17405_s4 + $0x1c] sm:$0xf]  ;;  %v16523_v60 = vcombine.high %v9618_v47, %v9618_v47 }
 0x411   : > { %9394 = vrot.lane.b32.xlu1 %v15927_v24, %s17465_s22  ;;  %7751 = vmatpush1.bf16.msra.mxu1 %v7622_v59  ;;  %v7821_v24 = vsel %vm1493_vm7, %v16214_v48, %v16247_v17 }
 0x412   : > { %v16356_v62 = vpop.permute.xlu0 %8259  ;;  %v16358_v0 = vpop.permute.xlu1 %8257  ;;  %7782 = vmatprep.mubr.bf16.mxu1 %v14508_v7 }
 0x413   : > { %v8274_v45 = vsel %vm1949_vm9, %v16358_v0, %v16356_v62  ;;  %v8273_v41 = vsel %vm1949_vm9, %v16315_v21, %v16358_v0 }
 0x414   : > { %9842 = vrot.lane.b32.xlu0 %v16363_v33, %s17466_s25  ;;  %v8285_v21 = vsel %vm360_vm1, %v8273_v41, 0 }
 0x415   : > { %9398 = vrot.lane.b32.xlu1 %v15957_v35, %s17465_s22  ;;  %13278 = vmatmul.mubr.msk.bf16.vlgmr.msra.gmra.mrb[12].mxu0 %vm356_vm2, %v13272_v39  ;;  %v7837_v35 = vsel %vm360_vm1, %v7821_v24, 0 }
 0x416   : > { %13280 = vmatmul.mubr.msk.bf16.vlgmr.msra.gmra.mrb[12].mxu1 %vm356_vm2, %v13272_v39  ;;  %7855 = vmatpush1.bf16.msra.mxu0 %v7831_v52  ;;  %v7810_v57 = vpop.permute.xlu0 %7809  ;;  %v16375_v42 = vpop.permute.xlu1 %8261 }
 0x417   : > { %v7822_v1 = vsel %vm1493_vm7, %v16247_v17, %v7810_v57  ;;  %7886 = vmatprep.mubr.bf16.mxu0 %v14508_v7  ;;  %7927 = vmatprep.mubr.bf16.mxu1 %v14508_v7  ;;  %v8275_v39 = vsel %vm1949_vm9, %v16356_v62, %v16375_v42 }
 0x418   : > { %9400 = vrot.lane.b32.xlu0 %v15963_v38, %s17465_s22  ;;  %13284 = vmatprep.subr.msk.bf16.mxu1 %vm360_vm1, %v7822_v1  ;;  %v8291_v49 = vsel %vm360_vm1, %v8275_v39, 0 }
 0x419   : > { %9402 = vrot.lane.b32.xlu1 %v15969_v36, %s17465_s22  ;;  %7896 = vmatpush1.bf16.msra.mxu1 %v7837_v35 }
 0x41a   : > { %v7814_v48 = vpop.permute.xlu0 %7813  ;;  %v7812_v6 = vpop.permute.xlu1 %7811 }
 0x41b   : > { %v7823_v17 = vsel %vm1493_vm7, %v7810_v57, %v7812_v6  ;;  %v7824_v19 = vsel %vm1493_vm7, %v7812_v6, %v7814_v48 }
 0x41c   : > { %9404 = vrot.lane.b32.xlu0 %v15971_v12, %s17465_s22  ;;  %13286 = vmatprep.subr.msk.bf16.mxu0 %vm360_vm1, %v7824_v19  ;;  %v7843_v38 = vsel %vm360_vm1, %v7823_v17, 0  ;;  %v16405_v12 = vpack.c.bf16 %v15903_v56, %v15903_v56 }
 0x41d   : > { %9406 = vrot.lane.b32.xlu1 %v16021_v8, %s17465_s22  ;;  %13283 = vmatmul.mubr.msk.bf16.vlgmr.msra.gmra.mrb[8].mxu0 %vm356_vm2, %v13281_v10  ;;  %v16411_v8 = vpack.c.bf16 %v15894_v13, %v15894_v13  ;;  %v8046_v13 = vsel %vm1721_vm8, %v16259_v20, %v16244_v14 }
 0x41e   : > { %13285 = vmatmul.mubr.msk.bf16.vlgmr.msra.gmra.mrb[8].mxu1 %vm356_vm2, %v13281_v10  ;;  %7937 = vmatpush1.bf16.msra.mxu0 %v7843_v38  ;;  %v7818_v36 = vpop.permute.xlu0 %7817  ;;  %v7816_v55 = vpop.permute.xlu1 %7815  ;;  %v8058_v3 = vsel %vm360_vm1, %v8046_v13, 0  ;;  %v13308_v13 = vld [vmem:[%s17405_s4 + $0x20] sm:$0xf] }
 0x41f   : > { %13291 = vmatprep.subr.msk.bf16.mxu0 %vm360_vm1, %v8047_v9  ;;  %v7825_v22 = vsel %vm1493_vm7, %v7814_v48, %v7816_v55  ;;  %v7826_v61 = vsel %vm1493_vm7, %v7816_v55, %v7818_v36  ;;  %7968 = vmatprep.mubr.bf16.mxu0 %v14508_v7  ;;  %vm17477_vm7 = vmmov %vm17471_vm0 }
 0x420   : > { %9846 = vrot.lane.b32.xlu0 %v16405_v12, %s17466_s25  ;;  %13288 = vmatprep.subr.msk.bf16.mxu1 %vm360_vm1, %v7826_v61  ;;  %v7849_v56 = vsel %vm360_vm1, %v7825_v22, 0 }
 0x421   : > { %9844 = vrot.lane.b32.xlu1 %v16411_v8, %s17466_s25  ;;  %7978 = vmatpush1.bf16.msra.mxu1 %v7849_v56 }
 0x422   : > { %v16424_v26 = vpop.permute.xlu0 %8484  ;;  %v16426_v15 = vpop.permute.xlu1 %8482  ;;  %8009 = vmatprep.mubr.bf16.mxu1 %v14508_v7 }
 0x423   : > { %v8500_v48 = vsel %vm2177_vm10, %v16426_v15, %v16424_v26 }
 0x424   : > { %10066 = vrot.lane.b32.xlu0 %v16363_v33, %s17467_s12  ;;  %v8512_v17 = vsel %vm360_vm1, %v8500_v48, 0 }
 0x425   : > { %9848 = vrot.lane.b32.xlu1 %v16431_v25, %s17466_s25  ;;  %13287 = vmatmul.mubr.msk.bf16.vlgmr.msra.gmra.mrb[12].mxu0 %vm356_vm2, %v13281_v10 }
 0x426   : > { %13289 = vmatmul.mubr.msk.bf16.vlgmr.msra.gmra.mrb[12].mxu1 %vm356_vm2, %v13281_v10  ;;  %8082 = vmatpush1.bf16.msra.mxu0 %v8058_v3  ;;  %v8039_v14 = vpop.permute.xlu0 %8038  ;;  %v8037_v63 = vpop.permute.xlu1 %8036 }
 0x427   : > { %v8049_v20 = vsel %vm1721_vm8, %v16300_v44, %v8037_v63  ;;  %8113 = vmatprep.mubr.bf16.mxu0 %v14508_v7  ;;  %8154 = vmatprep.mubr.bf16.mxu1 %v14508_v7  ;;  %v8050_v30 = vsel %vm1721_vm8, %v8037_v63, %v8039_v14 }
 0x428   : > { %10070 = vrot.lane.b32.xlu0 %v16405_v12, %s17467_s12  ;;  %13293 = vmatprep.subr.msk.bf16.mxu1 %vm360_vm1, %v8049_v20  ;;  %v8070_v37 = vsel %vm360_vm1, %v8050_v30, 0 }
 0x429   : > { %10068 = vrot.lane.b32.xlu1 %v16411_v8, %s17467_s12  ;;  %8123 = vmatpush1.bf16.msra.mxu1 %v8064_v29 }
 0x42a   : > { %v8043_v2 = vpop.permute.xlu0 %8042  ;;  %v8041_v18 = vpop.permute.xlu1 %8040 }
 0x42b   : > { %v8051_v32 = vsel %vm1721_vm8, %v8039_v14, %v8041_v18  ;;  %v8052_v34 = vsel %vm1721_vm8, %v8041_v18, %v8043_v2 }
 0x42c   : > { %10290 = vrot.lane.b32.xlu0 %v16363_v33, %s17468_s21  ;;  %13295 = vmatprep.subr.msk.bf16.mxu0 %vm360_vm1, %v8051_v32  ;;  %v8076_v27 = vsel %vm360_vm1, %v8052_v34, 0 }
 0x42d   : > { %10072 = vrot.lane.b32.xlu1 %v16431_v25, %s17467_s12  ;;  %13292 = vmatmul.mubr.msk.bf16.vlgmr.msra.gmra.mrb[8].mxu0 %vm356_vm2, %v13290_v31 }
 0x42e   : > { %13294 = vmatmul.mubr.msk.bf16.vlgmr.msra.gmra.mrb[8].mxu1 %vm356_vm2, %v13290_v31  ;;  %8164 = vmatpush1.bf16.msra.mxu0 %v8070_v37  ;;  %v16467_v44 = vpop.permute.xlu0 %8488  ;;  %v8045_v4 = vpop.permute.xlu1 %8044 }
 0x42f   : > { %13300 = vmatprep.subr.msk.bf16.mxu0 %vm360_vm1, %v8274_v45  ;;  %v8053_v40 = vsel %vm1721_vm8, %v8043_v2, %v8045_v4  ;;  %8195 = vmatprep.mubr.bf16.mxu0 %v14508_v7  ;;  %vm17478_vm8 = vmmov %vm17471_vm0 }
 0x430   : > { %10294 = vrot.lane.b32.xlu0 %v16405_v12, %s17468_s21  ;;  %13297 = vmatprep.subr.msk.bf16.mxu1 %vm360_vm1, %v8053_v40 }
 0x431   : > { %10292 = vrot.lane.b32.xlu1 %v16411_v8, %s17468_s21  ;;  %8205 = vmatpush1.bf16.msra.mxu1 %v8076_v27  ;;  %v13317_v27 = vld [vmem:[%s17405_s4 + $0x24] sm:$0xf] }
 0x432   : > { %v16484_v5 = vpop.permute.xlu0 %8709  ;;  %v8487_v53 = vpop.permute.xlu1 %8486  ;;  %8236 = vmatprep.mubr.bf16.mxu1 %v14508_v7 }
 0x433   : > { %v8501_v52 = vsel %vm2177_vm10, %v16424_v26, %v8487_v53  ;;  %v8502_v19 = vsel %vm2177_vm10, %v8487_v53, %v16467_v44 }
 0x434   : > { %9850 = vrot.lane.b32.xlu0 %v16489_v11, %s17466_s25  ;;  %v8518_v55 = vsel %vm360_vm1, %v8502_v19, 0 }
 0x435   : > { %10296 = vrot.lane.b32.xlu1 %v16431_v25, %s17468_s21  ;;  %13296 = vmatmul.mubr.msk.bf16.vlgmr.msra.gmra.mrb[12].mxu0 %vm356_vm2, %v13290_v31 }
 0x436   : > { %13298 = vmatmul.mubr.msk.bf16.vlgmr.msra.gmra.mrb[12].mxu1 %vm356_vm2, %v13290_v31  ;;  %8309 = vmatpush1.bf16.msra.mxu0 %v8285_v21  ;;  %v8264_v58 = vpop.permute.xlu0 %8263  ;;  %v16501_v23 = vpop.permute.xlu1 %8711  ;;  %v16600_v31 = vld [vmem:[#allocation2 + $0x24] ss:$0 sps:$4 sm:$0xff]  }
 0x437   : > { %v8276_v46 = vsel %vm1949_vm9, %v16375_v42, %v8264_v58  ;;  %8340 = vmatprep.mubr.bf16.mxu0 %v14508_v7  ;;  %8381 = vmatprep.mubr.bf16.mxu1 %v14508_v7  ;;  %v8727_v30 = vsel %vm2405_vm11, %v16484_v5, %v16501_v23 }
 0x438   : > { %10514 = vrot.lane.b32.xlu0 %v16363_v33, %s17469_s17  ;;  %13302 = vmatprep.subr.msk.bf16.mxu1 %vm360_vm1, %v8276_v46  ;;  %v8739_v34 = vsel %vm360_vm1, %v8727_v30, 0 }
 0x439   : > { %9852 = vrot.lane.b32.xlu1 %v16505_v43, %s17466_s25  ;;  %8350 = vmatpush1.bf16.msra.mxu1 %v8291_v49 }
 0x43a   : > { %v8268_v16 = vpop.permute.xlu0 %8267  ;;  %v8266_v50 = vpop.permute.xlu1 %8265 }
 0x43b   : > { %v8277_v59 = vsel %vm1949_vm9, %v8264_v58, %v8266_v50  ;;  %v8278_v62 = vsel %vm1949_vm9, %v8266_v50, %v8268_v16 }
 0x43c   : > { %9854 = vrot.lane.b32.xlu0 %v16517_v51, %s17466_s25  ;;  %13304 = vmatprep.subr.msk.bf16.mxu0 %vm360_vm1, %v8278_v62  ;;  %v8297_v0 = vsel %vm360_vm1, %v8277_v59, 0 }
 0x43d   : > { %9856 = vrot.lane.b32.xlu1 %v16523_v60, %s17466_s25  ;;  %13301 = vmatmul.mubr.msk.bf16.vlgmr.msra.gmra.mrb[8].mxu0 %vm356_vm2, %v13299_v54 }
 0x43e   : > { %13303 = vmatmul.mubr.msk.bf16.vlgmr.msra.gmra.mrb[8].mxu1 %vm356_vm2, %v13299_v54  ;;  %8391 = vmatpush1.bf16.msra.mxu0 %v8297_v0  ;;  %v8272_v24 = vpop.permute.xlu0 %8271  ;;  %v8270_v57 = vpop.permute.xlu1 %8269 }
 0x43f   : > { %13309 = vmatprep.subr.msk.bf16.mxu0 %vm360_vm1, %v8501_v52  ;;  %v8279_v42 = vsel %vm1949_vm9, %v8268_v16, %v8270_v57  ;;  %v8280_v1 = vsel %vm1949_vm9, %v8270_v57, %v8272_v24  ;;  %8422 = vmatprep.mubr.bf16.mxu0 %v14508_v7  ;;  %vm17479_vm9 = vcmask 72704  }
 0x440   : > { %10518 = vrot.lane.b32.xlu0 %v16405_v12, %s17469_s17  ;;  %13306 = vmatprep.subr.msk.bf16.mxu1 %vm360_vm1, %v8280_v1  ;;  %v8303_v35 = vsel %vm360_vm1, %v8279_v42, 0  ;;  %v13326_v1 = vld [vmem:[%s17405_s4 + $0x28] sm:$0xf]  ;;  %vm17483_vm13 = vmmov %vm17479_vm9 }
 0x441   : > { %10516 = vrot.lane.b32.xlu1 %v16411_v8, %s17469_s17  ;;  %8432 = vmatpush1.bf16.msra.mxu1 %v8303_v35  ;;  %vm17484_vm14 = vmmov %vm17479_vm9 }
 0x442   : > { %v8714_v6 = vpop.permute.xlu0 %8713  ;;  %v8716_v10 = vpop.permute.xlu1 %8715  ;;  %8463 = vmatprep.mubr.bf16.mxu1 %v14508_v7  ;;  %vm17485_vm12 = vmmov %vm17479_vm9 }
 0x443   : > { %v8728_v14 = vsel %vm2405_vm11, %v16501_v23, %v8714_v6  ;;  %v8729_v32 = vsel %vm2405_vm11, %v8714_v6, %v8716_v10 }
 0x444   : > { %10074 = vrot.lane.b32.xlu0 %v16489_v11, %s17467_s12  ;;  %v8745_v4 = vsel %vm360_vm1, %v8729_v32, 0 }
 0x445   : > { %10520 = vrot.lane.b32.xlu1 %v16431_v25, %s17469_s17  ;;  %13305 = vmatmul.mubr.msk.bf16.vlgmr.msra.gmra.mrb[12].mxu0 %vm356_vm2, %v13299_v54 }
 0x446   : > { %13307 = vmatmul.mubr.msk.bf16.vlgmr.msra.gmra.mrb[12].mxu1 %vm356_vm2, %v13299_v54  ;;  %8536 = vmatpush1.bf16.msra.mxu0 %v8512_v17  ;;  %v8493_v38 = vpop.permute.xlu0 %8492  ;;  %v8491_v36 = vpop.permute.xlu1 %8490 }
 0x447   : > { %v8503_v9 = vsel %vm2177_vm10, %v16467_v44, %v8491_v36  ;;  %8567 = vmatprep.mubr.bf16.mxu0 %v14508_v7  ;;  %8608 = vmatprep.mubr.bf16.mxu1 %v14508_v7  ;;  %v8504_v22 = vsel %vm2177_vm10, %v8491_v36, %v8493_v38 }
 0x448   : > { %10766 = vrot.lane.b32.xlu0 %v16363_v33, %s17470_s23  ;;  %13311 = vmatprep.subr.msk.bf16.mxu1 %vm360_vm1, %v8503_v9  ;;  %v8524_v3 = vsel %vm360_vm1, %v8504_v22, 0 }
 0x449   : > { %10076 = vrot.lane.b32.xlu1 %v16505_v43, %s17467_s12  ;;  %8577 = vmatpush1.bf16.msra.mxu1 %v8518_v55 }
 0x44a   : > { %v8497_v61 = vpop.permute.xlu0 %8496  ;;  %v8495_v56 = vpop.permute.xlu1 %8494 }
 0x44b   : > { %v8505_v26 = vsel %vm2177_vm10, %v8493_v38, %v8495_v56  ;;  %v8506_v15 = vsel %vm2177_vm10, %v8495_v56, %v8497_v61 }
 0x44c   : > { %10078 = vrot.lane.b32.xlu0 %v16517_v51, %s17467_s12  ;;  %13313 = vmatprep.subr.msk.bf16.mxu0 %vm360_vm1, %v8505_v26  ;;  %v8530_v29 = vsel %vm360_vm1, %v8506_v15, 0 }
 0x44d   : > { %10080 = vrot.lane.b32.xlu1 %v16523_v60, %s17467_s12  ;;  %13310 = vmatmul.mubr.msk.bf16.vlgmr.msra.gmra.mrb[8].mxu0 %vm356_vm2, %v13308_v13  ;;  %s17472_s12 = smov 38  }
 0x44e   : > { %13312 = vmatmul.mubr.msk.bf16.vlgmr.msra.gmra.mrb[8].mxu1 %vm356_vm2, %v13308_v13  ;;  %8618 = vmatpush1.bf16.msra.mxu0 %v8524_v3  ;;  %v8939_v28 = vpop.permute.xlu0 %8938  ;;  %v8499_v63 = vpop.permute.xlu1 %8498 }
 0x44f   : > { %13318 = vmatprep.subr.msk.bf16.mxu0 %vm360_vm1, %v8728_v14  ;;  %v8507_v20 = vsel %vm2177_vm10, %v8497_v61, %v8499_v63  ;;  %8649 = vmatprep.mubr.bf16.mxu0 %v14508_v7  ;;  %vm17480_vm10 = vmmov %vm17471_vm0 }
 0x450   : > { %10770 = vrot.lane.b32.xlu0 %v16405_v12, %s17470_s23  ;;  %13315 = vmatprep.subr.msk.bf16.mxu1 %vm360_vm1, %v8507_v20  ;;  %v13335_v20 = vld [vmem:[%s17405_s4 + $0x2c] sm:$0xf] }
 0x451   : > { %10768 = vrot.lane.b32.xlu1 %v16411_v8, %s17470_s23  ;;  %8659 = vmatpush1.bf16.msra.mxu1 %v8530_v29 }
 0x452   : > { %v8943_v2 = vpop.permute.xlu0 %8942  ;;  %8690 = vmatprep.mubr.bf16.mxu1 %v14508_v7 }
 0x453   : > { %v8937_v18 = vpop.permute.xlu1 %8936 }
 0x454   : > { %10298 = vrot.lane.b32.xlu0 %v16489_v11, %s17468_s21  ;;  %v8954_v16 = vsel %vm17473_vm3, %v8937_v18, %v8939_v28 }
 0x455   : > { %10772 = vrot.lane.b32.xlu1 %v16431_v25, %s17470_s23  ;;  %13314 = vmatmul.mubr.msk.bf16.vlgmr.msra.gmra.mrb[12].mxu0 %vm356_vm2, %v13308_v13  ;;  %v8966_v59 = vsel %vm360_vm1, %v8954_v16, 0 }
 0x456   : > { %13316 = vmatmul.mubr.msk.bf16.vlgmr.msra.gmra.mrb[12].mxu1 %vm356_vm2, %v13308_v13  ;;  %8763 = vmatpush1.bf16.msra.mxu0 %v8739_v34  ;;  %v8718_v37 = vpop.permute.xlu0 %8717 }
 0x457   : > { %v8941_v44 = vpop.permute.xlu1 %8940  ;;  %v8730_v45 = vsel %vm2405_vm11, %v8716_v10, %v8718_v37  ;;  %8794 = vmatprep.mubr.bf16.mxu0 %v14508_v7  ;;  %8835 = vmatprep.mubr.bf16.mxu1 %v14508_v7 }
 0x458   : > { %10782 = vrot.lane.b32.xlu0 %v16600_v31, %s17470_s23  ;;  %13320 = vmatprep.subr.msk.bf16.mxu1 %vm360_vm1, %v8730_v45  ;;  %v8955_v58 = vsel %vm17471_vm0, %v8939_v28, %v8941_v44  ;;  %v8956_v62 = vsel %vm17474_vm4, %v8941_v44, %v8943_v2  ;;  %vm17486_vm0 = vmmov %vm17479_vm9 }
 0x459   : > { %10300 = vrot.lane.b32.xlu1 %v16505_v43, %s17468_s21  ;;  %8804 = vmatpush1.bf16.msra.mxu1 %v8745_v4  ;;  %v8972_v57 = vsel %vm360_vm1, %v8956_v62, 0  ;;  %vm17487_vm3 = vmmov %vm17486_vm0 }
 0x45a   : > { %v8722_v40 = vpop.permute.xlu0 %8721  ;;  %vm17488_vm4 = vmmov %vm17486_vm0 }
 0x45b   : > { %v8720_v41 = vpop.permute.xlu1 %8719 }
 0x45c   : > { %v8731_v5 = vsel %vm2405_vm11, %v8718_v37, %v8720_v41  ;;  %10302 = vrot.lane.b32.xlu0 %v16517_v51, %s17468_s21  ;;  %v8732_v53 = vsel %vm2405_vm11, %v8720_v41, %v8722_v40 }
 0x45d   : > { %10304 = vrot.lane.b32.xlu1 %v16523_v60, %s17468_s21  ;;  %13319 = vmatmul.mubr.msk.bf16.vlgmr.msra.gmra.mrb[8].mxu0 %vm356_vm2, %v13317_v27  ;;  %v8751_v39 = vsel %vm360_vm1, %v8731_v5, 0  ;;  %s17481_s21 = smov 37  }
 0x45e   : > { %13321 = vmatmul.mubr.msk.bf16.vlgmr.msra.gmra.mrb[8].mxu1 %vm356_vm2, %v13317_v27  ;;  %13322 = vmatprep.subr.msk.bf16.mxu0 %vm360_vm1, %v8732_v53  ;;  %v8726_v21 = vpop.permute.xlu0 %8725 }
 0x45f   : > { %8845 = vmatpush1.bf16.msra.mxu0 %v8751_v39  ;;  %v8724_v23 = vpop.permute.xlu1 %8723  ;;  %8876 = vmatprep.mubr.bf16.mxu0 %v14508_v7 }
 0x460   : > { %13327 = vmatprep.subr.msk.bf16.mxu0 %vm360_vm1, %v8955_v58  ;;  %v8733_v46 = vsel %vm2405_vm11, %v8722_v40, %v8724_v23  ;;  %10995 = vrot.lane.b32.xlu0 %v16411_v8, %s17472_s12  ;;  %v8734_v47 = vsel %vm2405_vm11, %v8724_v23, %v8726_v21  ;;  %vm17482_vm11 = vmmov %vm17479_vm9 }
 0x461   : > { %10993 = vrot.lane.b32.xlu1 %v16363_v33, %s17472_s12  ;;  %13324 = vmatprep.subr.msk.bf16.mxu1 %vm360_vm1, %v8734_v47  ;;  %v8757_v49 = vsel %vm360_vm1, %v8733_v46, 0  ;;  %v13344_v47 = vld [vmem:[%s17405_s4 + $0x30] sm:$0xf] }
 0x462   : > { %8886 = vmatpush1.bf16.msra.mxu1 %v8757_v49  ;;  %v9164_v50 = vpop.permute.xlu0 %9163  ;;  %8917 = vmatprep.mubr.bf16.mxu1 %v14508_v7 }
 0x463   : > { %v9166_v54 = vpop.permute.xlu1 %9165 }
 0x464   : > { %10522 = vrot.lane.b32.xlu0 %v16489_v11, %s17469_s17  ;;  %v9181_v22 = vsel %vm17482_vm11, %v9164_v50, %v9166_v54 }
 0x465   : > { %10997 = vrot.lane.b32.xlu1 %v16405_v12, %s17472_s12  ;;  %13323 = vmatmul.mubr.msk.bf16.vlgmr.msra.gmra.mrb[12].mxu0 %vm356_vm2, %v13317_v27  ;;  %v9193_v26 = vsel %vm360_vm1, %v9181_v22, 0 }
 0x466   : > { %13325 = vmatmul.mubr.msk.bf16.vlgmr.msra.gmra.mrb[12].mxu1 %vm356_vm2, %v13317_v27  ;;  %8990 = vmatpush1.bf16.msra.mxu0 %v8966_v59  ;;  %v9168_v0 = vpop.permute.xlu0 %9167 }
 0x467   : > { %v8945_v24 = vpop.permute.xlu1 %8944  ;;  %9021 = vmatprep.mubr.bf16.mxu0 %v14508_v7  ;;  %9062 = vmatprep.mubr.bf16.mxu1 %v14508_v7  ;;  %v9182_v38 = vsel %vm17479_vm9, %v9166_v54, %v9168_v0 }
 0x468   : > { %10999 = vrot.lane.b32.xlu0 %v16431_v25, %s17472_s12  ;;  %v8957_v52 = vsel %vm17475_vm5, %v8943_v2, %v8945_v24  ;;  %vm17489_vm5 = vcmask 7168  }
 0x469   : > { %10524 = vrot.lane.b32.xlu1 %v16505_v43, %s17469_s17  ;;  %13329 = vmatprep.subr.msk.bf16.mxu1 %vm360_vm1, %v8957_v52  ;;  %vm17493_vm9 = vmmov %vm17489_vm5 }
 0x46a   : > { %9031 = vmatpush1.bf16.msra.mxu1 %v8972_v57  ;;  %v8947_v42 = vpop.permute.xlu0 %8946  ;;  %vm17495_vm11 = vmmov %vm17489_vm5 }
 0x46b   : > { %v8958_v35 = vsel %vm17476_vm6, %v8945_v24, %v8947_v42  ;;  %v8949_v48 = vpop.permute.xlu1 %8948  ;;  %vm17490_vm6 = vmmov %vm17489_vm5 }
 0x46c   : > { %10526 = vrot.lane.b32.xlu0 %v16517_v51, %s17469_s17  ;;  %v8959_v6 = vsel %vm17477_vm7, %v8947_v42, %v8949_v48  ;;  %v8978_v10 = vsel %vm360_vm1, %v8958_v35, 0  ;;  %vm17491_vm7 = vmmov %vm17489_vm5  ;;  %v9651_v35 = vsel %vm360_vm1, %v16405_v12, 0 }
 0x46d   : > { %10528 = vrot.lane.b32.xlu1 %v16523_v60, %s17469_s17  ;;  %13328 = vmatmul.mubr.msk.bf16.vlgmr.msra.gmra.mrb[8].mxu0 %vm356_vm2, %v13326_v1  ;;  %s14534_s17 = smov [#allocation3]  }
 0x46e   : > { %13330 = vmatmul.mubr.msk.bf16.vlgmr.msra.gmra.mrb[8].mxu1 %vm356_vm2, %v13326_v1  ;;  %13331 = vmatprep.subr.msk.bf16.mxu0 %vm360_vm1, %v8959_v6  ;;  %v8951_v17 = vpop.permute.xlu0 %8950 }
 0x46f   : > { %9072 = vmatpush1.bf16.msra.mxu0 %v8978_v10  ;;  %v8960_v19 = vsel %vm17478_vm8, %v8949_v48, %v8951_v17  ;;  %v8953_v36 = vpop.permute.xlu1 %8952  ;;  %9103 = vmatprep.mubr.bf16.mxu0 %v14508_v7  ;;  %vm17492_vm8 = vmmov %vm17489_vm5 }
 0x470   : > { %13336 = vmatprep.subr.msk.bf16.mxu0 %vm360_vm1, %v9182_v38  ;;  %v8961_v9 = vsel %vm17480_vm10, %v8951_v17, %v8953_v36  ;;  %11220 = vrot.lane.b32.xlu0 %v16363_v33, %s17481_s21  ;;  %v8984_v55 = vsel %vm360_vm1, %v8960_v19, 0  ;;  %vm17494_vm10 = vmmov %vm17489_vm5  ;;  %v13353_v17 = vld [vmem:[%s17405_s4 + $0x34] sm:$0xf]  ;;  %v9657_v38 = vsel %vm360_vm1, %v16489_v11, 0  ;;  %v9663_v36 = vsel %vm360_vm1, %v16517_v51, 0 }
 0x471   : > { %11009 = vrot.lane.b32.xlu1 %v16600_v31, %s17472_s12  ;;  %13333 = vmatprep.subr.msk.bf16.mxu1 %vm360_vm1, %v8961_v9 }
 0x472   : > { %9113 = vmatpush1.bf16.msra.mxu1 %v8984_v55  ;;  %v9393_v61 = vpop.permute.xlu0 %9392  ;;  %9144 = vmatprep.mubr.bf16.mxu1 %v14508_v7 }
 0x473   : > { %v9170_v56 = vpop.permute.xlu1 %9169 }
 0x474   : > { %10774 = vrot.lane.b32.xlu0 %v16489_v11, %s17470_s23  ;;  %v9183_v13 = vsel %vm17483_vm13, %v9168_v0, %v9170_v56  ;;  %vm17496_vm13 = vmmov %vm17489_vm5 }
 0x475   : > { %11222 = vrot.lane.b32.xlu1 %v16411_v8, %s17481_s21  ;;  %13332 = vmatmul.mubr.msk.bf16.vlgmr.msra.gmra.mrb[12].mxu0 %vm356_vm2, %v13326_v1  ;;  %v9199_v14 = vsel %vm360_vm1, %v9183_v13, 0 }
 0x476   : > { %13334 = vmatmul.mubr.msk.bf16.vlgmr.msra.gmra.mrb[12].mxu1 %vm356_vm2, %v13326_v1  ;;  %9217 = vmatpush1.bf16.msra.mxu0 %v9193_v26  ;;  %v9172_v15 = vpop.permute.xlu0 %9171  ;;  %v9645_v1 = vsel %vm360_vm1, %v16363_v33, 0 }
 0x477   : > { %v9391_v3 = vpop.permute.xlu1 %9390  ;;  %v9184_v28 = vsel %vm17484_vm14, %v9170_v56, %v9172_v15  ;;  %9248 = vmatprep.mubr.bf16.mxu0 %v14508_v7  ;;  %9289 = vmatprep.mubr.bf16.mxu1 %v14508_v7  ;;  %vm17498_vm14 = vcmask 1039360  }
 0x478   : > { %10778 = vrot.lane.b32.xlu0 %v16517_v51, %s17470_s23  ;;  %13338 = vmatprep.subr.msk.bf16.mxu1 %vm360_vm1, %v9184_v28  ;;  %v9408_v40 = vsel %vm17489_vm5, %v9391_v3, %v9393_v61 }
 0x479   : > { %10776 = vrot.lane.b32.xlu1 %v16505_v43, %s17470_s23  ;;  %9258 = vmatpush1.bf16.msra.mxu1 %v9199_v14  ;;  %v9420_v5 = vsel %vm360_vm1, %v9408_v40, 0 }
 0x47a   : > { %v9176_v63 = vpop.permute.xlu0 %9175 }
 0x47b   : > { %v9174_v29 = vpop.permute.xlu1 %9173 }
 0x47c   : > { %v9185_v30 = vsel %vm17485_vm12, %v9172_v15, %v9174_v29  ;;  %11003 = vrot.lane.b32.xlu0 %v16505_v43, %s17472_s12  ;;  %v9186_v2 = vsel %vm17486_vm0, %v9174_v29, %v9176_v63  ;;  %vm17499_vm12 = vmmov %vm17498_vm14  ;;  %v13370_v29 = vld [vmem:[%s17405_s4 + $0x38] sm:$0xf] }
 0x47d   : > { %10780 = vrot.lane.b32.xlu1 %v16523_v60, %s17470_s23  ;;  %13337 = vmatmul.mubr.msk.bf16.vlgmr.msra.gmra.mrb[8].mxu0 %vm356_vm2, %v13335_v20  ;;  %v9205_v18 = vsel %vm360_vm1, %v9185_v30, 0  ;;  %vm17501_vm0 = vmmov %vm17499_vm12  ;;  %s296_s23 = sand.u32 1, %s14497_s28  }
 0x47e   : > { %13339 = vmatmul.mubr.msk.bf16.vlgmr.msra.gmra.mrb[8].mxu1 %vm356_vm2, %v13335_v20  ;;  %13340 = vmatprep.subr.msk.bf16.mxu0 %vm360_vm1, %v9186_v2  ;;  %v9180_v32 = vpop.permute.xlu0 %9179  ;;  %vm17504_vm5 = vmmov %vm17501_vm0 }
 0x47f   : > { %9299 = vmatpush1.bf16.msra.mxu0 %v9205_v18  ;;  %v9178_v34 = vpop.permute.xlu1 %9177  ;;  %9330 = vmatprep.mubr.bf16.mxu0 %v14508_v7 }
 0x480   : > { %v9187_v37 = vsel %vm17487_vm3, %v9176_v63, %v9178_v34  ;;  %11007 = vrot.lane.b32.xlu0 %v16523_v60, %s17472_s12  ;;  %v9188_v44 = vsel %vm17488_vm4, %v9178_v34, %v9180_v32  ;;  %9371 = vmatprep.mubr.bf16.mxu1 %v14508_v7  ;;  %vm17502_vm3 = vmmov %vm17501_vm0 }
 0x481   : > { %11001 = vrot.lane.b32.xlu1 %v16489_v11, %s17472_s12  ;;  %13342 = vmatprep.subr.msk.bf16.mxu1 %vm360_vm1, %v9188_v44  ;;  %v9211_v45 = vsel %vm360_vm1, %v9187_v37, 0  ;;  %vm17503_vm4 = vmmov %vm17501_vm0 }
 0x482   : > { %9340 = vmatpush1.bf16.msra.mxu1 %v9211_v45  ;;  %v9397_v4 = vpop.permute.xlu0 %9396 }
 0x483   : > { %v9395_v27 = vpop.permute.xlu1 %9394 }
 0x484   : > { %11224 = vrot.lane.b32.xlu0 %v16405_v12, %s17481_s21  ;;  %v9409_v41 = vsel %vm17490_vm6, %v9393_v61, %v9395_v27  ;;  %v9410_v53 = vsel %vm17491_vm7, %v9395_v27, %v9397_v4  ;;  %vm17505_vm6 = vmmov %vm17501_vm0  ;;  %vm17506_vm7 = vcmask 973824  }
 0x485   : > { %11005 = vrot.lane.b32.xlu1 %v16517_v51, %s17472_s12  ;;  %13341 = vmatmul.mubr.msk.bf16.vlgmr.msra.gmra.mrb[12].mxu0 %vm356_vm2, %v13335_v20  ;;  %v9426_v23 = vsel %vm360_vm1, %v9410_v53, 0 }
 0x486   : > { %13343 = vmatmul.mubr.msk.bf16.vlgmr.msra.gmra.mrb[12].mxu1 %vm356_vm2, %v13335_v20  ;;  %13345 = vmatprep.subr.msk.bf16.mxu0 %vm360_vm1, %v9409_v41  ;;  %v16737_v39 = vpop.permute.xlu0 %9842 }
 0x487   : > { %9444 = vmatpush1.bf16.msra.mxu0 %v9420_v5  ;;  %v9399_v21 = vpop.permute.xlu1 %9398  ;;  %9475 = vmatprep.mubr.bf16.mxu0 %v14508_v7 }
 0x488   : > { %11228 = vrot.lane.b32.xlu0 %v16489_v11, %s17481_s21  ;;  %v9411_v58 = vsel %vm17492_vm8, %v9397_v4, %v9399_v21  ;;  %9516 = vmatprep.mubr.bf16.mxu1 %v14508_v7  ;;  %vm17507_vm8 = vmmov %vm17506_vm7 }
 0x489   : > { %11226 = vrot.lane.b32.xlu1 %v16431_v25, %s17481_s21  ;;  %13347 = vmatprep.subr.msk.bf16.mxu1 %vm360_vm1, %v9411_v58 }
 0x48a   : > { %9485 = vmatpush1.bf16.msra.mxu1 %v9426_v23  ;;  %v9401_v46 = vpop.permute.xlu0 %9400 }
 0x48b   : > { %v9412_v49 = vsel %vm17493_vm9, %v9399_v21, %v9401_v46  ;;  %v9403_v16 = vpop.permute.xlu1 %9402  ;;  %vm17508_vm9 = vmmov %vm17506_vm7 }
 0x48c   : > { %11232 = vrot.lane.b32.xlu0 %v16517_v51, %s17481_s21  ;;  %v9413_v50 = vsel %vm17494_vm10, %v9401_v46, %v9403_v16  ;;  %v9432_v54 = vsel %vm360_vm1, %v9412_v49, 0  ;;  %vm17509_vm10 = vmmov %vm17506_vm7 }
 0x48d   : > { %11230 = vrot.lane.b32.xlu1 %v16505_v43, %s17481_s21  ;;  %13346 = vmatmul.mubr.msk.bf16.vlgmr.msra.gmra.mrb[8].mxu0 %vm356_vm2, %v13344_v47 }
 0x48e   : > { %13348 = vmatmul.mubr.msk.bf16.vlgmr.msra.gmra.mrb[8].mxu1 %vm356_vm2, %v13344_v47  ;;  %13349 = vmatprep.subr.msk.bf16.mxu0 %vm360_vm1, %v9413_v50  ;;  %v9405_v59 = vpop.permute.xlu0 %9404 }
 0x48f   : > { %9526 = vmatpush1.bf16.msra.mxu0 %v9432_v54  ;;  %v9414_v62 = vsel %vm17495_vm11, %v9403_v16, %v9405_v59  ;;  %v9407_v0 = vpop.permute.xlu1 %9406  ;;  %9557 = vmatprep.mubr.bf16.mxu0 %v14508_v7  ;;  %vm17511_vm11 = vmmov %vm17506_vm7 }
 0x490   : > { %13362 = vmatprep.subr.msk.bf16.mxu0 %vm360_vm1, %v16411_v8  ;;  %v9415_v24 = vsel %vm17496_vm13, %v9405_v59, %v9407_v0  ;;  %11236 = vrot.lane.b32.xlu0 %v16600_v31, %s17481_s21  ;;  %v9438_v52 = vsel %vm360_vm1, %v9414_v62, 0  ;;  %vm17512_vm13 = vmmov %vm17506_vm7 }
 0x491   : > { %11234 = vrot.lane.b32.xlu1 %v16523_v60, %s17481_s21  ;;  %13351 = vmatprep.subr.msk.bf16.mxu1 %vm360_vm1, %v9415_v24 }
 0x492   : > { %9567 = vmatpush1.bf16.msra.mxu1 %v9438_v52  ;;  %v9847_v57 = vpop.permute.xlu0 %9846  ;;  %9598 = vmatprep.mubr.bf16.mxu1 %v14508_v7 }
 0x493   : > { %13364 = vmatprep.subr.msk.bf16.mxu1 %vm360_vm1, %v16431_v25  ;;  %v9845_v42 = vpop.permute.xlu1 %9844 }
 0x494   : > { %11449 = vrot.lane.b32.xlu0 %v16411_v8, %s17497_s24  ;;  %v9859_v9 = vsel %vm17498_vm14, %v9845_v42, %v9847_v57  ;;  %v9858_v61 = vsel %vm17499_vm12, %v16737_v39, %v9845_v42  ;;  %vm17513_vm14 = vmmov %vm17506_vm7  ;;  %vm17514_vm12 = vcmask 965632  }
 0x495   : > { %11447 = vrot.lane.b32.xlu1 %v16363_v33, %s17497_s24  ;;  %13350 = vmatmul.mubr.msk.bf16.vlgmr.msra.gmra.mrb[12].mxu0 %vm356_vm2, %v13344_v47  ;;  %v9869_v15 = vsel %vm360_vm1, %v9858_v61, 0 }
 0x496   : > { %13352 = vmatmul.mubr.msk.bf16.vlgmr.msra.gmra.mrb[12].mxu1 %vm356_vm2, %v13344_v47  ;;  %9669 = vmatpush1.bf16.msra.mxu0 %v9645_v1  ;;  %v16785_v48 = vpop.permute.xlu0 %10066  ;;  %v13379_v47 = vld [vmem:[%s17405_s4 + $0x3c] sm:$0xf] }
 0x497   : > { %9710 = vmatpush1.bf16.msra.mxu1 %v9651_v35  ;;  %13366 = vmatprep.subr.msk.bf16.mxu0 %vm360_vm1, %v16505_v43  ;;  %v9849_v6 = vpop.permute.xlu1 %9848 }
 0x498   : > { %13368 = vmatprep.subr.msk.bf16.mxu1 %vm360_vm1, %v16523_v60  ;;  %11453 = vrot.lane.b32.xlu0 %v16431_v25, %s17497_s24  ;;  %v9860_v26 = vsel %vm17501_vm0, %v9847_v57, %v9849_v6  ;;  %vm17515_vm0 = vmmov %vm17514_vm12 }
 0x499   : > { %11451 = vrot.lane.b32.xlu1 %v16405_v12, %s17497_s24  ;;  %9700 = vmatprep.mubr.bf16.mxu0 %v14508_v7  ;;  %v9875_v63 = vsel %vm360_vm1, %v9860_v26, 0 }
 0x49a   : > { %v16796_v10 = vpop.permute.xlu0 %10070  ;;  %9741 = vmatprep.mubr.bf16.mxu1 %v14508_v7 }
 0x49b   : > { %v10069_v19 = vpop.permute.xlu1 %10068 }
 0x49c   : > { %11457 = vrot.lane.b32.xlu0 %v16505_v43, %s17497_s24  ;;  %v10082_v4 = vsel %vm17506_vm7, %v16785_v48, %v10069_v19  ;;  %v10083_v27 = vsel %vm17507_vm8, %v10069_v19, %v16796_v10  ;;  %vm17521_vm7 = vmmov %vm17515_vm0  ;;  %vm17522_vm8 = vcmask 957440  }
 0x49d   : > { %11455 = vrot.lane.b32.xlu1 %v16489_v11, %s17497_s24  ;;  %13363 = vmatmul.mubr.msk.bf16.vlgmr.msra.gmra.mrb[8].mxu0 %vm356_vm2, %v13353_v17  ;;  %v10093_v53 = vsel %vm360_vm1, %v10082_v4, 0 }
 0x49e   : > { %13365 = vmatmul.mubr.msk.bf16.vlgmr.msra.gmra.mrb[8].mxu1 %vm356_vm2, %v13353_v17  ;;  %9751 = vmatpush1.bf16.msra.mxu0 %v9657_v38  ;;  %v16813_v55 = vpop.permute.xlu0 %10290 }
 0x49f   : > { %9792 = vmatpush1.bf16.msra.mxu1 %v9663_v36  ;;  %13371 = vmatprep.subr.msk.bf16.mxu0 %vm360_vm1, %v9859_v9  ;;  %v10073_v22 = vpop.permute.xlu1 %10072  ;;  %v13388_v36 = vld [vmem:[%s17405_s4 + $0x40] sm:$0xf] }
 0x4a0   : > { %11461 = vrot.lane.b32.xlu0 %v16523_v60, %s17497_s24  ;;  %9782 = vmatprep.mubr.bf16.mxu0 %v14508_v7  ;;  %v10084_v5 = vsel %vm17508_vm9, %v16796_v10, %v10073_v22  ;;  %vm17523_vm9 = vmmov %vm17522_vm8 }
 0x4a1   : > { %11459 = vrot.lane.b32.xlu1 %v16517_v51, %s17497_s24  ;;  %9823 = vmatprep.mubr.bf16.mxu1 %v14508_v7  ;;  %v10099_v23 = vsel %vm360_vm1, %v10084_v5, 0 }
 0x4a2   : > { %v16824_v56 = vpop.permute.xlu0 %10294 }
 0x4a3   : > { %v16826_v13 = vpop.permute.xlu1 %10292 }
 0x4a4   : > { %11674 = vrot.lane.b32.xlu0 %v16363_v33, %s17500_s10  ;;  %v10306_v52 = vsel %vm17514_vm12, %v16813_v55, %v16826_v13  ;;  %v10307_v42 = vsel %vm17515_vm0, %v16826_v13, %v16824_v56  ;;  %vm17529_vm12 = vmmov %vm17522_vm8 }
 0x4a5   : > { %11463 = vrot.lane.b32.xlu1 %v16600_v31, %s17497_s24  ;;  %13367 = vmatmul.mubr.msk.bf16.vlgmr.msra.gmra.mrb[12].mxu0 %vm356_vm2, %v13353_v17  ;;  %v10317_v48 = vsel %vm360_vm1, %v10306_v52, 0  ;;  %s12938_s24 = sshll.u32 %s296_s23, 6 }
 0x4a6   : > { %13369 = vmatmul.mubr.msk.bf16.vlgmr.msra.gmra.mrb[12].mxu1 %vm356_vm2, %v13353_v17  ;;  %9893 = vmatpush1.bf16.msra.mxu0 %v9869_v15  ;;  %v9851_v3 = vpop.permute.xlu0 %9850  ;;  %s17342_s25 = scalar_lea.vmem [#allocation3], %s12938_s24 }
 0x4a7   : > { %v16836_v28 = vpop.permute.xlu1 %10296  ;;  %v9861_v14 = vsel %vm17502_vm3, %v9849_v6, %v9851_v3  ;;  %9924 = vmatprep.mubr.bf16.mxu0 %v14508_v7  ;;  %9965 = vmatprep.mubr.bf16.mxu1 %v14508_v7  ;;  %vm17516_vm3 = vmmov %vm17515_vm0 }
 0x4a8   : > { %11678 = vrot.lane.b32.xlu0 %v16405_v12, %s17500_s10  ;;  %13373 = vmatprep.subr.msk.bf16.mxu1 %vm360_vm1, %v9861_v14  ;;  %v10308_v35 = vsel %vm17516_vm3, %v16824_v56, %v16836_v28 }
 0x4a9   : > { %11676 = vrot.lane.b32.xlu1 %v16411_v8, %s17500_s10  ;;  %9934 = vmatpush1.bf16.msra.mxu1 %v9875_v63  ;;  %v10323_v19 = vsel %vm360_vm1, %v10308_v35, 0 }
 0x4aa   : > { %v16847_v20 = vpop.permute.xlu0 %10514 }
 0x4ab   : > { %v9853_v30 = vpop.permute.xlu1 %9852 }
 0x4ac   : > { %11682 = vrot.lane.b32.xlu0 %v16489_v11, %s17500_s10  ;;  %v9862_v2 = vsel %vm17503_vm4, %v9851_v3, %v9853_v30  ;;  %vm17517_vm4 = vmmov %vm17515_vm0 }
 0x4ad   : > { %11680 = vrot.lane.b32.xlu1 %v16431_v25, %s17500_s10  ;;  %13372 = vmatmul.mubr.msk.bf16.vlgmr.msra.gmra.mrb[8].mxu0 %vm356_vm2, %v13370_v29  ;;  %v9881_v44 = vsel %vm360_vm1, %v9862_v2, 0 }
 0x4ae   : > { %13374 = vmatmul.mubr.msk.bf16.vlgmr.msra.gmra.mrb[8].mxu1 %vm356_vm2, %v13370_v29  ;;  %v9855_v18 = vpop.permute.xlu0 %9854  ;;  %10006 = vmatprep.mubr.bf16.mxu0 %v14508_v7 }
 0x4af   : > { %v9857_v32 = vpop.permute.xlu1 %9856  ;;  %v9863_v34 = vsel %vm17504_vm5, %v9853_v30, %v9855_v18  ;;  %10047 = vmatprep.mubr.bf16.mxu1 %v14508_v7  ;;  %vm17519_vm5 = vmmov %vm17515_vm0 }
 0x4b0   : > { %v9864_v37 = vsel %vm17505_vm6, %v9855_v18, %v9857_v32  ;;  %13377 = vmatprep.subr.msk.bf16.mxu1 %vm360_vm1, %v9857_v32  ;;  %11686 = vrot.lane.b32.xlu0 %v16517_v51, %s17500_s10  ;;  %vm17520_vm6 = vmmov %vm17515_vm0  ;;  %vm17530_vm0 = vcmask 318464  }
 0x4b1   : > { %11684 = vrot.lane.b32.xlu1 %v16505_v43, %s17500_s10  ;;  %13375 = vmatprep.subr.msk.bf16.mxu0 %vm360_vm1, %v9863_v34  ;;  %v9887_v45 = vsel %vm360_vm1, %v9864_v37, 0  ;;  %v13397_v37 = vld [vmem:[%s17405_s4 + $0x44] sm:$0xf]  ;;  %vm17531_vm3 = vmmov %vm17530_vm0 }
 0x4b2   : > { %9975 = vmatpush1.bf16.msra.mxu0 %v9881_v44  ;;  %10016 = vmatpush1.bf16.msra.mxu1 %v9887_v45  ;;  %v16873_v40 = vpop.permute.xlu0 %10518 }
 0x4b3   : > { %13380 = vmatprep.subr.msk.bf16.mxu0 %vm360_vm1, %v10083_v27  ;;  %v16878_v41 = vpop.permute.xlu1 %10516 }
 0x4b4   : > { %11690 = vrot.lane.b32.xlu0 %v16600_v31, %s17500_s10  ;;  %v10530_v3 = vsel %vm17522_vm8, %v16847_v20, %v16878_v41 }
 0x4b5   : > { %11688 = vrot.lane.b32.xlu1 %v16523_v60, %s17500_s10  ;;  %13376 = vmatmul.mubr.msk.bf16.vlgmr.msra.gmra.mrb[12].mxu0 %vm356_vm2, %v13370_v29  ;;  %s12875_s10 = sshll.u32 %s17342_s25, 4  ;;  %s17356_s10 = int_to_ptr.vmem [resolvable:$true] %s12875_s10 }
 0x4b6   : > { %13378 = vmatmul.mubr.msk.bf16.vlgmr.msra.gmra.mrb[12].mxu1 %vm356_vm2, %v13370_v29  ;;  %10117 = vmatpush1.bf16.msra.mxu0 %v10093_v53  ;;  %v10075_v39 = vpop.permute.xlu0 %10074  ;;  %v10541_v29 = vsel %vm360_vm1, %v10530_v3, 0  ;;  %s14443_s21 = scalar_lea.vmem %s17356_s10, 1024 }
 0x4b7   : > { %v10085_v21 = vsel %vm17509_vm10, %v10073_v22, %v10075_v39  ;;  %v16890_v58 = vpop.permute.xlu1 %10520  ;;  %10148 = vmatprep.mubr.bf16.mxu0 %v14508_v7  ;;  %10189 = vmatprep.mubr.bf16.mxu1 %v14508_v7  ;;  %vm17524_vm10 = vmmov %vm17522_vm8  ;;  %p14444_p11 = scmp.ne.s32.totalorder %s17356_s10, %s14443_s21 }
 0x4b8   : > { %11903 = vrot.lane.b32.xlu0 %v16411_v8, %s17510_s19  ;;  %13382 = vmatprep.subr.msk.bf16.mxu1 %vm360_vm1, %v10085_v21  ;;  %v10532_v20 = vsel %vm17524_vm10, %v16873_v40, %v16890_v58  ;;  %vm17538_vm10 = vmmov %vm17530_vm0 }
 0x4b9   : > { %11901 = vrot.lane.b32.xlu1 %v16363_v33, %s17510_s19  ;;  %10158 = vmatpush1.bf16.msra.mxu1 %v10099_v23  ;;  %v10547_v32 = vsel %vm360_vm1, %v10532_v20, 0  ;;  %p14445_p12 = pnand %p14444_p11, %p14618_p5 }
 0x4ba   : > { %v16900_v46 = vpop.permute.xlu0 %10766 }
 0x4bb   : > { %v10077_v49 = vpop.permute.xlu1 %10076  ;;  %p14446_p13 = pneg %p14445_p12 }
 0x4bc   : > { %11907 = vrot.lane.b32.xlu0 %v16431_v25, %s17510_s19  ;;  %v10086_v16 = vsel %vm17511_vm11, %v10075_v39, %v10077_v49  ;;  %vm17525_vm11 = vmmov %vm17522_vm8 }
 0x4bd   : > { %11905 = vrot.lane.b32.xlu1 %v16405_v12, %s17510_s19  ;;  %13381 = vmatmul.mubr.msk.bf16.vlgmr.msra.gmra.mrb[8].mxu0 %vm356_vm2, %v13379_v47  ;;  %v10105_v0 = vsel %vm360_vm1, %v10086_v16, 0 }
 0x4be   : > { %13383 = vmatmul.mubr.msk.bf16.vlgmr.msra.gmra.mrb[8].mxu1 %vm356_vm2, %v13379_v47  ;;  %v10079_v50 = vpop.permute.xlu0 %10078  ;;  %10230 = vmatprep.mubr.bf16.mxu0 %v14508_v7 }
 0x4bf   : > { %v10087_v54 = vsel %vm17512_vm13, %v10077_v49, %v10079_v50  ;;  %v10081_v59 = vpop.permute.xlu1 %10080  ;;  %10271 = vmatprep.mubr.bf16.mxu1 %v14508_v7  ;;  %vm17527_vm13 = vmmov %vm17522_vm8 }
 0x4c0   : > { %v10088_v62 = vsel %vm17513_vm14, %v10079_v50, %v10081_v59  ;;  %13386 = vmatprep.subr.msk.bf16.mxu1 %vm360_vm1, %v10081_v59  ;;  %11911 = vrot.lane.b32.xlu0 %v16505_v43, %s17510_s19  ;;  %vm17528_vm14 = vmmov %vm17522_vm8  ;;  %vm17536_vm8 = vcmask 310272  }
 0x4c1   : > { %v10111_v24 = vsel %vm360_vm1, %v10088_v62, 0  ;;  %11909 = vrot.lane.b32.xlu1 %v16489_v11, %s17510_s19  ;;  %13384 = vmatprep.subr.msk.bf16.mxu0 %vm360_vm1, %v10087_v54  ;;  %v13406_v62 = vld [vmem:[%s17405_s4 + $0x48] sm:$0xf] }
 0x4c2   : > { %10199 = vmatpush1.bf16.msra.mxu0 %v10105_v0  ;;  %10240 = vmatpush1.bf16.msra.mxu1 %v10111_v24  ;;  %v16927_v57 = vpop.permute.xlu0 %10770 }
 0x4c3   : > { %13389 = vmatprep.subr.msk.bf16.mxu0 %vm360_vm1, %v10307_v42  ;;  %v16933_v1 = vpop.permute.xlu1 %10768 }
 0x4c4   : > { %11915 = vrot.lane.b32.xlu0 %v16523_v60, %s17510_s19  ;;  %v10784_v39 = vsel %vm17530_vm0, %v16900_v46, %v16933_v1  ;;  %v10785_v21 = vsel %vm17531_vm3, %v16933_v1, %v16927_v57 }
 0x4c5   : > { %11913 = vrot.lane.b32.xlu1 %v16517_v51, %s17510_s19  ;;  %13385 = vmatmul.mubr.msk.bf16.vlgmr.msra.gmra.mrb[12].mxu0 %vm356_vm2, %v13379_v47 }
 0x4c6   : > { %13387 = vmatmul.mubr.msk.bf16.vlgmr.msra.gmra.mrb[12].mxu1 %vm356_vm2, %v13379_v47  ;;  %10341 = vmatpush1.bf16.msra.mxu0 %v10317_v48  ;;  %v10299_v6 = vpop.permute.xlu0 %10298  ;;  %v10796_v47 = vsel %vm360_vm1, %v10784_v39, 0 }
 0x4c7   : > { %v10309_v10 = vsel %vm17517_vm4, %v16836_v28, %v10299_v6  ;;  %v16947_v17 = vpop.permute.xlu1 %10772  ;;  %10372 = vmatprep.mubr.bf16.mxu0 %v14508_v7  ;;  %10413 = vmatprep.mubr.bf16.mxu1 %v14508_v7  ;;  %v10531_v28 = vsel %vm17523_vm9, %v16878_v41, %v16873_v40  ;;  %vm17532_vm4 = vmmov %vm17530_vm0 }
 0x4c8   : > { %12128 = vrot.lane.b32.xlu0 %v16363_v33, %s17518_s20  ;;  %13391 = vmatprep.subr.msk.bf16.mxu1 %vm360_vm1, %v10309_v10  ;;  %v10786_v46 = vsel %vm17532_vm4, %v16927_v57, %v16947_v17  ;;  %vm17537_vm9 = vmmov %vm17530_vm0 }
 0x4c9   : > { %11917 = vrot.lane.b32.xlu1 %v16600_v31, %s17510_s19  ;;  %10382 = vmatpush1.bf16.msra.mxu1 %v10323_v19  ;;  %v10802_v54 = vsel %vm360_vm1, %v10786_v46, 0 }
 0x4ca   : > { %v16957_v38 = vpop.permute.xlu0 %10782 }
 0x4cb   : > { %v10301_v9 = vpop.permute.xlu1 %10300 }
 0x4cc   : > { %12132 = vrot.lane.b32.xlu0 %v16405_v12, %s17518_s20  ;;  %v10310_v55 = vsel %vm17519_vm5, %v10299_v6, %v10301_v9  ;;  %vm17533_vm5 = vmmov %vm17530_vm0 }
 0x4cd   : > { %12130 = vrot.lane.b32.xlu1 %v16411_v8, %s17518_s20  ;;  %13390 = vmatmul.mubr.msk.bf16.vlgmr.msra.gmra.mrb[8].mxu0 %vm356_vm2, %v13388_v36  ;;  %v10329_v26 = vsel %vm360_vm1, %v10310_v55, 0 }
 0x4ce   : > { %13392 = vmatmul.mubr.msk.bf16.vlgmr.msra.gmra.mrb[8].mxu1 %vm356_vm2, %v13388_v36  ;;  %v10303_v22 = vpop.permute.xlu0 %10302  ;;  %10454 = vmatprep.mubr.bf16.mxu0 %v14508_v7 }
 0x4cf   : > { %v10311_v61 = vsel %vm17520_vm6, %v10301_v9, %v10303_v22  ;;  %v10305_v56 = vpop.permute.xlu1 %10304  ;;  %10495 = vmatprep.mubr.bf16.mxu1 %v14508_v7  ;;  %vm17534_vm6 = vmmov %vm17530_vm0 }
 0x4d0   : > { %v10312_v13 = vsel %vm17521_vm7, %v10303_v22, %v10305_v56  ;;  %13395 = vmatprep.subr.msk.bf16.mxu1 %vm360_vm1, %v10305_v56  ;;  %12136 = vrot.lane.b32.xlu0 %v16489_v11, %s17518_s20  ;;  %vm17535_vm7 = vmmov %vm17530_vm0  ;;  %v13424_v56 = vld [vmem:[%s17405_s4 + $0x4c] sm:$0xf] }
 0x4d1   : > { %v10335_v15 = vsel %vm360_vm1, %v10312_v13, 0  ;;  %12134 = vrot.lane.b32.xlu1 %v16431_v25, %s17518_s20  ;;  %13393 = vmatprep.subr.msk.bf16.mxu0 %vm360_vm1, %v10311_v61  ;;  %vm17543_vm0 = vmmov %vm17536_vm8 }
 0x4d2   : > { %10423 = vmatpush1.bf16.msra.mxu0 %v10329_v26  ;;  %10464 = vmatpush1.bf16.msra.mxu1 %v10335_v15  ;;  %v16987_v14 = vpop.permute.xlu0 %10995  ;;  %vm17544_vm3 = vmmov %vm17543_vm0  ;;  %v12821_v15 = vld [vmem:[%s17407_s6] sm:$0xff] }
 0x4d3   : > { %13398 = vmatprep.subr.msk.bf16.mxu0 %vm360_vm1, %v10531_v28  ;;  %v16990_v63 = vpop.permute.xlu1 %10993  ;;  %vm17545_vm4 = vmmov %vm17543_vm0 }
 0x4d4   : > { %12140 = vrot.lane.b32.xlu0 %v16517_v51, %s17518_s20 }
 0x4d5   : > { %12138 = vrot.lane.b32.xlu1 %v16505_v43, %s17518_s20  ;;  %13394 = vmatmul.mubr.msk.bf16.vlgmr.msra.gmra.mrb[12].mxu0 %vm356_vm2, %v13388_v36 }
 0x4d6   : > { %13396 = vmatmul.mubr.msk.bf16.vlgmr.msra.gmra.mrb[12].mxu1 %vm356_vm2, %v13388_v36  ;;  %10565 = vmatpush1.bf16.msra.mxu0 %v10541_v29  ;;  %v10523_v30 = vpop.permute.xlu0 %10522 }
 0x4d7   : > { %v10533_v2 = vsel %vm17525_vm11, %v16890_v58, %v10523_v30  ;;  %v17004_v18 = vpop.permute.xlu1 %10997  ;;  %10596 = vmatprep.mubr.bf16.mxu0 %v14508_v7  ;;  %10637 = vmatprep.mubr.bf16.mxu1 %v14508_v7  ;;  %vm17539_vm11 = vmmov %vm17536_vm8 }
 0x4d8   : > { %12144 = vrot.lane.b32.xlu0 %v16600_v31, %s17518_s20  ;;  %13400 = vmatprep.subr.msk.bf16.mxu1 %vm360_vm1, %v10533_v2  ;;  %v11012_v1 = vsel %vm17536_vm8, %v16987_v14, %v17004_v18  ;;  %v11011_v10 = vsel %vm17539_vm11, %v16990_v63, %v16987_v14  ;;  %v12807_v14 = vld [vmem:[%s17406_s5] sm:$0xff] }
 0x4d9   : > { %12142 = vrot.lane.b32.xlu1 %v16523_v60, %s17518_s20  ;;  %10606 = vmatpush1.bf16.msra.mxu1 %v10547_v32  ;;  %s14447_s20 = sshll.u32 %s14534_s17, 4  ;;  %s14448_s20 = int_to_ptr.vmem [resolvable:$false] %s14447_s20 }
 0x4da   : > { %v17014_v34 = vpop.permute.xlu0 %10999  ;;  %s14449_s22 = scalar_lea.vmem %s14448_s20, 2048  ;;  %p14450_p0 = scmp.lt.s32.totalorder %s17356_s10, %s14448_s20 }
 0x4db   : > { %v10525_v44 = vpop.permute.xlu1 %10524  ;;  %p14451_p1 = scmp.lt.s32.totalorder %s14449_s22, %s14443_s21 }
 0x4dc   : > { %12357 = vrot.lane.b32.xlu0 %v16411_v8, %s17526_s26  ;;  %v10534_v45 = vsel %vm17527_vm13, %v10523_v30, %v10525_v44  ;;  %vm17540_vm13 = vmmov %vm17536_vm8 }
 0x4dd   : > { %12355 = vrot.lane.b32.xlu1 %v16363_v33, %s17526_s26  ;;  %13399 = vmatmul.mubr.msk.bf16.vlgmr.msra.gmra.mrb[8].mxu0 %vm356_vm2, %v13397_v37  ;;  %v10553_v5 = vsel %vm360_vm1, %v10534_v45, 0  ;;  %p14452_p2 = por %p14451_p1, %p14450_p0 }
 0x4de   : > { %13401 = vmatmul.mubr.msk.bf16.vlgmr.msra.gmra.mrb[8].mxu1 %vm356_vm2, %v13397_v37  ;;  %v10527_v4 = vpop.permute.xlu0 %10526  ;;  %10678 = vmatprep.mubr.bf16.mxu0 %v14508_v7 }
 0x4df   : > { %v10535_v40 = vsel %vm17528_vm14, %v10525_v44, %v10527_v4  ;;  %v10529_v27 = vpop.permute.xlu1 %10528  ;;  %10719 = vmatprep.mubr.bf16.mxu1 %v14508_v7  ;;  %vm17541_vm14 = vmmov %vm17536_vm8  ;;  %p14453_p3 = pnand %p14452_p2, %p14446_p13 }
 0x4e0   : > { %v10536_v41 = vsel %vm17529_vm12, %v10527_v4, %v10529_v27  ;;  %13404 = vmatprep.subr.msk.bf16.mxu1 %vm360_vm1, %v10529_v27  ;;  %12361 = vrot.lane.b32.xlu0 %v16431_v25, %s17526_s26  ;;  %vm17542_vm12 = vmmov %vm17536_vm8 }
 0x4e1   : > { %v10559_v53 = vsel %vm360_vm1, %v10536_v41, 0  ;;  %12359 = vrot.lane.b32.xlu1 %v16405_v12, %s17526_s26  ;;  %13402 = vmatprep.subr.msk.bf16.mxu0 %vm360_vm1, %v10535_v40  ;;  %v13433_v40 = vld [vmem:[%s17405_s4 + $0x50] sm:$0xf] }
 0x4e2   : > { %10647 = vmatpush1.bf16.msra.mxu0 %v10553_v5  ;;  %10688 = vmatpush1.bf16.msra.mxu1 %v10559_v53  ;;  %v17044_v58 = vpop.permute.xlu0 %11220 }
 0x4e3   : > { %13416 = vmatprep.subr.msk.bf16.mxu0 %vm360_vm1, %v10785_v21  ;;  %v11010_v23 = vpop.permute.xlu1 %11009 }
 0x4e4   : > { %12365 = vrot.lane.b32.xlu0 %v16505_v43, %s17526_s26 }
 0x4e5   : > { %12363 = vrot.lane.b32.xlu1 %v16489_v11, %s17526_s26  ;;  %13403 = vmatmul.mubr.msk.bf16.vlgmr.msra.gmra.mrb[12].mxu0 %vm356_vm2, %v13397_v37 }
 0x4e6   : > { %13405 = vmatmul.mubr.msk.bf16.vlgmr.msra.gmra.mrb[12].mxu1 %vm356_vm2, %v13397_v37  ;;  %10820 = vmatpush1.bf16.msra.mxu0 %v10796_v47  ;;  %v10775_v49 = vpop.permute.xlu0 %10774 }
 0x4e7   : > { %v10787_v16 = vsel %vm17533_vm5, %v16947_v17, %v10775_v49  ;;  %v17059_v50 = vpop.permute.xlu1 %11222  ;;  %10851 = vmatprep.mubr.bf16.mxu0 %v14508_v7  ;;  %10892 = vmatprep.mubr.bf16.mxu1 %v14508_v7  ;;  %vm17546_vm5 = vcmask 302080  }
 0x4e8   : > { %12369 = vrot.lane.b32.xlu0 %v16523_v60, %s17526_s26  ;;  %13418 = vmatprep.subr.msk.bf16.mxu1 %vm360_vm1, %v10787_v16  ;;  %vm17549_vm8 = vmmov %vm17546_vm5 }
 0x4e9   : > { %12367 = vrot.lane.b32.xlu1 %v16517_v51, %s17526_s26  ;;  %10861 = vmatpush1.bf16.msra.mxu1 %v10802_v54  ;;  %vm17552_vm11 = vmmov %vm17546_vm5 }
 0x4ea   : > { %v10779_v59 = vpop.permute.xlu0 %10778 }
 0x4eb   : > { %v10777_v0 = vpop.permute.xlu1 %10776 }
 0x4ec   : > { %v10788_v24 = vsel %vm17534_vm6, %v10775_v49, %v10777_v0  ;;  %v10789_v52 = vsel %vm17535_vm7, %v10777_v0, %v10779_v59  ;;  %12582 = vrot.lane.b32.xlu0 %v16363_v33, %s14533_s18  ;;  %vm17547_vm6 = vmmov %vm17546_vm5 }
 0x4ed   : > { %v10808_v57 = vsel %vm360_vm1, %v10788_v24, 0  ;;  %12371 = vrot.lane.b32.xlu1 %v16600_v31, %s17526_s26  ;;  %13417 = vmatmul.mubr.msk.bf16.vlgmr.msra.gmra.mrb[8].mxu0 %vm356_vm2, %v13406_v62  ;;  %vm17548_vm7 = vmmov %vm17546_vm5  ;;  %s13505_s26 = sshll.u32 %s14601_s9, 10  ;;  %s12861_s9 = scalar_lea.sflag [#allocation4], %s296_s23 }
 0x4ee   : > { %13419 = vmatmul.mubr.msk.bf16.vlgmr.msra.gmra.mrb[8].mxu1 %vm356_vm2, %v13406_v62  ;;  %13420 = vmatprep.subr.msk.bf16.mxu0 %vm360_vm1, %v10789_v52  ;;  %v11004_v42 = vpop.permute.xlu0 %11003  ;;  %v11238_v63 = vsel %vm17548_vm7, %v17044_v58, %v17059_v50  ;;  %s17354_s19 = scalar_lea.hbm %s17409_s8, %s13505_s26 }
 0x4ef   : > { %10902 = vmatpush1.bf16.msra.mxu0 %v10808_v57  ;;  %v10781_v35 = vpop.permute.xlu1 %10780  ;;  %10933 = vmatprep.mubr.bf16.mxu0 %v14508_v7  ;;  %v11250_v2 = vsel %vm360_vm1, %v11238_v63, 0 }
 0x4f0   : > { %13425 = vmatprep.subr.msk.bf16.mxu0 %vm360_vm1, %v11012_v1  ;;  %v10790_v33 = vsel %vm17537_vm9, %v10779_v59, %v10781_v35  ;;  %v10791_v48 = vsel %vm17538_vm10, %v10781_v35, %v16957_v38  ;;  %12586 = vrot.lane.b32.xlu0 %v16405_v12, %s14533_s18  ;;  %v11013_v12 = vsel %vm17540_vm13, %v17004_v18, %v17014_v34  ;;  %vm17550_vm9 = vmmov %vm17546_vm5 }
 0x4f1   : > { %v10814_v6 = vsel %vm360_vm1, %v10790_v33, 0  ;;  %12584 = vrot.lane.b32.xlu1 %v16411_v8, %s14533_s18  ;;  %13422 = vmatprep.subr.msk.bf16.mxu1 %vm360_vm1, %v10791_v48  ;;  %v11023_v8 = vsel %vm360_vm1, %v11011_v10, 0  ;;  %v11029_v9 = vsel %vm360_vm1, %v11013_v12, 0  ;;  %vm17551_vm10 = vmmov %vm17546_vm5 }
 0x4f2   : > { %10943 = vmatpush1.bf16.msra.mxu1 %v10814_v6  ;;  %v11008_v17 = vpop.permute.xlu0 %11007  ;;  %10974 = vmatprep.mubr.bf16.mxu1 %v14508_v7  ;;  %vm17553_vm13 = vmmov %vm17546_vm5 }
 0x4f3   : > { %v11002_v19 = vpop.permute.xlu1 %11001 }
 0x4f4   : > { %v11014_v38 = vsel %vm17541_vm14, %v17014_v34, %v11002_v19  ;;  %12590 = vrot.lane.b32.xlu0 %v16489_v11, %s14533_s18  ;;  %v11018_v11 = vsel %vm17542_vm12, %v11008_v17, %v11010_v23  ;;  %vm17554_vm14 = vcmask 236544  }
 0x4f5   : > { %12588 = vrot.lane.b32.xlu1 %v16431_v25, %s14533_s18  ;;  %13421 = vmatmul.mubr.msk.bf16.vlgmr.msra.gmra.mrb[12].mxu0 %vm356_vm2, %v13406_v62  ;;  %v11015_v25 = vsel %vm17544_vm3, %v11002_v19, %v11004_v42  ;;  %vm17555_vm12 = vmmov %vm17554_vm14 }
 0x4f6   : > { %13423 = vmatmul.mubr.msk.bf16.vlgmr.msra.gmra.mrb[12].mxu1 %vm356_vm2, %v13406_v62  ;;  %11047 = vmatpush1.bf16.msra.mxu0 %v11023_v8  ;;  %v11225_v36 = vpop.permute.xlu0 %11224 }
 0x4f7   : > { %13427 = vmatprep.subr.msk.bf16.mxu1 %vm360_vm1, %v11014_v38  ;;  %v11006_v55 = vpop.permute.xlu1 %11005  ;;  %11078 = vmatprep.mubr.bf16.mxu0 %v14508_v7  ;;  %v11239_v3 = vsel %vm17547_vm6, %v17059_v50, %v11225_v36 }
 0x4f8   : > { %11088 = vmatpush1.bf16.msra.mxu1 %v11029_v9  ;;  %v11016_v22 = vsel %vm17543_vm0, %v11004_v42, %v11006_v55  ;;  %12594 = vrot.lane.b32.xlu0 %v16517_v51, %s14533_s18  ;;  %v11017_v13 = vsel %vm17545_vm4, %v11006_v55, %v11008_v17  ;;  %v11035_v51 = vsel %vm360_vm1, %v11015_v25, 0  ;;  %vm17556_vm0 = vmmov %vm17555_vm12  ;;  %v13442_v42 = vld [vmem:[%s17405_s4 + $0x54] sm:$0xf] }
 0x4f9   : > { %13431 = vmatprep.subr.msk.bf16.mxu1 %vm360_vm1, %v11018_v11  ;;  %12592 = vrot.lane.b32.xlu1 %v16505_v43, %s14533_s18  ;;  %v11041_v28 = vsel %vm360_vm1, %v11017_v13, 0  ;;  %vm17557_vm3 = vmmov %vm17556_vm0 }
 0x4fa   : > { %13429 = vmatprep.subr.msk.bf16.mxu0 %vm360_vm1, %v11016_v22  ;;  %v11229_v61 = vpop.permute.xlu0 %11228  ;;  %11119 = vmatprep.mubr.bf16.mxu1 %v14508_v7  ;;  %vm17558_vm4 = vmmov %vm17556_vm0 }
 0x4fb   : > { %v11227_v26 = vpop.permute.xlu1 %11226  ;;  %vm17560_vm6 = vmmov %vm17556_vm0 }
 0x4fc   : > { %12598 = vrot.lane.b32.xlu0 %v16600_v31, %s14533_s18  ;;  %v11241_v43 = vsel %vm17546_vm5, %v11227_v26, %v11229_v61  ;;  %v11240_v20 = vsel %vm17549_vm8, %v11225_v36, %v11227_v26  ;;  %vm17559_vm5 = vmmov %vm17556_vm0  ;;  %vm17562_vm8 = vcmask 228352   ;;  %v13451_v26 = vld [vmem:[%s17405_s4 + $0x58] sm:$0xf] }
 0x4fd   : > { %12596 = vrot.lane.b32.xlu1 %v16523_v60, %s14533_s18  ;;  %13426 = vmatmul.mubr.msk.bf16.vlgmr.msra.gmra.mrb[8].mxu0 %vm356_vm2, %v13424_v56  ;;  %v11256_v32 = vsel %vm360_vm1, %v11240_v20, 0  ;;  %vm17561_vm7 = vmmov %vm17556_vm0 }
 0x4fe   : > { %13428 = vmatmul.mubr.msk.bf16.vlgmr.msra.gmra.mrb[8].mxu1 %vm356_vm2, %v13424_v56  ;;  %11129 = vmatpush1.bf16.msra.mxu0 %v11035_v51  ;;  %v11233_v31 = vpop.permute.xlu0 %11232 }
 0x4ff   : > { %11170 = vmatpush1.bf16.msra.mxu1 %v11041_v28  ;;  %13434 = vmatprep.subr.msk.bf16.mxu0 %vm360_vm1, %v11239_v3  ;;  %v11231_v60 = vpop.permute.xlu1 %11230 }
 0x500   : > { %13436 = vmatprep.subr.msk.bf16.mxu1 %vm360_vm1, %v11241_v43  ;;  %12824 = vperm.xlu0 %14406, %v12821_v15   ;;  %v11243_v34 = vsel %vm17551_vm10, %v11231_v60, %v11233_v31  ;;  %v11242_v45 = vsel %vm17552_vm11, %v11229_v61, %v11231_v60  ;;  %vm17564_vm10 = vmmov %vm17562_vm8 }
 0x501   : > { %12810 = vperm.xlu1 %14405, %v12807_v14   ;;  %11160 = vmatprep.mubr.bf16.mxu0 %v14508_v7  ;;  %v11262_v53 = vsel %vm360_vm1, %v11242_v45, 0  ;;  %vm17565_vm11 = vmmov %vm17562_vm8 }
 0x502   : > { %v11237_v29 = vpop.permute.xlu0 %11236  ;;  %11201 = vmatprep.mubr.bf16.mxu1 %v14508_v7 }
 0x503   : > { %v11235_v30 = vpop.permute.xlu1 %11234 }
 0x504   : > { %v11245_v18 = vsel %vm17550_vm9, %v11235_v30, %v11237_v29  ;;  %v11244_v27 = vsel %vm17553_vm13, %v11233_v31, %v11235_v30  ;;  %vm17563_vm9 = vmmov %vm17562_vm8 }
 0x505   : > { %13430 = vmatmul.mubr.msk.bf16.vlgmr.msra.gmra.mrb[12].mxu0 %vm356_vm2, %v13424_v56  ;;  %v11268_v39 = vsel %vm360_vm1, %v11244_v27, 0  ;;  %vm17566_vm13 = vmmov %vm17562_vm8 }
 0x506   : > { %13432 = vmatmul.mubr.msk.bf16.vlgmr.msra.gmra.mrb[12].mxu1 %vm356_vm2, %v13424_v56  ;;  %11274 = vmatpush1.bf16.msra.mxu0 %v11250_v2  ;;  %v11450_v37 = vpop.permute.xlu0 %11449 }
 0x507   : > { %11315 = vmatpush1.bf16.msra.mxu1 %v11256_v32  ;;  %13438 = vmatprep.subr.msk.bf16.mxu0 %vm360_vm1, %v11243_v34  ;;  %v11448_v44 = vpop.permute.xlu1 %11447 }
 0x508   : > { %13440 = vmatprep.subr.msk.bf16.mxu1 %vm360_vm1, %v11245_v18  ;;  %11305 = vmatprep.mubr.bf16.mxu0 %v14508_v7  ;;  %v11465_v47 = vsel %vm17556_vm0, %v11448_v44, %v11450_v37  ;;  %vm17569_vm0 = vmmov %vm17562_vm8 }
 0x509   : > { %11346 = vmatprep.mubr.bf16.mxu1 %v14508_v7  ;;  %v11477_v54 = vsel %vm360_vm1, %v11465_v47, 0 }
 0x50a   : > { %v11454_v4 = vpop.permute.xlu0 %11453 }
 0x50b   : > { %v11452_v41 = vpop.permute.xlu1 %11451 }
 0x50c   : > { %v11466_v5 = vsel %vm17554_vm14, %v11450_v37, %v11452_v41  ;;  %v11467_v49 = vsel %vm17557_vm3, %v11452_v41, %v11454_v4  ;;  %vm17567_vm14 = vmmov %vm17562_vm8  ;;  %vm17570_vm3 = vcmask 220160  }
 0x50d   : > { %13435 = vmatmul.mubr.msk.bf16.vlgmr.msra.gmra.mrb[8].mxu0 %vm356_vm2, %v13433_v40  ;;  %v11483_v59 = vsel %vm360_vm1, %v11467_v49, 0 }
 0x50e   : > { %13437 = vmatmul.mubr.msk.bf16.vlgmr.msra.gmra.mrb[8].mxu1 %vm356_vm2, %v13433_v40  ;;  %11356 = vmatpush1.bf16.msra.mxu0 %v11262_v53  ;;  %v11458_v21 = vpop.permute.xlu0 %11457 }
 0x50f   : > { %11397 = vmatpush1.bf16.msra.mxu1 %v11268_v39  ;;  %13443 = vmatprep.subr.msk.bf16.mxu0 %vm360_vm1, %v11466_v5  ;;  %v11456_v58 = vpop.permute.xlu1 %11455 }
 0x510   : > { %v11468_v23 = vsel %vm17555_vm12, %v11454_v4, %v11456_v58  ;;  %11387 = vmatprep.mubr.bf16.mxu0 %v14508_v7  ;;  %11428 = vmatprep.mubr.bf16.mxu1 %v14508_v7  ;;  %v11469_v52 = vsel %vm17560_vm6, %v11456_v58, %v11458_v21  ;;  %vm17568_vm12 = vmmov %vm17562_vm8  ;;  %v13460_v4 = vld [vmem:[%s17405_s4 + $0x5c] sm:$0xf] }
 0x511   : > { %13445 = vmatprep.subr.msk.bf16.mxu1 %vm360_vm1, %v11468_v23  ;;  %v11489_v48 = vsel %vm360_vm1, %v11469_v52, 0  ;;  %vm17573_vm6 = vmmov %vm17570_vm3 }
 0x512   : > { %v11462_v46 = vpop.permute.xlu0 %11461 }
 0x513   : > { %v11460_v16 = vpop.permute.xlu1 %11459 }
 0x514   : > { %v11470_v50 = vsel %vm17558_vm4, %v11458_v21, %v11460_v16  ;;  %v11471_v1 = vsel %vm17561_vm7, %v11460_v16, %v11462_v46  ;;  %vm17571_vm4 = vmmov %vm17570_vm3 }
 0x515   : > { %13439 = vmatmul.mubr.msk.bf16.vlgmr.msra.gmra.mrb[12].mxu0 %vm356_vm2, %v13433_v40  ;;  %v11495_v6 = vsel %vm360_vm1, %v11471_v1, 0  ;;  %vm17574_vm7 = vmmov %vm17570_vm3 }
 0x516   : > { %13441 = vmatmul.mubr.msk.bf16.vlgmr.msra.gmra.mrb[12].mxu1 %vm356_vm2, %v13433_v40  ;;  %11501 = vmatpush1.bf16.msra.mxu0 %v11477_v54  ;;  %v11675_v62 = vpop.permute.xlu0 %11674 }
 0x517   : > { %11542 = vmatpush1.bf16.msra.mxu1 %v11483_v59  ;;  %13447 = vmatprep.subr.msk.bf16.mxu0 %vm360_vm1, %v11470_v50  ;;  %v11464_v0 = vpop.permute.xlu1 %11463 }
 0x518   : > { %v11472_v24 = vsel %vm17559_vm5, %v11462_v46, %v11464_v0  ;;  %11532 = vmatprep.mubr.bf16.mxu0 %v14508_v7  ;;  %11573 = vmatprep.mubr.bf16.mxu1 %v14508_v7  ;;  %vm17572_vm5 = vmmov %vm17570_vm3 }
 0x519   : > { %13449 = vmatprep.subr.msk.bf16.mxu1 %vm360_vm1, %v11472_v24 }
 0x51a   : > { %v11679_v57 = vpop.permute.xlu0 %11678 }
 0x51b   : > { %v11677_v35 = vpop.permute.xlu1 %11676 }
 0x51c   : > { %v11693_v33 = vsel %vm17562_vm8, %v11677_v35, %v11679_v57  ;;  %v11692_v12 = vsel %vm17564_vm10, %v11675_v62, %v11677_v35  ;;  %vm17575_vm8 = vmmov %vm17570_vm3 }
 0x51d   : > { %13444 = vmatmul.mubr.msk.bf16.vlgmr.msra.gmra.mrb[8].mxu0 %vm356_vm2, %v13442_v42  ;;  %v11704_v55 = vsel %vm360_vm1, %v11692_v12, 0  ;;  %vm17577_vm10 = vmmov %vm17570_vm3 }
 0x51e   : > { %13446 = vmatmul.mubr.msk.bf16.vlgmr.msra.gmra.mrb[8].mxu1 %vm356_vm2, %v13442_v42  ;;  %11583 = vmatpush1.bf16.msra.mxu0 %v11489_v48  ;;  %v11683_v10 = vpop.permute.xlu0 %11682 }
 0x51f   : > { %11624 = vmatpush1.bf16.msra.mxu1 %v11495_v6  ;;  %13452 = vmatprep.subr.msk.bf16.mxu0 %vm360_vm1, %v11693_v33  ;;  %v11681_v17 = vpop.permute.xlu1 %11680 }
 0x520   : > { %v11695_v19 = vsel %vm17563_vm9, %v11681_v17, %v11683_v10  ;;  %11614 = vmatprep.mubr.bf16.mxu0 %v14508_v7  ;;  %11655 = vmatprep.mubr.bf16.mxu1 %v14508_v7  ;;  %v11694_v8 = vsel %vm17565_vm11, %v11679_v57, %v11681_v17  ;;  %vm17576_vm9 = vmmov %vm17570_vm3  ;;  %vm17578_vm11 = vcmask 154624   ;;  %v13469_v57 = vld [vmem:[%s17405_s4 + $0x60] sm:$0xf] }
 0x521   : > { %13454 = vmatprep.subr.msk.bf16.mxu1 %vm360_vm1, %v11695_v19  ;;  %v11710_v11 = vsel %vm360_vm1, %v11694_v8, 0 }
 0x522   : > { %v11687_v38 = vpop.permute.xlu0 %11686 }
 0x523   : > { %v11685_v36 = vpop.permute.xlu1 %11684 }
 0x524   : > { %v11697_v9 = vsel %vm17566_vm13, %v11685_v36, %v11687_v38  ;;  %v11696_v56 = vsel %vm17568_vm12, %v11683_v10, %v11685_v36  ;;  %vm17579_vm13 = vmmov %vm17578_vm11 }
 0x525   : > { %13448 = vmatmul.mubr.msk.bf16.vlgmr.msra.gmra.mrb[12].mxu0 %vm356_vm2, %v13442_v42  ;;  %v11716_v15 = vsel %vm360_vm1, %v11696_v56, 0  ;;  %vm17581_vm12 = vmmov %vm17578_vm11  ;;  %v13478_v56 = vld [vmem:[%s17405_s4 + $0x64] sm:$0xf] }
 0x526   : > { %13450 = vmatmul.mubr.msk.bf16.vlgmr.msra.gmra.mrb[12].mxu1 %vm356_vm2, %v13442_v42  ;;  %11728 = vmatpush1.bf16.msra.mxu0 %v11704_v55  ;;  %v11691_v22 = vpop.permute.xlu0 %11690 }
 0x527   : > { %11769 = vmatpush1.bf16.msra.mxu1 %v11710_v11  ;;  %13456 = vmatprep.subr.msk.bf16.mxu0 %vm360_vm1, %v11697_v9  ;;  %v11689_v25 = vpop.permute.xlu1 %11688 }
 0x528   : > { %v11699_v61 = vsel %vm17567_vm14, %v11689_v25, %v11691_v22  ;;  %11759 = vmatprep.mubr.bf16.mxu0 %v14508_v7  ;;  %11800 = vmatprep.mubr.bf16.mxu1 %v14508_v7  ;;  %v11698_v51 = vsel %vm17569_vm0, %v11687_v38, %v11689_v25  ;;  %vm17580_vm14 = vmmov %vm17578_vm11 }
 0x529   : > { %13458 = vmatprep.subr.msk.bf16.mxu1 %vm360_vm1, %v11699_v61  ;;  %v11722_v3 = vsel %vm360_vm1, %v11698_v51, 0  ;;  %vm17582_vm0 = vmmov %vm17578_vm11 }
 0x52a   : > { %v11904_v13 = vpop.permute.xlu0 %11903 }
 0x52b   : > { %v11902_v43 = vpop.permute.xlu1 %11901 }
 0x52c   : > { %v11919_v60 = vsel %vm17571_vm4, %v11902_v43, %v11904_v13  ;;  %vm17584_vm4 = vmmov %vm17582_vm0 }
 0x52d   : > { %13453 = vmatmul.mubr.msk.bf16.vlgmr.msra.gmra.mrb[8].mxu0 %vm356_vm2, %v13451_v26  ;;  %v11931_v2 = vsel %vm360_vm1, %v11919_v60, 0 }
 0x52e   : > { %13455 = vmatmul.mubr.msk.bf16.vlgmr.msra.gmra.mrb[8].mxu1 %vm356_vm2, %v13451_v26  ;;  %11810 = vmatpush1.bf16.msra.mxu0 %v11716_v15  ;;  %v11908_v28 = vpop.permute.xlu0 %11907 }
 0x52f   : > { %11851 = vmatpush1.bf16.msra.mxu1 %v11722_v3  ;;  %v11906_v31 = vpop.permute.xlu1 %11905  ;;  %11841 = vmatprep.mubr.bf16.mxu0 %v14508_v7 }
 0x530   : > { %v11920_v14 = vsel %vm17570_vm3, %v11904_v13, %v11906_v31  ;;  %11882 = vmatprep.mubr.bf16.mxu1 %v14508_v7  ;;  %v11921_v29 = vsel %vm17572_vm5, %v11906_v31, %v11908_v28  ;;  %vm17583_vm3 = vmmov %vm17582_vm0 }
 0x531   : > { %13461 = vmatprep.subr.msk.bf16.mxu0 %vm360_vm1, %v11920_v14  ;;  %v11937_v18 = vsel %vm360_vm1, %v11921_v29, 0  ;;  %vm17585_vm5 = vmmov %vm17582_vm0 }
 0x532   : > { %v11912_v63 = vpop.permute.xlu0 %11911 }
 0x533   : > { %v11910_v20 = vpop.permute.xlu1 %11909 }
 0x534   : > { %v11922_v30 = vsel %vm17573_vm6, %v11908_v28, %v11910_v20  ;;  %v11923_v44 = vsel %vm17575_vm8, %v11910_v20, %v11912_v63  ;;  %vm17586_vm6 = vcmask 146432  }
 0x535   : > { %13457 = vmatmul.mubr.msk.bf16.vlgmr.msra.gmra.mrb[12].mxu0 %vm356_vm2, %v13451_v26  ;;  %13463 = vmatprep.subr.msk.bf16.mxu1 %vm360_vm1, %v11922_v30  ;;  %v11943_v5 = vsel %vm360_vm1, %v11923_v44, 0  ;;  %vm17588_vm8 = vmmov %vm17586_vm6  ;;  %v13487_v44 = vld [vmem:[%s17405_s4 + $0x68] sm:$0xf] }
 0x536   : > { %13459 = vmatmul.mubr.msk.bf16.vlgmr.msra.gmra.mrb[12].mxu1 %vm356_vm2, %v13451_v26  ;;  %11955 = vmatpush1.bf16.msra.mxu0 %v11931_v2  ;;  %v11916_v32 = vpop.permute.xlu0 %11915 }
 0x537   : > { %11996 = vmatpush1.bf16.msra.mxu1 %v11937_v18  ;;  %v11914_v34 = vpop.permute.xlu1 %11913  ;;  %11986 = vmatprep.mubr.bf16.mxu0 %v14508_v7 }
 0x538   : > { %v11924_v37 = vsel %vm17574_vm7, %v11912_v63, %v11914_v34  ;;  %12027 = vmatprep.mubr.bf16.mxu1 %v14508_v7  ;;  %v11925_v40 = vsel %vm17576_vm9, %v11914_v34, %v11916_v32  ;;  %vm17587_vm7 = vmmov %vm17586_vm6 }
 0x539   : > { %13465 = vmatprep.subr.msk.bf16.mxu0 %vm360_vm1, %v11924_v37  ;;  %v11949_v53 = vsel %vm360_vm1, %v11925_v40, 0  ;;  %vm17589_vm9 = vmmov %vm17586_vm6 }
 0x53a   : > { %v12129_v45 = vpop.permute.xlu0 %12128 }
 0x53b   : > { %v11918_v27 = vpop.permute.xlu1 %11917 }
 0x53c   : > { %v11926_v41 = vsel %vm17577_vm10, %v11916_v32, %v11918_v27  ;;  %vm17590_vm10 = vmmov %vm17586_vm6 }
 0x53d   : > { %13462 = vmatmul.mubr.msk.bf16.vlgmr.msra.gmra.mrb[8].mxu0 %vm356_vm2, %v13460_v4  ;;  %13467 = vmatprep.subr.msk.bf16.mxu1 %vm360_vm1, %v11926_v41 }
 0x53e   : > { %13464 = vmatmul.mubr.msk.bf16.vlgmr.msra.gmra.mrb[8].mxu1 %vm356_vm2, %v13460_v4  ;;  %12037 = vmatpush1.bf16.msra.mxu0 %v11943_v5  ;;  %v12133_v39 = vpop.permute.xlu0 %12132 }
 0x53f   : > { %12078 = vmatpush1.bf16.msra.mxu1 %v11949_v53  ;;  %v12131_v21 = vpop.permute.xlu1 %12130  ;;  %12068 = vmatprep.mubr.bf16.mxu0 %v14508_v7 }
 0x540   : > { %v12147_v58 = vsel %vm17578_vm11, %v12131_v21, %v12133_v39  ;;  %12109 = vmatprep.mubr.bf16.mxu1 %v14508_v7  ;;  %v12146_v23 = vsel %vm17579_vm13, %v12129_v45, %v12131_v21  ;;  %vm17591_vm11 = vmmov %vm17586_vm6 }
 0x541   : > { %13470 = vmatprep.subr.msk.bf16.mxu0 %vm360_vm1, %v12147_v58  ;;  %v12158_v50 = vsel %vm360_vm1, %v12146_v23, 0  ;;  %vm17592_vm13 = vmmov %vm17586_vm6 }
 0x542   : > { %v12137_v47 = vpop.permute.xlu0 %12136 }
 0x543   : > { %v12135_v46 = vpop.permute.xlu1 %12134 }
 0x544   : > { %v12148_v49 = vsel %vm17580_vm14, %v12133_v39, %v12135_v46  ;;  %v12149_v16 = vsel %vm17581_vm12, %v12135_v46, %v12137_v47  ;;  %vm17593_vm14 = vmmov %vm17586_vm6 }
 0x545   : > { %v12164_v54 = vsel %vm360_vm1, %v12148_v49, 0  ;;  %13466 = vmatmul.mubr.msk.bf16.vlgmr.msra.gmra.mrb[12].mxu0 %vm356_vm2, %v13460_v4  ;;  %13472 = vmatprep.subr.msk.bf16.mxu1 %vm360_vm1, %v12149_v16 }
 0x546   : > { %13468 = vmatmul.mubr.msk.bf16.vlgmr.msra.gmra.mrb[12].mxu1 %vm356_vm2, %v13460_v4  ;;  %12182 = vmatpush1.bf16.msra.mxu0 %v12158_v50  ;;  %v12141_v59 = vpop.permute.xlu0 %12140 }
 0x547   : > { %12223 = vmatpush1.bf16.msra.mxu1 %v12164_v54  ;;  %v12139_v62 = vpop.permute.xlu1 %12138  ;;  %12213 = vmatprep.mubr.bf16.mxu0 %v14508_v7 }
 0x548   : > { %v12151_v0 = vsel %vm17582_vm0, %v12139_v62, %v12141_v59  ;;  %12254 = vmatprep.mubr.bf16.mxu1 %v14508_v7  ;;  %v12150_v24 = vsel %vm17583_vm3, %v12137_v47, %v12139_v62 }
 0x549   : > { %13474 = vmatprep.subr.msk.bf16.mxu0 %vm360_vm1, %v12151_v0  ;;  %v12170_v33 = vsel %vm360_vm1, %v12150_v24, 0 }
 0x54a   : > { %v12145_v52 = vpop.permute.xlu0 %12144 }
 0x54b   : > { %v12143_v42 = vpop.permute.xlu1 %12142 }
 0x54c   : > { %v12152_v1 = vsel %vm17584_vm4, %v12141_v59, %v12143_v42  ;;  %v12153_v35 = vsel %vm17585_vm5, %v12143_v42, %v12145_v52 }
 0x54d   : > { %v12176_v48 = vsel %vm360_vm1, %v12152_v1, 0  ;;  %13471 = vmatmul.mubr.msk.bf16.vlgmr.msra.gmra.mrb[8].mxu0 %vm356_vm2, %v13469_v57  ;;  %13476 = vmatprep.subr.msk.bf16.mxu1 %vm360_vm1, %v12153_v35 }
 0x54e   : > { %13473 = vmatmul.mubr.msk.bf16.vlgmr.msra.gmra.mrb[8].mxu1 %vm356_vm2, %v13469_v57  ;;  %12264 = vmatpush1.bf16.msra.mxu0 %v12170_v33  ;;  %v12358_v6 = vpop.permute.xlu0 %12357 }
 0x54f   : > { %12305 = vmatpush1.bf16.msra.mxu1 %v12176_v48  ;;  %v12356_v10 = vpop.permute.xlu1 %12355  ;;  %12295 = vmatprep.mubr.bf16.mxu0 %v14508_v7 }
 0x550   : > { %12336 = vmatprep.mubr.bf16.mxu1 %v14508_v7  ;;  %v12373_v17 = vsel %vm17586_vm6, %v12356_v10, %v12358_v6 }
 0x551   : > { %v12385_v8 = vsel %vm360_vm1, %v12373_v17, 0 }
 0x552   : > { %v12362_v19 = vpop.permute.xlu0 %12361 }
 0x553   : > { %v12360_v12 = vpop.permute.xlu1 %12359 }
 0x554   : > { %v12374_v38 = vsel %vm17587_vm7, %v12358_v6, %v12360_v12  ;;  %v12375_v36 = vsel %vm17588_vm8, %v12360_v12, %v12362_v19 }
 0x555   : > { %13475 = vmatmul.mubr.msk.bf16.vlgmr.msra.gmra.mrb[12].mxu0 %vm356_vm2, %v13469_v57  ;;  %13479 = vmatprep.subr.msk.bf16.mxu0 %vm360_vm1, %v12374_v38  ;;  %v12391_v22 = vsel %vm360_vm1, %v12375_v36, 0 }
 0x556   : > { %13477 = vmatmul.mubr.msk.bf16.vlgmr.msra.gmra.mrb[12].mxu1 %vm356_vm2, %v13469_v57  ;;  %12409 = vmatpush1.bf16.msra.mxu0 %v12385_v8  ;;  %v12366_v9 = vpop.permute.xlu0 %12365 }
 0x557   : > { %v12364_v55 = vpop.permute.xlu1 %12363  ;;  %12440 = vmatprep.mubr.bf16.mxu0 %v14508_v7  ;;  %12481 = vmatprep.mubr.bf16.mxu1 %v14508_v7 }
 0x558   : > { %v12376_v11 = vsel %vm17589_vm9, %v12362_v19, %v12364_v55  ;;  %v12377_v25 = vsel %vm17590_vm10, %v12364_v55, %v12366_v9 }
 0x559   : > { %13481 = vmatprep.subr.msk.bf16.mxu1 %vm360_vm1, %v12376_v11  ;;  %v12397_v51 = vsel %vm360_vm1, %v12377_v25, 0 }
 0x55a   : > { %12450 = vmatpush1.bf16.msra.mxu1 %v12391_v22  ;;  %v12370_v61 = vpop.permute.xlu0 %12369 }
 0x55b   : > { %v12368_v13 = vpop.permute.xlu1 %12367 }
 0x55c   : > { %v12378_v26 = vsel %vm17591_vm11, %v12366_v9, %v12368_v13  ;;  %v12379_v43 = vsel %vm17592_vm13, %v12368_v13, %v12370_v61 }
 0x55d   : > { %13480 = vmatmul.mubr.msk.bf16.vlgmr.msra.gmra.mrb[8].mxu0 %vm356_vm2, %v13478_v56  ;;  %13483 = vmatprep.subr.msk.bf16.mxu0 %vm360_vm1, %v12378_v26  ;;  %v12403_v31 = vsel %vm360_vm1, %v12379_v43, 0 }
 0x55e   : > { %13482 = vmatmul.mubr.msk.bf16.vlgmr.msra.gmra.mrb[8].mxu1 %vm356_vm2, %v13478_v56  ;;  %12491 = vmatpush1.bf16.msra.mxu0 %v12397_v51  ;;  %v12583_v15 = vpop.permute.xlu0 %12582 }
 0x55f   : > { %v12372_v3 = vpop.permute.xlu1 %12371  ;;  %12522 = vmatprep.mubr.bf16.mxu0 %v14508_v7  ;;  %12563 = vmatprep.mubr.bf16.mxu1 %v14508_v7 }
 0x560   : > { %v12380_v28 = vsel %vm17593_vm14, %v12370_v61, %v12372_v3 }
 0x561   : > { %13485 = vmatprep.subr.msk.bf16.mxu1 %vm360_vm1, %v12380_v28 }
 0x562   : > { %12532 = vmatpush1.bf16.msra.mxu1 %v12403_v31  ;;  %v12587_v14 = vpop.permute.xlu0 %12586 }
 0x563   : > { %v12585_v60 = vpop.permute.xlu1 %12584 }
 0x564   : > { %v12600_v63 = vsel %vm6294_vm15, %v12583_v15, %v12585_v60  ;;  %v12601_v29 = vsel %vm6294_vm15, %v12585_v60, %v12587_v14 }
 0x565   : > { %v12612_v20 = vsel %vm360_vm1, %v12600_v63, 0  ;;  %13484 = vmatmul.mubr.msk.bf16.vlgmr.msra.gmra.mrb[12].mxu0 %vm356_vm2, %v13478_v56  ;;  %13488 = vmatprep.subr.msk.bf16.mxu0 %vm360_vm1, %v12601_v29 }
 0x566   : > { %13486 = vmatmul.mubr.msk.bf16.vlgmr.msra.gmra.mrb[12].mxu1 %vm356_vm2, %v13478_v56  ;;  %12636 = vmatpush1.bf16.msra.mxu0 %v12612_v20  ;;  %v12591_v30 = vpop.permute.xlu0 %12590 }
 0x567   : > { %v12589_v2 = vpop.permute.xlu1 %12588  ;;  %12667 = vmatprep.mubr.bf16.mxu0 %v14508_v7  ;;  %12708 = vmatprep.mubr.bf16.mxu1 %v14508_v7 }
 0x568   : > { %v12602_v18 = vsel %vm6294_vm15, %v12587_v14, %v12589_v2  ;;  %v12603_v32 = vsel %vm6294_vm15, %v12589_v2, %v12591_v30 }
 0x569   : > { %v12618_v34 = vsel %vm360_vm1, %v12602_v18, 0  ;;  %13490 = vmatprep.subr.msk.bf16.mxu1 %vm360_vm1, %v12603_v32 }
 0x56a   : > { %12677 = vmatpush1.bf16.msra.mxu1 %v12618_v34  ;;  %v12595_v37 = vpop.permute.xlu0 %12594 }
 0x56b   : > { %v12593_v45 = vpop.permute.xlu1 %12592 }
 0x56c   : > { %v12604_v4 = vsel %vm6294_vm15, %v12591_v30, %v12593_v45  ;;  %v12605_v40 = vsel %vm6294_vm15, %v12593_v45, %v12595_v37 }
 0x56d   : > { %v12624_v27 = vsel %vm360_vm1, %v12604_v4, 0  ;;  %13489 = vmatmul.mubr.msk.bf16.vlgmr.msra.gmra.mrb[8].mxu0 %vm356_vm2, %v13487_v44  ;;  %13492 = vmatprep.subr.msk.bf16.mxu0 %vm360_vm1, %v12605_v40 }
 0x56e   : > { %13491 = vmatmul.mubr.msk.bf16.vlgmr.msra.gmra.mrb[8].mxu1 %vm356_vm2, %v13487_v44  ;;  %12718 = vmatpush1.bf16.msra.mxu0 %v12624_v27  ;;  %v12599_v41 = vpop.permute.xlu0 %12598 }
 0x56f   : > { %v12597_v5 = vpop.permute.xlu1 %12596  ;;  %12749 = vmatprep.mubr.bf16.mxu0 %v14508_v7  ;;  %12790 = vmatprep.mubr.bf16.mxu1 %v14508_v7 }
 0x570   : > { %v12606_v53 = vsel %vm6294_vm15, %v12595_v37, %v12597_v5  ;;  %v12607_v39 = vsel %vm6294_vm15, %v12597_v5, %v12599_v41 }
 0x571   : > { %v12630_v21 = vsel %vm360_vm1, %v12606_v53, 0  ;;  %13494 = vmatprep.subr.msk.bf16.mxu1 %vm360_vm1, %v12607_v39  ;;  %vm12858_vm1 = vcmask 850944  }
 0x572   : > { %12759 = vmatpush1.bf16.msra.mxu1 %v12630_v21 }
 0x575   : > { %13493 = vmatmul.mubr.msk.bf16.vlgmr.msra.gmra.mrb[12].mxu0 %vm356_vm2, %v13487_v44 }
 0x576   : > { %13495 = vmatmul.mubr.msk.bf16.vlgmr.msra.gmra.mrb[12].mxu1 %vm356_vm2, %v13487_v44 }
 0x57f   : > { %v12825_v58 = vpop.permute.xlu0 %12824 }
 0x580   : > { %v12811_v23 = vpop.permute.xlu1 %12810 }
 0x640   : > { %v12669_v47 = vpop.f32.mrb[8].mxu0 }
 0x641   : > { %v12813_v46 = vmul.f32 %v12811_v23, %v12669_v47  ;;  %v12710_v7 = vpop.f32.mrb[8].mxu1  ;;  %v12671_v49 = vpop.f32.mrb[9].mxu0 }
 0x642   : > { %v12815_v16 = vmul.f32 %v12811_v23, %v12710_v7  ;;  %v12814_v50 = vmul.f32 %v12811_v23, %v12671_v49  ;;  %v12712_v54 = vpop.f32.mrb[9].mxu1  ;;  %v12673_v59 = vpop.f32.mrb[10].mxu0 }
 0x643   : > { %v12827_v62 = vadd.f32 %v12825_v58, %v12813_v46  ;;  %v12816_v0 = vmul.f32 %v12811_v23, %v12712_v54  ;;  %v12714_v24 = vpop.f32.mrb[10].mxu1  ;;  %v12674_v52 = vpop.f32.mrb[11].mxu0 }
 0x644   : > { %v12829_v57 = vadd.f32 %v12825_v58, %v12815_v16  ;;  %v12828_v42 = vadd.f32 %v12825_v58, %v12814_v50  ;;  %v12715_v1 = vpop.f32.mrb[11].mxu1 }
 0x645   : > { %v12835_v35 = vmax.f32 %v12827_v62, 0.0  ;;  %v12830_v33 = vadd.f32 %v12825_v58, %v12816_v0 }
 0x646   : > { %v12837_v48 = vmax.f32 %v12829_v57, 0.0  ;;  %v12836_v6 = vmax.f32 %v12828_v42, 0.0 }
 0x647   : > { %v12843_v10 = vmin.f32 %v12835_v35, 6.0  ;;  %v12838_v17 = vmax.f32 %v12830_v33, 0.0 }
 0x648   : > { %v12845_v19 = vmin.f32 %v12837_v48, 6.0  ;;  %v12844_v12 = vmin.f32 %v12836_v6, 6.0  ;;  %v12751_v38 = vpop.f32.mrb[12].mxu0 }
 0x649   : > { %12851 = vst [vmem:[%s17342_s25] sm:$0xff] %v12843_v10  ;;  %v12846_v8 = vmin.f32 %v12838_v17, 6.0  ;;  %v12817_v36 = vmul.f32 %v12811_v23, %v12751_v38  ;;  %v12792_v9 = vpop.f32.mrb[12].mxu1  ;;  %v12753_v55 = vpop.f32.mrb[13].mxu0 }
 0x64a   : > { %12853 = vst [vmem:[%s17342_s25 + $0x10] sm:$0xff] %v12845_v19  ;;  %12852 = vst [vmem:[%s17342_s25 + $0x8] sm:$0xff] %v12844_v12  ;;  %v12819_v11 = vmul.f32 %v12811_v23, %v12792_v9  ;;  %v12818_v22 = vmul.f32 %v12811_v23, %v12753_v55  ;;  %v12794_v25 = vpop.f32.mrb[13].mxu1  ;;  %v12755_v61 = vpop.f32.mrb[14].mxu0 }
 0x64b   : > { %12854 = vst [vmem:[%s17342_s25 + $0x18] sm:$0xff] %v12846_v8  ;;  %v12831_v56 = vadd.f32 %v12825_v58, %v12817_v36  ;;  %v12820_v13 = vmul.f32 %v12811_v23, %v12794_v25  ;;  %v12796_v26 = vpop.f32.mrb[14].mxu1  ;;  %v12756_v51 = vpop.f32.mrb[15].mxu0 }
 0x64c   : > { %v12833_v43 = vadd.f32 %v12825_v58, %v12819_v11  ;;  %v12832_v15 = vadd.f32 %v12825_v58, %v12818_v22  ;;  %v12797_v3 = vpop.f32.mrb[15].mxu1 }
 0x64d   : > { %v12839_v28 = vmax.f32 %v12831_v56, 0.0  ;;  %v12834_v31 = vadd.f32 %v12825_v58, %v12820_v13 }
 0x64e   : > { %v12841_v14 = vmax.f32 %v12833_v43, 0.0  ;;  %v12840_v60 = vmax.f32 %v12832_v15, 0.0 }
 0x64f   : > { %v12847_v63 = vmin.f32 %v12839_v28, 6.0  ;;  %v12842_v29 = vmax.f32 %v12834_v31, 0.0 }
 0x650   : > { %v12849_v20 = vmin.f32 %v12841_v14, 6.0  ;;  %v12848_v30 = vmin.f32 %v12840_v60, 6.0 }
 0x651   : > { %12855 = vst [vmem:[%s17342_s25 + $0x20] sm:$0xff] %v12847_v63  ;;  %v12850_v2 = vmin.f32 %v12842_v29, 6.0 }
 0x652   : > { %12857 = vst [vmem:[%s17342_s25 + $0x30] sm:$0xff] %v12849_v20  ;;  %12856 = vst [vmem:[%s17342_s25 + $0x28] sm:$0xff] %v12848_v30 }
 0x653   : > { %12859 = vst.msk [vmem:[%s17342_s25 + $0x38] sm:$0xff] %vm12858_vm1, %v12850_v2 }
 0x654   : > { %14456 = shalt.err (!%p14453_p3)
}
 0x655   : > { %s14457_s18 = scalar_lea.hbm %s17354_s19, 1024  ;;  %s14461_s25 = scalar_lea.hbm %s17409_s8, 2048 }
 0x656   : > { %p14458_p4 = scmp.ne.s32.totalorder %s17354_s19, %s14457_s18  ;;  %p14462_p9 = scmp.lt.u32.totalorder %s17354_s19, %s17409_s8 }
 0x657   : > { %p14463_p10 = scmp.lt.u32.totalorder %s14461_s25, %s14457_s18  ;;  %p14465_p12 = scmp.lt.u32.totalorder %s14457_s18, %s17354_s19 }
 0x658   : > { %p14459_p7 = pnand %p14458_p4, %p14618_p5 }
 0x659   : > { %p14464_p11 = por %p14463_p10, %p14462_p9 }
 0x65a   : > { %p14460_p8 = pneg %p14459_p7 }
 0x65b   : > { %p14466_p13 = por %p14465_p12, %p14464_p11 }
 0x65d   : > { %p14467_p0 = pnand %p14466_p13, %p14460_p8 }
 0x65f   : > { %14470 = shalt.err (!%p14467_p0)
}
 0x660   : > { %14339 = dma.vmem_to_hbm [thread:$0]  (%p14618_p5), %s17356_s10, 1024, %s17354_s19, %s12861_s9  }
 0x661 PF: > { %p14345_p1 = scmp.ge.s32.totalorder %s14505_s30, 2  ;;  %s12887_s13 = sand.u32 1, %s14493_s27  }
 0x662   : > { %s12888_s21 = scalar_lea.sflag [#allocation4], %s12887_s13 }
 0x663   : > { %p14342_p2 = pnand %p14345_p1, %p14622_p6 }
 0x665   : > { %14488 = dma.done.wait (!%p14342_p2), %s12888_s21, 1024  }
 0x666   : > { %14490 = vsyncadd (!%p14342_p2), %s12888_s21, 4294966272  ;;  %p18_p3 = scmp.ge.s32.totalorder %s14605_s11, 4   ;;  %s17594_s27 = smov %s14497_s28 }
 0x667   : > { %s17595_s28 = smov %s14501_s29  ;;  %s17596_s29 = smov %s14616_s14 }
 0x668   : > { %s17597_s30 = smov %s14605_s11  ;;  %20 = sbr.rel (!%p18_p3) target bundleno = 3 (0x3), region = 139 }
 0x66f   :  { %12893 = vsyncpa [#allocation4], 1 }
 0x670   :  { %12895 = vsyncpa [#allocation4 + $0x1], 1 }

</bundles_post_ra>
